<compile_context>
chip_gen: v7x
topology: tpu7x:2x2x1
jax: 0.10.0
libtpu: 0.0.40
codegen_flags: <defaults>
</compile_context>

<pallas_src>
import jax
import jax.numpy as jnp
from jax.experimental import pallas as pl
from jax.experimental.pallas import tpu as pltpu


def _permute_kernel(x_ref, o_ref):
    # x_ref block: (T, C)  ->  o_ref block: (C, T)   (batch dim squeezed away)
    o_ref[...] = x_ref[...].T


def _choose_hw_tile(hw: int) -> int:
    """Largest even split of H*W whose block is a multiple of 128 lanes.

    Prefer >=2 lane-dense blocks (keeps both v7x TensorCores busy); fall back
    to a single full-range block if no such split exists (e.g. H*W = 3136).
    """
    for nblk in (2, 4, 8):
        t = hw // nblk
        if hw % nblk == 0 and t % 128 == 0 and t >= 128:
            return t
    return hw


def nhwc_to_nchw(x):
    """Pallas implementation of x.permute(0, 3, 1, 2) for an NHWC tensor."""
    N, H, W, C = x.shape
    HW = H * W
    T = _choose_hw_tile(HW)
    n_hw_blocks = HW // T

    # Free reshape: NHWC is contiguous in (H, W), so (N, H*W, C) is a view.
    x2 = x.reshape(N, HW, C)

    out2 = pl.pallas_call(
        _permute_kernel,
        out_shape=jax.ShapeDtypeStruct((N, C, HW), x.dtype),
        grid_spec=pltpu.PrefetchScalarGridSpec(
            num_scalar_prefetch=0,
            grid=(N, n_hw_blocks),
            in_specs=[
                # (None, T, C): batch squeezed; kernel sees a (T, C) tile.
                pl.BlockSpec((None, T, C), lambda n, i: (n, i, 0)),
            ],
            # (None, C, T): lane dim is T (H*W slab), sublane dim is C.
            out_specs=pl.BlockSpec((None, C, T), lambda n, i: (n, 0, i)),
        ),
        compiler_params=pltpu.CompilerParams(
            # Both grid axes are independent; lets megacore shard them.
            dimension_semantics=("parallel", "parallel"),
            # ~9.6 MiB resident (2x in + 2x out double-buffered) at this shape;
            # explicit limit leaves headroom if reused on larger feature maps.
            vmem_limit_bytes=64 * 1024 * 1024,
        ),
    )(x2)

    # Free reshape: NCHW is contiguous in (H, W), so this is a view.
    return out2.reshape(N, C, H, W)


if __name__ == "__main__":
    key = jax.random.PRNGKey(0)
    # Shape from the reference module: x5 = torch.randn([1, 56, 56, 192]).
    x = jax.random.normal(key, (1, 56, 56, 192), dtype=jnp.float32)

    out = nhwc_to_nchw(x)
    out = jax.block_until_ready(out)

    ref = jnp.transpose(x, (0, 3, 1, 2))
    assert out.shape == ref.shape, (out.shape, ref.shape)
    assert jnp.array_equal(out, ref), "permute mismatch"

    print("KERNEL_OK")
</pallas_src>

<mosaic_0001>
module attributes {stable_mosaic.version = 11 : i64} {
  func.func @_permute_kernel(%arg0: i32, %arg1: i32, %arg2: memref<1x3136x192xf32, #tpu.memory_space<vmem>>, %arg3: memref<1x192x3136xf32, #tpu.memory_space<vmem>>) attributes {dimension_semantics = [#tpu.dimension_semantics<parallel>, #tpu.dimension_semantics<parallel>], iteration_bounds = array<i64: 1, 1>, scalar_prefetch = 0 : i64, scratch_operands = 0 : i64, tpu.core_type = #tpu.core_type<tc>, window_params = [{transform_indices = @transform_0, window_bounds = array<i64: 1, 3136, 192>}, {transform_indices = @transform_1, window_bounds = array<i64: 1, 192, 3136>}]} {
    %c0 = arith.constant 0 : index
    %c0_0 = arith.constant 0 : index
    %c0_1 = arith.constant 0 : index
    %0 = vector.load %arg2[%c0, %c0_0, %c0_1] : memref<1x3136x192xf32, #tpu.memory_space<vmem>>, vector<1x3136x192xf32>
    %1 = vector.shape_cast %0 : vector<1x3136x192xf32> to vector<3136x192xf32>
    %2 = tpu.transpose %1, [1, 0] : vector<3136x192xf32> -> vector<192x3136xf32>
    %c0_2 = arith.constant 0 : index
    %c0_3 = arith.constant 0 : index
    %c0_4 = arith.constant 0 : index
    %3 = vector.load %arg3[%c0_2, %c0_3, %c0_4] : memref<1x192x3136xf32, #tpu.memory_space<vmem>>, vector<1x192x3136xf32>
    %4 = vector.shape_cast %3 : vector<1x192x3136xf32> to vector<192x3136xf32>
    %5 = vector.shape_cast %2 : vector<192x3136xf32> to vector<1x192x3136xf32>
    tpu.vector_store %arg3[%c0_2, %c0_3, %c0_4], %5 {strides = array<i32>} : memref<1x192x3136xf32, #tpu.memory_space<vmem>>, vector<1x192x3136xf32>,
    return
  }
  func.func @transform_0(%arg0: i32, %arg1: i32) -> (i32, i32, i32) {
    %c0_i32 = arith.constant 0 : i32
    %c0_i32_0 = arith.constant 0 : i32
    return %arg0, %arg1, %c0_i32 : i32, i32, i32
  }
  func.func @transform_1(%arg0: i32, %arg1: i32) -> (i32, i32, i32) {
    %c0_i32 = arith.constant 0 : i32
    %c0_i32_0 = arith.constant 0 : i32
    return %arg0, %c0_i32, %arg1 : i32, i32, i32
  }
}

</mosaic_0001>

<bundles_post_ra>
// kernel: tpu_custom_call.1
= control target key start
LH: loop header
LB: loop body
LE: loop exit
PB: predicated region body
PF: predicated region fallthrough
CT: control target
= control target key end

     0   :  { %6 = vsyncpa [#allocation3], 0  ;;  %s3144_s0 = inlined_call_operand.hbm [shape: f32[1,3136,192], index: 0, kind: input, shape index: {}]   ;;  %s3145_s1 = inlined_call_operand.hbm [shape: f32[1,192,3136], index: 1, kind: output, shape index: {}]  }
   0x1   :  { %7 = vsyncpa [#allocation4], 0  ;;  %s3080_s6 = smov [#allocation2]   ;;  %s3032_s10 = scalar_lea.hbm %s3144_s0, 100352 }
   0x2   :  { %s13_s7 = sshll.u32 %s3080_s6, 4  ;;  %p3033_p0 = scmp.ne.s32.totalorder %s3144_s0, %s3032_s10  ;;  %s14_s7 = int_to_ptr.vmem [resolvable:$true] %s13_s7 }
   0x3   :  { %p3036_p1 = scmp.lt.u32.totalorder %s3032_s10, %s3144_s0 }
   0x5   :  { %p3038_p2 = pnand %p3036_p1, %p3033_p0 }
   0x7   :  { %3041 = shalt.err (!%p3038_p2)
}
   0x8   :  { %s3042_s15 = scalar_lea.vmem %s14_s7, 100352  ;;  %p3047_p4 = scmp.lt.s32.totalorder %s14_s7, %s14_s7 }
   0x9   :  { %p3043_p3 = scmp.ne.s32.totalorder %s14_s7, %s3042_s15  ;;  %p3048_p5 = scmp.lt.s32.totalorder %s3042_s15, %s3042_s15 }
   0xb   :  { %p3049_p6 = por %p3048_p5, %p3047_p4 }
   0xd   :  { %p3050_p7 = pnand %p3049_p6, %p3043_p3 }
   0xf   :  { %3053 = shalt.err (!%p3050_p7)
}
  0x10   :  { %s3081_s16 = smov 256   ;;  %s3082_s17 = smov 16  }
  0x11   :  { %19 = dma.hbm_to_vmem [thread:$0]  %s3144_s0, 100352, %s14_s7, [#allocation3], %s3081_s16, %s3081_s16, %s3082_s17  }
  0x12   :  { %3076 = dma.done.wait [#allocation3], 100352  }
  0x13   :  { %3077 = vsyncadd [#allocation3], 4294866944  ;;  %v23_v0 = vld [vmem:[#allocation2] sm:$0xff]  ;;  %v25_v1 = vld [vmem:[#allocation2 + $0x10] sm:$0xff]  ;;  %vm2431_vm0 = vcmask 523264   ;;  %s3083_s0 = smov [#allocation5]  }
  0x14   :  { %807 = vxpose.xlu0.b32.start [1/16] %v23_v0, 128  ;;  %v24_v2 = vld [vmem:[#allocation2 + $0x8] sm:$0xff]  ;;  %v26_v3 = vld [vmem:[#allocation2 + $0x18] sm:$0xff]  ;;  %v27_v4 = vld [vmem:[#allocation2 + $0x20] sm:$0xff]  ;;  %s3013_s20 = sshll.u32 %s3083_s0, 4  ;;  %s3014_s20 = int_to_ptr.vmem [resolvable:$true] %s3013_s20 }
  0x15   :  { %839 = vxpose.xlu1.b32.start [1/16] (narrow) %v24_v2, 64  ;;  %v28_v5 = vld [vmem:[#allocation2 + $0x28] sm:$0xff]  ;;  %v29_v6 = vld [vmem:[#allocation2 + $0x30] sm:$0xff]  ;;  %v30_v7 = vld [vmem:[#allocation2 + $0x38] sm:$0xff]  ;;  %s3054_s21 = scalar_lea.vmem %s3014_s20, 76800  ;;  %p3059_p9 = scmp.lt.s32.totalorder %s3014_s20, %s3014_s20 }
  0x16   :  { %v31_v8 = vld [vmem:[#allocation2 + $0x40] sm:$0xff]  ;;  %v32_v9 = vld [vmem:[#allocation2 + $0x48] sm:$0xff]  ;;  %v33_v10 = vld [vmem:[#allocation2 + $0x50] sm:$0xff]  ;;  %p3055_p8 = scmp.ne.s32.totalorder %s3014_s20, %s3054_s21  ;;  %p3060_p10 = scmp.lt.s32.totalorder %s3054_s21, %s3054_s21 }
  0x17   :  { %v34_v11 = vld [vmem:[#allocation2 + $0x58] sm:$0xff]  ;;  %v35_v12 = vld [vmem:[#allocation2 + $0x60] sm:$0xff]  ;;  %v36_v13 = vld [vmem:[#allocation2 + $0x68] sm:$0xff] }
  0x18   :  { %808 = vxpose.xlu0.b32.cont [2/16] %v25_v1, 128  ;;  %v37_v14 = vld [vmem:[#allocation2 + $0x70] sm:$0xff]  ;;  %v38_v15 = vld [vmem:[#allocation2 + $0x78] sm:$0xff]  ;;  %v39_v16 = vld [vmem:[#allocation2 + $0x80] sm:$0xff]  ;;  %p3061_p11 = por %p3060_p10, %p3059_p9 }
  0x19   :  { %840 = vxpose.xlu1.b32.cont [2/16] (narrow) %v26_v3, 64  ;;  %v40_v17 = vld [vmem:[#allocation2 + $0x88] sm:$0xff]  ;;  %v41_v18 = vld [vmem:[#allocation2 + $0x90] sm:$0xff]  ;;  %v42_v19 = vld [vmem:[#allocation2 + $0x98] sm:$0xff] }
  0x1a   :  { %v43_v20 = vld [vmem:[#allocation2 + $0xa0] sm:$0xff]  ;;  %v44_v21 = vld [vmem:[#allocation2 + $0xa8] sm:$0xff]  ;;  %v45_v22 = vld [vmem:[#allocation2 + $0xb0] sm:$0xff]  ;;  %p3062_p12 = pnand %p3061_p11, %p3055_p8 }
  0x1b   :  { %v46_v23 = vld [vmem:[#allocation2 + $0xb8] sm:$0xff]  ;;  %v47_v24 = vld [vmem:[#allocation2 + $0xc0] sm:$0xff]  ;;  %v48_v25 = vld [vmem:[#allocation2 + $0xc8] sm:$0xff] }
  0x1c   :  { %809 = vxpose.xlu0.b32.cont [3/16] %v27_v4, 128  ;;  %v49_v26 = vld [vmem:[#allocation2 + $0xd0] sm:$0xff]  ;;  %v50_v27 = vld [vmem:[#allocation2 + $0xd8] sm:$0xff]  ;;  %v51_v28 = vld [vmem:[#allocation2 + $0xe0] sm:$0xff] }
  0x1d   :  { %841 = vxpose.xlu1.b32.cont [3/16] (narrow) %v28_v5, 64  ;;  %v52_v29 = vld [vmem:[#allocation2 + $0xe8] sm:$0xff]  ;;  %v53_v30 = vld [vmem:[#allocation2 + $0xf0] sm:$0xff]  ;;  %v54_v31 = vld [vmem:[#allocation2 + $0xf8] sm:$0xff] }
  0x1e   :  { %v55_v32 = vld [vmem:[#allocation2 + $0x100] sm:$0xff]  ;;  %v56_v33 = vld [vmem:[#allocation2 + $0x108] sm:$0xff]  ;;  %v57_v34 = vld [vmem:[#allocation2 + $0x110] sm:$0xff] }
  0x1f   :  { %v58_v35 = vld [vmem:[#allocation2 + $0x118] sm:$0xff]  ;;  %v59_v36 = vld [vmem:[#allocation2 + $0x120] sm:$0xff]  ;;  %v60_v37 = vld [vmem:[#allocation2 + $0x128] sm:$0xff] }
  0x20   :  { %810 = vxpose.xlu0.b32.cont [4/16] %v29_v6, 128  ;;  %v61_v38 = vld [vmem:[#allocation2 + $0x130] sm:$0xff]  ;;  %v62_v39 = vld [vmem:[#allocation2 + $0x138] sm:$0xff]  ;;  %v63_v40 = vld [vmem:[#allocation2 + $0x140] sm:$0xff] }
  0x21   :  { %842 = vxpose.xlu1.b32.cont [4/16] (narrow) %v30_v7, 64  ;;  %v64_v41 = vld [vmem:[#allocation2 + $0x148] sm:$0xff]  ;;  %v65_v42 = vld [vmem:[#allocation2 + $0x150] sm:$0xff]  ;;  %v66_v43 = vld [vmem:[#allocation2 + $0x158] sm:$0xff] }
  0x22   :  { %v67_v44 = vld [vmem:[#allocation2 + $0x160] sm:$0xff]  ;;  %v68_v45 = vld [vmem:[#allocation2 + $0x168] sm:$0xff]  ;;  %v69_v46 = vld [vmem:[#allocation2 + $0x170] sm:$0xff] }
  0x23   :  { %v70_v47 = vld [vmem:[#allocation2 + $0x178] sm:$0xff]  ;;  %v71_v48 = vld [vmem:[#allocation2 + $0x180] sm:$0xff]  ;;  %v72_v49 = vld [vmem:[#allocation2 + $0x188] sm:$0xff] }
  0x24   :  { %811 = vxpose.xlu0.b32.cont [5/16] %v31_v8, 128  ;;  %v73_v50 = vld [vmem:[#allocation2 + $0x190] sm:$0xff]  ;;  %v74_v51 = vld [vmem:[#allocation2 + $0x198] sm:$0xff]  ;;  %v75_v52 = vld [vmem:[#allocation2 + $0x1a0] sm:$0xff] }
  0x25   :  { %843 = vxpose.xlu1.b32.cont [5/16] (narrow) %v32_v9, 64  ;;  %v76_v53 = vld [vmem:[#allocation2 + $0x1a8] sm:$0xff]  ;;  %v77_v54 = vld [vmem:[#allocation2 + $0x1b0] sm:$0xff]  ;;  %v78_v55 = vld [vmem:[#allocation2 + $0x1b8] sm:$0xff] }
  0x26   :  { %v79_v56 = vld [vmem:[#allocation2 + $0x1c0] sm:$0xff]  ;;  %v80_v57 = vld [vmem:[#allocation2 + $0x1c8] sm:$0xff]  ;;  %v81_v58 = vld [vmem:[#allocation2 + $0x1d0] sm:$0xff] }
  0x27   :  { %v82_v59 = vld [vmem:[#allocation2 + $0x1d8] sm:$0xff]  ;;  %v83_v60 = vld [vmem:[#allocation2 + $0x1e0] sm:$0xff]  ;;  %v84_v61 = vld [vmem:[#allocation2 + $0x1e8] sm:$0xff] }
  0x28   :  { %812 = vxpose.xlu0.b32.cont [6/16] %v33_v10, 128  ;;  %v85_v62 = vld [vmem:[#allocation2 + $0x1f0] sm:$0xff]  ;;  %v86_v63 = vld [vmem:[#allocation2 + $0x1f8] sm:$0xff]  ;;  %v87_v0 = vld [vmem:[#allocation2 + $0x200] sm:$0xff] }
  0x29   :  { %844 = vxpose.xlu1.b32.cont [6/16] (narrow) %v34_v11, 64  ;;  %v88_v1 = vld [vmem:[#allocation2 + $0x208] sm:$0xff]  ;;  %v89_v3 = vld [vmem:[#allocation2 + $0x210] sm:$0xff]  ;;  %v90_v4 = vld [vmem:[#allocation2 + $0x218] sm:$0xff] }
  0x2a   :  { %v91_v6 = vld [vmem:[#allocation2 + $0x220] sm:$0xff]  ;;  %v92_v7 = vld [vmem:[#allocation2 + $0x228] sm:$0xff]  ;;  %v93_v9 = vld [vmem:[#allocation2 + $0x230] sm:$0xff] }
  0x2b   :  { %v94_v10 = vld [vmem:[#allocation2 + $0x238] sm:$0xff] }
  0x2c   :  { %813 = vxpose.xlu0.b32.cont [7/16] %v35_v12, 128  ;;  %v95_v12 = vld [vmem:[#allocation2 + $0x240] sm:$0xff] }
  0x2d   :  { %845 = vxpose.xlu1.b32.cont [7/16] (narrow) %v36_v13, 64  ;;  %v96_v13 = vld [vmem:[#allocation2 + $0x248] sm:$0xff] }
  0x30   :  { %814 = vxpose.xlu0.b32.cont [8/16] %v37_v14, 128 }
  0x31   :  { %846 = vxpose.xlu1.b32.cont [8/16] (narrow) %v38_v15, 64  ;;  %v97_v15 = vld [vmem:[#allocation2 + $0x250] sm:$0xff] }
  0x34   :  { %815 = vxpose.xlu0.b32.cont [9/16] %v39_v16, 128  ;;  %v98_v16 = vld [vmem:[#allocation2 + $0x258] sm:$0xff] }
  0x35   :  { %847 = vxpose.xlu1.b32.cont [9/16] (narrow) %v40_v17, 64 }
  0x38   :  { %816 = vxpose.xlu0.b32.cont [10/16] %v41_v18, 128  ;;  %v99_v18 = vld [vmem:[#allocation2 + $0x260] sm:$0xff] }
  0x39   :  { %848 = vxpose.xlu1.b32.cont [10/16] (narrow) %v42_v19, 64  ;;  %v100_v19 = vld [vmem:[#allocation2 + $0x268] sm:$0xff] }
  0x3c   :  { %817 = vxpose.xlu0.b32.cont [11/16] %v43_v20, 128 }
  0x3d   :  { %849 = vxpose.xlu1.b32.cont [11/16] (narrow) %v44_v21, 64  ;;  %v101_v21 = vld [vmem:[#allocation2 + $0x270] sm:$0xff] }
  0x40   :  { %818 = vxpose.xlu0.b32.cont [12/16] %v45_v22, 128  ;;  %v102_v22 = vld [vmem:[#allocation2 + $0x278] sm:$0xff] }
  0x41   :  { %850 = vxpose.xlu1.b32.cont [12/16] (narrow) %v46_v23, 64 }
  0x44   :  { %819 = vxpose.xlu0.b32.cont [13/16] %v47_v24, 128  ;;  %v103_v24 = vld [vmem:[#allocation2 + $0x280] sm:$0xff] }
  0x45   :  { %851 = vxpose.xlu1.b32.cont [13/16] (narrow) %v48_v25, 64  ;;  %v104_v25 = vld [vmem:[#allocation2 + $0x288] sm:$0xff] }
  0x48   :  { %820 = vxpose.xlu0.b32.cont [14/16] %v49_v26, 128 }
  0x49   :  { %852 = vxpose.xlu1.b32.cont [14/16] (narrow) %v50_v27, 64  ;;  %v105_v27 = vld [vmem:[#allocation2 + $0x290] sm:$0xff] }
  0x4c   :  { %821 = vxpose.xlu0.b32.cont [15/16] %v51_v28, 128  ;;  %v106_v28 = vld [vmem:[#allocation2 + $0x298] sm:$0xff] }
  0x4d   :  { %853 = vxpose.xlu1.b32.cont [15/16] (narrow) %v52_v29, 64 }
  0x50   :  { %822 = vxpose.xlu0.b32.end [16/16] %v53_v30, 128  ;;  %v107_v30 = vld [vmem:[#allocation2 + $0x2a0] sm:$0xff] }
  0x51   :  { %854 = vxpose.xlu1.b32.end [16/16] (narrow) %v54_v31, 64  ;;  %v108_v31 = vld [vmem:[#allocation2 + $0x2a8] sm:$0xff] }
  0x54   :  { %871 = vxpose.xlu0.b32.start [1/16] %v55_v32, 128 }
  0x55   :  { %903 = vxpose.xlu1.b32.start [1/16] (narrow) %v56_v33, 64  ;;  %v109_v33 = vld [vmem:[#allocation2 + $0x2b0] sm:$0xff] }
  0x58   :  { %872 = vxpose.xlu0.b32.cont [2/16] %v57_v34, 128  ;;  %v110_v34 = vld [vmem:[#allocation2 + $0x2b8] sm:$0xff] }
  0x59   :  { %904 = vxpose.xlu1.b32.cont [2/16] (narrow) %v58_v35, 64 }
  0x5c   :  { %873 = vxpose.xlu0.b32.cont [3/16] %v59_v36, 128  ;;  %v111_v36 = vld [vmem:[#allocation2 + $0x2c0] sm:$0xff] }
  0x5d   :  { %905 = vxpose.xlu1.b32.cont [3/16] (narrow) %v60_v37, 64  ;;  %v112_v37 = vld [vmem:[#allocation2 + $0x2c8] sm:$0xff] }
  0x60   :  { %874 = vxpose.xlu0.b32.cont [4/16] %v61_v38, 128 }
  0x61   :  { %906 = vxpose.xlu1.b32.cont [4/16] (narrow) %v62_v39, 64  ;;  %v113_v39 = vld [vmem:[#allocation2 + $0x2d0] sm:$0xff] }
  0x64   :  { %875 = vxpose.xlu0.b32.cont [5/16] %v63_v40, 128  ;;  %v114_v40 = vld [vmem:[#allocation2 + $0x2d8] sm:$0xff] }
  0x65   :  { %907 = vxpose.xlu1.b32.cont [5/16] (narrow) %v64_v41, 64 }
  0x68   :  { %876 = vxpose.xlu0.b32.cont [6/16] %v65_v42, 128  ;;  %v115_v42 = vld [vmem:[#allocation2 + $0x2e0] sm:$0xff] }
  0x69   :  { %908 = vxpose.xlu1.b32.cont [6/16] (narrow) %v66_v43, 64  ;;  %v116_v43 = vld [vmem:[#allocation2 + $0x2e8] sm:$0xff] }
  0x6c   :  { %877 = vxpose.xlu0.b32.cont [7/16] %v67_v44, 128 }
  0x6d   :  { %909 = vxpose.xlu1.b32.cont [7/16] (narrow) %v68_v45, 64  ;;  %v117_v45 = vld [vmem:[#allocation2 + $0x2f0] sm:$0xff] }
  0x70   :  { %878 = vxpose.xlu0.b32.cont [8/16] %v69_v46, 128  ;;  %v118_v46 = vld [vmem:[#allocation2 + $0x2f8] sm:$0xff] }
  0x71   :  { %910 = vxpose.xlu1.b32.cont [8/16] (narrow) %v70_v47, 64 }
  0x74   :  { %879 = vxpose.xlu0.b32.cont [9/16] %v71_v48, 128  ;;  %v119_v48 = vld [vmem:[#allocation2 + $0x300] sm:$0xff] }
  0x75   :  { %911 = vxpose.xlu1.b32.cont [9/16] (narrow) %v72_v49, 64  ;;  %v120_v49 = vld [vmem:[#allocation2 + $0x308] sm:$0xff] }
  0x78   :  { %880 = vxpose.xlu0.b32.cont [10/16] %v73_v50, 128 }
  0x79   :  { %912 = vxpose.xlu1.b32.cont [10/16] (narrow) %v74_v51, 64  ;;  %v121_v51 = vld [vmem:[#allocation2 + $0x310] sm:$0xff] }
  0x7c   :  { %881 = vxpose.xlu0.b32.cont [11/16] %v75_v52, 128  ;;  %v122_v52 = vld [vmem:[#allocation2 + $0x318] sm:$0xff] }
  0x7d   :  { %913 = vxpose.xlu1.b32.cont [11/16] (narrow) %v76_v53, 64 }
  0x80   :  { %882 = vxpose.xlu0.b32.cont [12/16] %v77_v54, 128  ;;  %v123_v54 = vld [vmem:[#allocation2 + $0x320] sm:$0xff] }
  0x81   :  { %914 = vxpose.xlu1.b32.cont [12/16] (narrow) %v78_v55, 64  ;;  %v124_v55 = vld [vmem:[#allocation2 + $0x328] sm:$0xff] }
  0x84   :  { %883 = vxpose.xlu0.b32.cont [13/16] %v79_v56, 128 }
  0x85   :  { %915 = vxpose.xlu1.b32.cont [13/16] (narrow) %v80_v57, 64  ;;  %v125_v57 = vld [vmem:[#allocation2 + $0x330] sm:$0xff] }
  0x88   :  { %884 = vxpose.xlu0.b32.cont [14/16] %v81_v58, 128  ;;  %v126_v58 = vld [vmem:[#allocation2 + $0x338] sm:$0xff] }
  0x89   :  { %916 = vxpose.xlu1.b32.cont [14/16] (narrow) %v82_v59, 64 }
  0x8c   :  { %885 = vxpose.xlu0.b32.cont [15/16] %v83_v60, 128  ;;  %v127_v60 = vld [vmem:[#allocation2 + $0x340] sm:$0xff] }
  0x8d   :  { %917 = vxpose.xlu1.b32.cont [15/16] (narrow) %v84_v61, 64  ;;  %v128_v61 = vld [vmem:[#allocation2 + $0x348] sm:$0xff] }
  0x90   :  { %886 = vxpose.xlu0.b32.end [16/16] %v85_v62, 128 }
  0x91   :  { %918 = vxpose.xlu1.b32.end [16/16] (narrow) %v86_v63, 64  ;;  %v129_v63 = vld [vmem:[#allocation2 + $0x350] sm:$0xff] }
  0x94   :  { %935 = vxpose.xlu0.b32.start [1/16] %v87_v0, 128  ;;  %v823_v2 = vpop.trf.xlu0  ;;  %v130_v0 = vld [vmem:[#allocation2 + $0x358] sm:$0xff] }
  0x95   :  { %2407 = vst [vmem:[#allocation5] sm:$0xff] %v823_v2  ;;  %967 = vxpose.xlu1.b32.start [1/16] (narrow) %v88_v1, 64  ;;  %v131_v2 = vld [vmem:[#allocation2 + $0x360] sm:$0xff] }
  0x98   :  { %936 = vxpose.xlu0.b32.cont [2/16] %v89_v3, 128  ;;  %v824_v5 = vpop.trf.xlu0  ;;  %v132_v3 = vld [vmem:[#allocation2 + $0x368] sm:$0xff] }
  0x99   :  { %2433 = vst [vmem:[#allocation5 + $0xc8] sm:$0xff] %v824_v5  ;;  %968 = vxpose.xlu1.b32.cont [2/16] (narrow) %v90_v4, 64  ;;  %v133_v5 = vld [vmem:[#allocation2 + $0x370] sm:$0xff] }
  0x9c   :  { %937 = vxpose.xlu0.b32.cont [3/16] %v91_v6, 128  ;;  %v825_v8 = vpop.trf.xlu0  ;;  %v134_v6 = vld [vmem:[#allocation2 + $0x378] sm:$0xff] }
  0x9d   :  { %2458 = vst [vmem:[#allocation5 + $0x190] sm:$0xff] %v825_v8  ;;  %969 = vxpose.xlu1.b32.cont [3/16] (narrow) %v92_v7, 64  ;;  %v135_v8 = vld [vmem:[#allocation2 + $0x380] sm:$0xff] }
  0xa0   :  { %938 = vxpose.xlu0.b32.cont [4/16] %v93_v9, 128  ;;  %v826_v11 = vpop.trf.xlu0  ;;  %v136_v9 = vld [vmem:[#allocation2 + $0x388] sm:$0xff] }
  0xa1   :  { %2483 = vst [vmem:[#allocation5 + $0x258] sm:$0xff] %v826_v11  ;;  %970 = vxpose.xlu1.b32.cont [4/16] (narrow) %v94_v10, 64  ;;  %v137_v11 = vld [vmem:[#allocation2 + $0x390] sm:$0xff] }
  0xa4   :  { %939 = vxpose.xlu0.b32.cont [5/16] %v95_v12, 128  ;;  %v827_v14 = vpop.trf.xlu0  ;;  %v138_v12 = vld [vmem:[#allocation2 + $0x398] sm:$0xff] }
  0xa5   :  { %2508 = vst [vmem:[#allocation5 + $0x320] sm:$0xff] %v827_v14  ;;  %971 = vxpose.xlu1.b32.cont [5/16] (narrow) %v96_v13, 64  ;;  %v139_v14 = vld [vmem:[#allocation2 + $0x3a0] sm:$0xff] }
  0xa8   :  { %940 = vxpose.xlu0.b32.cont [6/16] %v97_v15, 128  ;;  %v828_v17 = vpop.trf.xlu0  ;;  %v140_v15 = vld [vmem:[#allocation2 + $0x3a8] sm:$0xff] }
  0xa9   :  { %2533 = vst [vmem:[#allocation5 + $0x3e8] sm:$0xff] %v828_v17  ;;  %972 = vxpose.xlu1.b32.cont [6/16] (narrow) %v98_v16, 64  ;;  %v141_v17 = vld [vmem:[#allocation2 + $0x3b0] sm:$0xff] }
  0xac   :  { %941 = vxpose.xlu0.b32.cont [7/16] %v99_v18, 128  ;;  %v829_v20 = vpop.trf.xlu0  ;;  %v142_v18 = vld [vmem:[#allocation2 + $0x3b8] sm:$0xff] }
  0xad   :  { %2558 = vst [vmem:[#allocation5 + $0x4b0] sm:$0xff] %v829_v20  ;;  %973 = vxpose.xlu1.b32.cont [7/16] (narrow) %v100_v19, 64  ;;  %v143_v20 = vld [vmem:[#allocation2 + $0x3c0] sm:$0xff] }
  0xb0   :  { %942 = vxpose.xlu0.b32.cont [8/16] %v101_v21, 128  ;;  %v830_v23 = vpop.trf.xlu0  ;;  %v144_v21 = vld [vmem:[#allocation2 + $0x3c8] sm:$0xff] }
  0xb1   :  { %2583 = vst [vmem:[#allocation5 + $0x578] sm:$0xff] %v830_v23  ;;  %974 = vxpose.xlu1.b32.cont [8/16] (narrow) %v102_v22, 64  ;;  %v145_v23 = vld [vmem:[#allocation2 + $0x3d0] sm:$0xff] }
  0xb4   :  { %943 = vxpose.xlu0.b32.cont [9/16] %v103_v24, 128  ;;  %v831_v26 = vpop.trf.xlu0  ;;  %v146_v24 = vld [vmem:[#allocation2 + $0x3d8] sm:$0xff] }
  0xb5   :  { %2608 = vst [vmem:[#allocation5 + $0x640] sm:$0xff] %v831_v26  ;;  %975 = vxpose.xlu1.b32.cont [9/16] (narrow) %v104_v25, 64  ;;  %v147_v26 = vld [vmem:[#allocation2 + $0x3e0] sm:$0xff] }
  0xb8   :  { %944 = vxpose.xlu0.b32.cont [10/16] %v105_v27, 128  ;;  %v832_v29 = vpop.trf.xlu0  ;;  %v148_v27 = vld [vmem:[#allocation2 + $0x3e8] sm:$0xff] }
  0xb9   :  { %2633 = vst [vmem:[#allocation5 + $0x708] sm:$0xff] %v832_v29  ;;  %976 = vxpose.xlu1.b32.cont [10/16] (narrow) %v106_v28, 64  ;;  %v149_v29 = vld [vmem:[#allocation2 + $0x3f0] sm:$0xff] }
  0xbc   :  { %945 = vxpose.xlu0.b32.cont [11/16] %v107_v30, 128  ;;  %v833_v32 = vpop.trf.xlu0  ;;  %v150_v30 = vld [vmem:[#allocation2 + $0x3f8] sm:$0xff] }
  0xbd   :  { %2658 = vst [vmem:[#allocation5 + $0x7d0] sm:$0xff] %v833_v32  ;;  %977 = vxpose.xlu1.b32.cont [11/16] (narrow) %v108_v31, 64  ;;  %v151_v32 = vld [vmem:[#allocation2 + $0x400] sm:$0xff] }
  0xc0   :  { %946 = vxpose.xlu0.b32.cont [12/16] %v109_v33, 128  ;;  %v834_v35 = vpop.trf.xlu0  ;;  %v152_v33 = vld [vmem:[#allocation2 + $0x408] sm:$0xff] }
  0xc1   :  { %2683 = vst [vmem:[#allocation5 + $0x898] sm:$0xff] %v834_v35  ;;  %978 = vxpose.xlu1.b32.cont [12/16] (narrow) %v110_v34, 64  ;;  %v153_v35 = vld [vmem:[#allocation2 + $0x410] sm:$0xff] }
  0xc4   :  { %947 = vxpose.xlu0.b32.cont [13/16] %v111_v36, 128  ;;  %v835_v38 = vpop.trf.xlu0  ;;  %v154_v36 = vld [vmem:[#allocation2 + $0x418] sm:$0xff] }
  0xc5   :  { %2708 = vst [vmem:[#allocation5 + $0x960] sm:$0xff] %v835_v38  ;;  %979 = vxpose.xlu1.b32.cont [13/16] (narrow) %v112_v37, 64  ;;  %v155_v38 = vld [vmem:[#allocation2 + $0x420] sm:$0xff] }
  0xc8   :  { %948 = vxpose.xlu0.b32.cont [14/16] %v113_v39, 128  ;;  %v836_v41 = vpop.trf.xlu0  ;;  %v855_v39 = vpop.trf.xlu1 }
  0xc9   :  { %2733 = vst [vmem:[#allocation5 + $0xa28] sm:$0xff] %v836_v41  ;;  %980 = vxpose.xlu1.b32.cont [14/16] (narrow) %v114_v40, 64  ;;  %2808 = vst [vmem:[#allocation5 + $0xc80] sm:$0xff] %v855_v39  ;;  %v156_v40 = vld [vmem:[#allocation2 + $0x428] sm:$0xff] }
  0xcc   :  { %949 = vxpose.xlu0.b32.cont [15/16] %v115_v42, 128  ;;  %v837_v44 = vpop.trf.xlu0  ;;  %v157_v42 = vld [vmem:[#allocation2 + $0x430] sm:$0xff] }
  0xcd   :  { %2758 = vst [vmem:[#allocation5 + $0xaf0] sm:$0xff] %v837_v44  ;;  %981 = vxpose.xlu1.b32.cont [15/16] (narrow) %v116_v43, 64  ;;  %v856_v43 = vpop.trf.xlu1  ;;  %v158_v44 = vld [vmem:[#allocation2 + $0x438] sm:$0xff] }
  0xce   :  { %2833 = vst [vmem:[#allocation5 + $0xd48] sm:$0xff] %v856_v43 }
  0xd0   :  { %950 = vxpose.xlu0.b32.end [16/16] %v117_v45, 128  ;;  %v838_v47 = vpop.trf.xlu0 }
  0xd1   :  { %2783 = vst [vmem:[#allocation5 + $0xbb8] sm:$0xff] %v838_v47  ;;  %982 = vxpose.xlu1.b32.end [16/16] (narrow) %v118_v46, 64  ;;  %v159_v46 = vld [vmem:[#allocation2 + $0x440] sm:$0xff]  ;;  %v857_v47 = vpop.trf.xlu1 }
  0xd2   :  { %2858 = vst [vmem:[#allocation5 + $0xe10] sm:$0xff] %v857_v47 }
  0xd4   :  { %999 = vxpose.xlu0.b32.start [1/16] %v119_v48, 128  ;;  %v887_v50 = vpop.trf.xlu0  ;;  %v160_v48 = vld [vmem:[#allocation2 + $0x448] sm:$0xff] }
  0xd5   :  { %2408 = vst [vmem:[#allocation5 + $0x8] sm:$0xff] %v887_v50  ;;  %1031 = vxpose.xlu1.b32.start [1/16] (narrow) %v120_v49, 64  ;;  %v161_v50 = vld [vmem:[#allocation2 + $0x450] sm:$0xff] }
  0xd8   :  { %1000 = vxpose.xlu0.b32.cont [2/16] %v121_v51, 128  ;;  %v888_v53 = vpop.trf.xlu0  ;;  %v858_v51 = vpop.trf.xlu1 }
  0xd9   :  { %2434 = vst [vmem:[#allocation5 + $0xd0] sm:$0xff] %v888_v53  ;;  %1032 = vxpose.xlu1.b32.cont [2/16] (narrow) %v122_v52, 64  ;;  %2883 = vst [vmem:[#allocation5 + $0xed8] sm:$0xff] %v858_v51  ;;  %v162_v52 = vld [vmem:[#allocation2 + $0x458] sm:$0xff] }
  0xdc   :  { %1001 = vxpose.xlu0.b32.cont [3/16] %v123_v54, 128  ;;  %v889_v56 = vpop.trf.xlu0  ;;  %v163_v54 = vld [vmem:[#allocation2 + $0x460] sm:$0xff] }
  0xdd   :  { %2459 = vst [vmem:[#allocation5 + $0x198] sm:$0xff] %v889_v56  ;;  %1033 = vxpose.xlu1.b32.cont [3/16] (narrow) %v124_v55, 64  ;;  %v859_v55 = vpop.trf.xlu1  ;;  %v164_v56 = vld [vmem:[#allocation2 + $0x468] sm:$0xff] }
  0xde   :  { %2908 = vst [vmem:[#allocation5 + $0xfa0] sm:$0xff] %v859_v55 }
  0xe0   :  { %1002 = vxpose.xlu0.b32.cont [4/16] %v125_v57, 128  ;;  %v890_v59 = vpop.trf.xlu0 }
  0xe1   :  { %2484 = vst [vmem:[#allocation5 + $0x260] sm:$0xff] %v890_v59  ;;  %1034 = vxpose.xlu1.b32.cont [4/16] (narrow) %v126_v58, 64  ;;  %v165_v58 = vld [vmem:[#allocation2 + $0x470] sm:$0xff]  ;;  %v860_v59 = vpop.trf.xlu1 }
  0xe2   :  { %2933 = vst [vmem:[#allocation5 + $0x1068] sm:$0xff] %v860_v59  ;;  %v202_v59 = vld [vmem:[#allocation2 + $0x598] sm:$0xff] }
  0xe4   :  { %1003 = vxpose.xlu0.b32.cont [5/16] %v127_v60, 128  ;;  %v891_v62 = vpop.trf.xlu0  ;;  %v166_v60 = vld [vmem:[#allocation2 + $0x478] sm:$0xff] }
  0xe5   :  { %2509 = vst [vmem:[#allocation5 + $0x328] sm:$0xff] %v891_v62  ;;  %1035 = vxpose.xlu1.b32.cont [5/16] (narrow) %v128_v61, 64  ;;  %v167_v62 = vld [vmem:[#allocation2 + $0x480] sm:$0xff] }
  0xe8   :  { %1004 = vxpose.xlu0.b32.cont [6/16] %v129_v63, 128  ;;  %v892_v1 = vpop.trf.xlu0  ;;  %v861_v63 = vpop.trf.xlu1 }
  0xe9   :  { %2534 = vst [vmem:[#allocation5 + $0x3f0] sm:$0xff] %v892_v1  ;;  %1036 = vxpose.xlu1.b32.cont [6/16] (narrow) %v130_v0, 64  ;;  %2958 = vst [vmem:[#allocation5 + $0x1130] sm:$0xff] %v861_v63  ;;  %v168_v0 = vld [vmem:[#allocation2 + $0x488] sm:$0xff] }
  0xec   :  { %1005 = vxpose.xlu0.b32.cont [7/16] %v131_v2, 128  ;;  %v893_v4 = vpop.trf.xlu0  ;;  %v169_v2 = vld [vmem:[#allocation2 + $0x490] sm:$0xff] }
  0xed   :  { %2559 = vst [vmem:[#allocation5 + $0x4b8] sm:$0xff] %v893_v4  ;;  %1037 = vxpose.xlu1.b32.cont [7/16] (narrow) %v132_v3, 64  ;;  %v170_v3 = vld [vmem:[#allocation2 + $0x498] sm:$0xff] }
  0xf0   :  { %1006 = vxpose.xlu0.b32.cont [8/16] %v133_v5, 128  ;;  %v894_v7 = vpop.trf.xlu0  ;;  %v171_v5 = vld [vmem:[#allocation2 + $0x4a0] sm:$0xff] }
  0xf1   :  { %2584 = vst [vmem:[#allocation5 + $0x580] sm:$0xff] %v894_v7  ;;  %1038 = vxpose.xlu1.b32.cont [8/16] (narrow) %v134_v6, 64  ;;  %v172_v6 = vld [vmem:[#allocation2 + $0x4a8] sm:$0xff] }
  0xf4   :  { %1007 = vxpose.xlu0.b32.cont [9/16] %v135_v8, 128  ;;  %v895_v10 = vpop.trf.xlu0  ;;  %v173_v8 = vld [vmem:[#allocation2 + $0x4b0] sm:$0xff] }
  0xf5   :  { %2609 = vst [vmem:[#allocation5 + $0x648] sm:$0xff] %v895_v10  ;;  %1039 = vxpose.xlu1.b32.cont [9/16] (narrow) %v136_v9, 64  ;;  %v174_v9 = vld [vmem:[#allocation2 + $0x4b8] sm:$0xff] }
  0xf8   :  { %1008 = vxpose.xlu0.b32.cont [10/16] %v137_v11, 128  ;;  %v896_v13 = vpop.trf.xlu0  ;;  %v175_v11 = vld [vmem:[#allocation2 + $0x4c0] sm:$0xff] }
  0xf9   :  { %2634 = vst [vmem:[#allocation5 + $0x710] sm:$0xff] %v896_v13  ;;  %1040 = vxpose.xlu1.b32.cont [10/16] (narrow) %v138_v12, 64  ;;  %v176_v12 = vld [vmem:[#allocation2 + $0x4c8] sm:$0xff] }
  0xfc   :  { %1009 = vxpose.xlu0.b32.cont [11/16] %v139_v14, 128  ;;  %v897_v16 = vpop.trf.xlu0  ;;  %v177_v14 = vld [vmem:[#allocation2 + $0x4d0] sm:$0xff] }
  0xfd   :  { %2659 = vst [vmem:[#allocation5 + $0x7d8] sm:$0xff] %v897_v16  ;;  %1041 = vxpose.xlu1.b32.cont [11/16] (narrow) %v140_v15, 64  ;;  %v178_v15 = vld [vmem:[#allocation2 + $0x4d8] sm:$0xff] }
 0x100   :  { %1010 = vxpose.xlu0.b32.cont [12/16] %v141_v17, 128  ;;  %v898_v19 = vpop.trf.xlu0  ;;  %v179_v17 = vld [vmem:[#allocation2 + $0x4e0] sm:$0xff] }
 0x101   :  { %2684 = vst [vmem:[#allocation5 + $0x8a0] sm:$0xff] %v898_v19  ;;  %1042 = vxpose.xlu1.b32.cont [12/16] (narrow) %v142_v18, 64  ;;  %v180_v18 = vld [vmem:[#allocation2 + $0x4e8] sm:$0xff] }
 0x104   :  { %1011 = vxpose.xlu0.b32.cont [13/16] %v143_v20, 128  ;;  %v899_v22 = vpop.trf.xlu0  ;;  %v181_v20 = vld [vmem:[#allocation2 + $0x4f0] sm:$0xff] }
 0x105   :  { %2709 = vst [vmem:[#allocation5 + $0x968] sm:$0xff] %v899_v22  ;;  %1043 = vxpose.xlu1.b32.cont [13/16] (narrow) %v144_v21, 64  ;;  %v182_v21 = vld [vmem:[#allocation2 + $0x4f8] sm:$0xff] }
 0x108   :  { %1012 = vxpose.xlu0.b32.cont [14/16] %v145_v23, 128  ;;  %v900_v25 = vpop.trf.xlu0  ;;  %v183_v23 = vld [vmem:[#allocation2 + $0x500] sm:$0xff] }
 0x109   :  { %2734 = vst [vmem:[#allocation5 + $0xa30] sm:$0xff] %v900_v25  ;;  %1044 = vxpose.xlu1.b32.cont [14/16] (narrow) %v146_v24, 64  ;;  %v184_v24 = vld [vmem:[#allocation2 + $0x508] sm:$0xff] }
 0x10c   :  { %1013 = vxpose.xlu0.b32.cont [15/16] %v147_v26, 128  ;;  %v901_v28 = vpop.trf.xlu0  ;;  %v185_v26 = vld [vmem:[#allocation2 + $0x510] sm:$0xff] }
 0x10d   :  { %2759 = vst [vmem:[#allocation5 + $0xaf8] sm:$0xff] %v901_v28  ;;  %1045 = vxpose.xlu1.b32.cont [15/16] (narrow) %v148_v27, 64  ;;  %v862_v27 = vpop.trf.xlu1  ;;  %v186_v28 = vld [vmem:[#allocation2 + $0x518] sm:$0xff] }
 0x10e   :  { %2983 = vst [vmem:[#allocation5 + $0x11f8] sm:$0xff] %v862_v27 }
 0x110   :  { %1014 = vxpose.xlu0.b32.end [16/16] %v149_v29, 128  ;;  %v902_v31 = vpop.trf.xlu0 }
 0x111   :  { %2784 = vst [vmem:[#allocation5 + $0xbc0] sm:$0xff] %v902_v31  ;;  %1046 = vxpose.xlu1.b32.end [16/16] (narrow) %v150_v30, 64  ;;  %v187_v30 = vld [vmem:[#allocation2 + $0x520] sm:$0xff]  ;;  %v919_v31 = vpop.trf.xlu1 }
 0x112   :  { %2809 = vst [vmem:[#allocation5 + $0xc88] sm:$0xff] %v919_v31 }
 0x114   :  { %1063 = vxpose.xlu0.b32.start [1/16] %v151_v32, 128  ;;  %v951_v34 = vpop.trf.xlu0  ;;  %v188_v32 = vld [vmem:[#allocation2 + $0x528] sm:$0xff] }
 0x115   :  { %2409 = vst [vmem:[#allocation5 + $0x10] sm:$0xff] %v951_v34  ;;  %1095 = vxpose.xlu1.b32.start [1/16] (narrow) %v152_v33, 64  ;;  %v189_v34 = vld [vmem:[#allocation2 + $0x530] sm:$0xff] }
 0x118   :  { %1064 = vxpose.xlu0.b32.cont [2/16] %v153_v35, 128  ;;  %v952_v37 = vpop.trf.xlu0  ;;  %v920_v35 = vpop.trf.xlu1 }
 0x119   :  { %2435 = vst [vmem:[#allocation5 + $0xd8] sm:$0xff] %v952_v37  ;;  %1096 = vxpose.xlu1.b32.cont [2/16] (narrow) %v154_v36, 64  ;;  %2834 = vst [vmem:[#allocation5 + $0xd50] sm:$0xff] %v920_v35  ;;  %v190_v36 = vld [vmem:[#allocation2 + $0x538] sm:$0xff] }
 0x11c   :  { %1065 = vxpose.xlu0.b32.cont [3/16] %v155_v38, 128  ;;  %v953_v41 = vpop.trf.xlu0  ;;  %v191_v38 = vld [vmem:[#allocation2 + $0x540] sm:$0xff]  ;;  %v921_v39 = vpop.trf.xlu1 }
 0x11d   :  { %2460 = vst [vmem:[#allocation5 + $0x1a0] sm:$0xff] %v953_v41  ;;  %1097 = vxpose.xlu1.b32.cont [3/16] (narrow) %v156_v40, 64  ;;  %2859 = vst [vmem:[#allocation5 + $0xe18] sm:$0xff] %v921_v39  ;;  %v192_v40 = vld [vmem:[#allocation2 + $0x548] sm:$0xff] }
 0x120   :  { %1066 = vxpose.xlu0.b32.cont [4/16] %v157_v42, 128  ;;  %v954_v45 = vpop.trf.xlu0  ;;  %v193_v42 = vld [vmem:[#allocation2 + $0x550] sm:$0xff]  ;;  %v922_v43 = vpop.trf.xlu1 }
 0x121   :  { %2485 = vst [vmem:[#allocation5 + $0x268] sm:$0xff] %v954_v45  ;;  %1098 = vxpose.xlu1.b32.cont [4/16] (narrow) %v158_v44, 64  ;;  %2884 = vst [vmem:[#allocation5 + $0xee0] sm:$0xff] %v922_v43  ;;  %v194_v44 = vld [vmem:[#allocation2 + $0x558] sm:$0xff] }
 0x124   :  { %1067 = vxpose.xlu0.b32.cont [5/16] %v159_v46, 128  ;;  %v955_v49 = vpop.trf.xlu0  ;;  %v195_v46 = vld [vmem:[#allocation2 + $0x560] sm:$0xff]  ;;  %v923_v47 = vpop.trf.xlu1 }
 0x125   :  { %2510 = vst [vmem:[#allocation5 + $0x330] sm:$0xff] %v955_v49  ;;  %1099 = vxpose.xlu1.b32.cont [5/16] (narrow) %v160_v48, 64  ;;  %2909 = vst [vmem:[#allocation5 + $0xfa8] sm:$0xff] %v923_v47  ;;  %v196_v48 = vld [vmem:[#allocation2 + $0x568] sm:$0xff] }
 0x128   :  { %1068 = vxpose.xlu0.b32.cont [6/16] %v161_v50, 128  ;;  %v956_v53 = vpop.trf.xlu0  ;;  %v197_v50 = vld [vmem:[#allocation2 + $0x570] sm:$0xff]  ;;  %v924_v51 = vpop.trf.xlu1 }
 0x129   :  { %2535 = vst [vmem:[#allocation5 + $0x3f8] sm:$0xff] %v956_v53  ;;  %1100 = vxpose.xlu1.b32.cont [6/16] (narrow) %v162_v52, 64  ;;  %2934 = vst [vmem:[#allocation5 + $0x1070] sm:$0xff] %v924_v51  ;;  %v198_v52 = vld [vmem:[#allocation2 + $0x578] sm:$0xff] }
 0x12a   :  { %v234_v51 = vld [vmem:[#allocation2 + $0x698] sm:$0xff] }
 0x12c   :  { %1069 = vxpose.xlu0.b32.cont [7/16] %v163_v54, 128  ;;  %v957_v57 = vpop.trf.xlu0  ;;  %v199_v54 = vld [vmem:[#allocation2 + $0x580] sm:$0xff]  ;;  %v925_v55 = vpop.trf.xlu1 }
 0x12d   :  { %2560 = vst [vmem:[#allocation5 + $0x4c0] sm:$0xff] %v957_v57  ;;  %1101 = vxpose.xlu1.b32.cont [7/16] (narrow) %v164_v56, 64  ;;  %2959 = vst [vmem:[#allocation5 + $0x1138] sm:$0xff] %v925_v55  ;;  %v200_v56 = vld [vmem:[#allocation2 + $0x588] sm:$0xff] }
 0x130   :  { %1070 = vxpose.xlu0.b32.cont [8/16] %v165_v58, 128  ;;  %v958_v61 = vpop.trf.xlu0  ;;  %v201_v58 = vld [vmem:[#allocation2 + $0x590] sm:$0xff] }
 0x131   :  { %2585 = vst [vmem:[#allocation5 + $0x588] sm:$0xff] %v958_v61  ;;  %1102 = vxpose.xlu1.b32.cont [8/16] (narrow) %v166_v60, 64  ;;  %v203_v61 = vld [vmem:[#allocation2 + $0x5a0] sm:$0xff] }
 0x134   :  { %1071 = vxpose.xlu0.b32.cont [9/16] %v167_v62, 128  ;;  %v959_v1 = vpop.trf.xlu0  ;;  %v204_v62 = vld [vmem:[#allocation2 + $0x5a8] sm:$0xff] }
 0x135   :  { %2610 = vst [vmem:[#allocation5 + $0x650] sm:$0xff] %v959_v1  ;;  %1103 = vxpose.xlu1.b32.cont [9/16] (narrow) %v168_v0, 64  ;;  %v205_v0 = vld [vmem:[#allocation2 + $0x5b0] sm:$0xff]  ;;  %v206_v1 = vld [vmem:[#allocation2 + $0x5b8] sm:$0xff] }
 0x138   :  { %1072 = vxpose.xlu0.b32.cont [10/16] %v169_v2, 128  ;;  %v960_v4 = vpop.trf.xlu0 }
 0x139   :  { %2635 = vst [vmem:[#allocation5 + $0x718] sm:$0xff] %v960_v4  ;;  %1104 = vxpose.xlu1.b32.cont [10/16] (narrow) %v170_v3, 64  ;;  %v207_v3 = vld [vmem:[#allocation2 + $0x5c0] sm:$0xff]  ;;  %v208_v4 = vld [vmem:[#allocation2 + $0x5c8] sm:$0xff] }
 0x13c   :  { %1073 = vxpose.xlu0.b32.cont [11/16] %v171_v5, 128  ;;  %v961_v7 = vpop.trf.xlu0 }
 0x13d   :  { %2660 = vst [vmem:[#allocation5 + $0x7e0] sm:$0xff] %v961_v7  ;;  %1105 = vxpose.xlu1.b32.cont [11/16] (narrow) %v172_v6, 64  ;;  %v209_v6 = vld [vmem:[#allocation2 + $0x5d0] sm:$0xff]  ;;  %v210_v7 = vld [vmem:[#allocation2 + $0x5d8] sm:$0xff] }
 0x140   :  { %1074 = vxpose.xlu0.b32.cont [12/16] %v173_v8, 128  ;;  %v962_v10 = vpop.trf.xlu0 }
 0x141   :  { %2685 = vst [vmem:[#allocation5 + $0x8a8] sm:$0xff] %v962_v10  ;;  %1106 = vxpose.xlu1.b32.cont [12/16] (narrow) %v174_v9, 64  ;;  %v211_v9 = vld [vmem:[#allocation2 + $0x5e0] sm:$0xff]  ;;  %v212_v10 = vld [vmem:[#allocation2 + $0x5e8] sm:$0xff] }
 0x144   :  { %1075 = vxpose.xlu0.b32.cont [13/16] %v175_v11, 128  ;;  %v963_v13 = vpop.trf.xlu0 }
 0x145   :  { %2710 = vst [vmem:[#allocation5 + $0x970] sm:$0xff] %v963_v13  ;;  %1107 = vxpose.xlu1.b32.cont [13/16] (narrow) %v176_v12, 64  ;;  %v213_v12 = vld [vmem:[#allocation2 + $0x5f0] sm:$0xff]  ;;  %v214_v13 = vld [vmem:[#allocation2 + $0x5f8] sm:$0xff] }
 0x148   :  { %1076 = vxpose.xlu0.b32.cont [14/16] %v177_v14, 128  ;;  %v964_v16 = vpop.trf.xlu0 }
 0x149   :  { %2735 = vst [vmem:[#allocation5 + $0xa38] sm:$0xff] %v964_v16  ;;  %1108 = vxpose.xlu1.b32.cont [14/16] (narrow) %v178_v15, 64  ;;  %v215_v15 = vld [vmem:[#allocation2 + $0x600] sm:$0xff]  ;;  %v216_v16 = vld [vmem:[#allocation2 + $0x608] sm:$0xff] }
 0x14c   :  { %1077 = vxpose.xlu0.b32.cont [15/16] %v179_v17, 128  ;;  %v965_v19 = vpop.trf.xlu0 }
 0x14d   :  { %2760 = vst [vmem:[#allocation5 + $0xb00] sm:$0xff] %v965_v19  ;;  %1109 = vxpose.xlu1.b32.cont [15/16] (narrow) %v180_v18, 64  ;;  %v217_v18 = vld [vmem:[#allocation2 + $0x610] sm:$0xff]  ;;  %v926_v19 = vpop.trf.xlu1 }
 0x14e   :  { %2984 = vst [vmem:[#allocation5 + $0x1200] sm:$0xff] %v926_v19 }
 0x150   :  { %1078 = vxpose.xlu0.b32.end [16/16] %v181_v20, 128  ;;  %v966_v22 = vpop.trf.xlu0  ;;  %v218_v20 = vld [vmem:[#allocation2 + $0x618] sm:$0xff] }
 0x151   :  { %2785 = vst [vmem:[#allocation5 + $0xbc8] sm:$0xff] %v966_v22  ;;  %1110 = vxpose.xlu1.b32.end [16/16] (narrow) %v182_v21, 64  ;;  %v219_v22 = vld [vmem:[#allocation2 + $0x620] sm:$0xff] }
 0x154   :  { %1127 = vxpose.xlu0.b32.start [1/16] %v183_v23, 128  ;;  %v1015_v25 = vpop.trf.xlu0  ;;  %v983_v23 = vpop.trf.xlu1 }
 0x155   :  { %2410 = vst [vmem:[#allocation5 + $0x18] sm:$0xff] %v1015_v25  ;;  %1159 = vxpose.xlu1.b32.start [1/16] (narrow) %v184_v24, 64  ;;  %2810 = vst [vmem:[#allocation5 + $0xc90] sm:$0xff] %v983_v23  ;;  %v220_v24 = vld [vmem:[#allocation2 + $0x628] sm:$0xff] }
 0x158   :  { %1128 = vxpose.xlu0.b32.cont [2/16] %v185_v26, 128  ;;  %v1016_v29 = vpop.trf.xlu0  ;;  %v221_v26 = vld [vmem:[#allocation2 + $0x630] sm:$0xff]  ;;  %v984_v27 = vpop.trf.xlu1 }
 0x159   :  { %2436 = vst [vmem:[#allocation5 + $0xe0] sm:$0xff] %v1016_v29  ;;  %1160 = vxpose.xlu1.b32.cont [2/16] (narrow) %v186_v28, 64  ;;  %2835 = vst [vmem:[#allocation5 + $0xd58] sm:$0xff] %v984_v27  ;;  %v222_v28 = vld [vmem:[#allocation2 + $0x638] sm:$0xff] }
 0x15c   :  { %1129 = vxpose.xlu0.b32.cont [3/16] %v187_v30, 128  ;;  %v1017_v33 = vpop.trf.xlu0  ;;  %v223_v30 = vld [vmem:[#allocation2 + $0x640] sm:$0xff]  ;;  %v985_v31 = vpop.trf.xlu1 }
 0x15d   :  { %2461 = vst [vmem:[#allocation5 + $0x1a8] sm:$0xff] %v1017_v33  ;;  %1161 = vxpose.xlu1.b32.cont [3/16] (narrow) %v188_v32, 64  ;;  %2860 = vst [vmem:[#allocation5 + $0xe20] sm:$0xff] %v985_v31  ;;  %v224_v32 = vld [vmem:[#allocation2 + $0x648] sm:$0xff] }
 0x160   :  { %1130 = vxpose.xlu0.b32.cont [4/16] %v189_v34, 128  ;;  %v1018_v37 = vpop.trf.xlu0  ;;  %v225_v34 = vld [vmem:[#allocation2 + $0x650] sm:$0xff]  ;;  %v986_v35 = vpop.trf.xlu1 }
 0x161   :  { %2486 = vst [vmem:[#allocation5 + $0x270] sm:$0xff] %v1018_v37  ;;  %1162 = vxpose.xlu1.b32.cont [4/16] (narrow) %v190_v36, 64  ;;  %2885 = vst [vmem:[#allocation5 + $0xee8] sm:$0xff] %v986_v35  ;;  %v226_v36 = vld [vmem:[#allocation2 + $0x658] sm:$0xff] }
 0x164   :  { %1131 = vxpose.xlu0.b32.cont [5/16] %v191_v38, 128  ;;  %v1019_v41 = vpop.trf.xlu0  ;;  %v227_v38 = vld [vmem:[#allocation2 + $0x660] sm:$0xff]  ;;  %v987_v39 = vpop.trf.xlu1 }
 0x165   :  { %2511 = vst [vmem:[#allocation5 + $0x338] sm:$0xff] %v1019_v41  ;;  %1163 = vxpose.xlu1.b32.cont [5/16] (narrow) %v192_v40, 64  ;;  %2910 = vst [vmem:[#allocation5 + $0xfb0] sm:$0xff] %v987_v39  ;;  %v228_v40 = vld [vmem:[#allocation2 + $0x668] sm:$0xff] }
 0x168   :  { %1132 = vxpose.xlu0.b32.cont [6/16] %v193_v42, 128  ;;  %v1020_v45 = vpop.trf.xlu0  ;;  %v229_v42 = vld [vmem:[#allocation2 + $0x670] sm:$0xff]  ;;  %v988_v43 = vpop.trf.xlu1 }
 0x169   :  { %2536 = vst [vmem:[#allocation5 + $0x400] sm:$0xff] %v1020_v45  ;;  %1164 = vxpose.xlu1.b32.cont [6/16] (narrow) %v194_v44, 64  ;;  %2935 = vst [vmem:[#allocation5 + $0x1078] sm:$0xff] %v988_v43  ;;  %v230_v44 = vld [vmem:[#allocation2 + $0x678] sm:$0xff] }
 0x16a   :  { %v266_v43 = vld [vmem:[#allocation2 + $0x798] sm:$0xff] }
 0x16c   :  { %1133 = vxpose.xlu0.b32.cont [7/16] %v195_v46, 128  ;;  %v1021_v49 = vpop.trf.xlu0  ;;  %v231_v46 = vld [vmem:[#allocation2 + $0x680] sm:$0xff]  ;;  %v989_v47 = vpop.trf.xlu1 }
 0x16d   :  { %2561 = vst [vmem:[#allocation5 + $0x4c8] sm:$0xff] %v1021_v49  ;;  %1165 = vxpose.xlu1.b32.cont [7/16] (narrow) %v196_v48, 64  ;;  %2960 = vst [vmem:[#allocation5 + $0x1140] sm:$0xff] %v989_v47  ;;  %v232_v48 = vld [vmem:[#allocation2 + $0x688] sm:$0xff] }
 0x170   :  { %1134 = vxpose.xlu0.b32.cont [8/16] %v197_v50, 128  ;;  %v1022_v53 = vpop.trf.xlu0  ;;  %v233_v50 = vld [vmem:[#allocation2 + $0x690] sm:$0xff] }
 0x171   :  { %2586 = vst [vmem:[#allocation5 + $0x590] sm:$0xff] %v1022_v53  ;;  %1166 = vxpose.xlu1.b32.cont [8/16] (narrow) %v198_v52, 64  ;;  %v235_v53 = vld [vmem:[#allocation2 + $0x6a0] sm:$0xff] }
 0x174   :  { %1135 = vxpose.xlu0.b32.cont [9/16] %v199_v54, 128  ;;  %v1023_v57 = vpop.trf.xlu0  ;;  %v236_v54 = vld [vmem:[#allocation2 + $0x6a8] sm:$0xff] }
 0x175   :  { %2611 = vst [vmem:[#allocation5 + $0x658] sm:$0xff] %v1023_v57  ;;  %1167 = vxpose.xlu1.b32.cont [9/16] (narrow) %v200_v56, 64  ;;  %v237_v56 = vld [vmem:[#allocation2 + $0x6b0] sm:$0xff]  ;;  %v238_v57 = vld [vmem:[#allocation2 + $0x6b8] sm:$0xff] }
 0x178   :  { %1136 = vxpose.xlu0.b32.cont [10/16] %v201_v58, 128  ;;  %v1024_v60 = vpop.trf.xlu0 }
 0x179   :  { %2636 = vst [vmem:[#allocation5 + $0x720] sm:$0xff] %v1024_v60  ;;  %1168 = vxpose.xlu1.b32.cont [10/16] (narrow) %v202_v59, 64  ;;  %v239_v59 = vld [vmem:[#allocation2 + $0x6c0] sm:$0xff]  ;;  %v240_v60 = vld [vmem:[#allocation2 + $0x6c8] sm:$0xff] }
 0x17c   :  { %1137 = vxpose.xlu0.b32.cont [11/16] %v203_v61, 128  ;;  %v1025_v63 = vpop.trf.xlu0 }
 0x17d   :  { %2661 = vst [vmem:[#allocation5 + $0x7e8] sm:$0xff] %v1025_v63  ;;  %1169 = vxpose.xlu1.b32.cont [11/16] (narrow) %v204_v62, 64  ;;  %v241_v62 = vld [vmem:[#allocation2 + $0x6d0] sm:$0xff]  ;;  %v242_v63 = vld [vmem:[#allocation2 + $0x6d8] sm:$0xff] }
 0x180   :  { %1138 = vxpose.xlu0.b32.cont [12/16] %v205_v0, 128  ;;  %v1026_v2 = vpop.trf.xlu0 }
 0x181   :  { %2686 = vst [vmem:[#allocation5 + $0x8b0] sm:$0xff] %v1026_v2  ;;  %1170 = vxpose.xlu1.b32.cont [12/16] (narrow) %v206_v1, 64  ;;  %v243_v1 = vld [vmem:[#allocation2 + $0x6e0] sm:$0xff]  ;;  %v244_v2 = vld [vmem:[#allocation2 + $0x6e8] sm:$0xff] }
 0x184   :  { %1139 = vxpose.xlu0.b32.cont [13/16] %v207_v3, 128  ;;  %v1027_v5 = vpop.trf.xlu0 }
 0x185   :  { %2711 = vst [vmem:[#allocation5 + $0x978] sm:$0xff] %v1027_v5  ;;  %1171 = vxpose.xlu1.b32.cont [13/16] (narrow) %v208_v4, 64  ;;  %v245_v4 = vld [vmem:[#allocation2 + $0x6f0] sm:$0xff]  ;;  %v246_v5 = vld [vmem:[#allocation2 + $0x6f8] sm:$0xff] }
 0x188   :  { %1140 = vxpose.xlu0.b32.cont [14/16] %v209_v6, 128  ;;  %v1028_v8 = vpop.trf.xlu0 }
 0x189   :  { %2736 = vst [vmem:[#allocation5 + $0xa40] sm:$0xff] %v1028_v8  ;;  %1172 = vxpose.xlu1.b32.cont [14/16] (narrow) %v210_v7, 64  ;;  %v247_v7 = vld [vmem:[#allocation2 + $0x700] sm:$0xff]  ;;  %v248_v8 = vld [vmem:[#allocation2 + $0x708] sm:$0xff] }
 0x18c   :  { %1141 = vxpose.xlu0.b32.cont [15/16] %v211_v9, 128  ;;  %v1029_v11 = vpop.trf.xlu0 }
 0x18d   :  { %2761 = vst [vmem:[#allocation5 + $0xb08] sm:$0xff] %v1029_v11  ;;  %1173 = vxpose.xlu1.b32.cont [15/16] (narrow) %v212_v10, 64  ;;  %v249_v10 = vld [vmem:[#allocation2 + $0x710] sm:$0xff]  ;;  %v990_v11 = vpop.trf.xlu1 }
 0x18e   :  { %2985 = vst [vmem:[#allocation5 + $0x1208] sm:$0xff] %v990_v11 }
 0x190   :  { %1142 = vxpose.xlu0.b32.end [16/16] %v213_v12, 128  ;;  %v1030_v14 = vpop.trf.xlu0  ;;  %v250_v12 = vld [vmem:[#allocation2 + $0x718] sm:$0xff] }
 0x191   :  { %2786 = vst [vmem:[#allocation5 + $0xbd0] sm:$0xff] %v1030_v14  ;;  %1174 = vxpose.xlu1.b32.end [16/16] (narrow) %v214_v13, 64  ;;  %v251_v14 = vld [vmem:[#allocation2 + $0x720] sm:$0xff] }
 0x194   :  { %1191 = vxpose.xlu0.b32.start [1/16] %v215_v15, 128  ;;  %v1079_v17 = vpop.trf.xlu0  ;;  %v1047_v15 = vpop.trf.xlu1 }
 0x195   :  { %2411 = vst [vmem:[#allocation5 + $0x20] sm:$0xff] %v1079_v17  ;;  %1223 = vxpose.xlu1.b32.start [1/16] (narrow) %v216_v16, 64  ;;  %2811 = vst [vmem:[#allocation5 + $0xc98] sm:$0xff] %v1047_v15  ;;  %v252_v16 = vld [vmem:[#allocation2 + $0x728] sm:$0xff] }
 0x198   :  { %1192 = vxpose.xlu0.b32.cont [2/16] %v217_v18, 128  ;;  %v1080_v21 = vpop.trf.xlu0  ;;  %v253_v18 = vld [vmem:[#allocation2 + $0x730] sm:$0xff]  ;;  %v1048_v19 = vpop.trf.xlu1 }
 0x199   :  { %2437 = vst [vmem:[#allocation5 + $0xe8] sm:$0xff] %v1080_v21  ;;  %1224 = vxpose.xlu1.b32.cont [2/16] (narrow) %v218_v20, 64  ;;  %2836 = vst [vmem:[#allocation5 + $0xd60] sm:$0xff] %v1048_v19  ;;  %v254_v20 = vld [vmem:[#allocation2 + $0x738] sm:$0xff] }
 0x19c   :  { %1193 = vxpose.xlu0.b32.cont [3/16] %v219_v22, 128  ;;  %v1081_v25 = vpop.trf.xlu0  ;;  %v255_v22 = vld [vmem:[#allocation2 + $0x740] sm:$0xff]  ;;  %v1049_v23 = vpop.trf.xlu1 }
 0x19d   :  { %2462 = vst [vmem:[#allocation5 + $0x1b0] sm:$0xff] %v1081_v25  ;;  %1225 = vxpose.xlu1.b32.cont [3/16] (narrow) %v220_v24, 64  ;;  %2861 = vst [vmem:[#allocation5 + $0xe28] sm:$0xff] %v1049_v23  ;;  %v256_v24 = vld [vmem:[#allocation2 + $0x748] sm:$0xff] }
 0x1a0   :  { %1194 = vxpose.xlu0.b32.cont [4/16] %v221_v26, 128  ;;  %v1082_v29 = vpop.trf.xlu0  ;;  %v257_v26 = vld [vmem:[#allocation2 + $0x750] sm:$0xff]  ;;  %v1050_v27 = vpop.trf.xlu1 }
 0x1a1   :  { %2487 = vst [vmem:[#allocation5 + $0x278] sm:$0xff] %v1082_v29  ;;  %1226 = vxpose.xlu1.b32.cont [4/16] (narrow) %v222_v28, 64  ;;  %2886 = vst [vmem:[#allocation5 + $0xef0] sm:$0xff] %v1050_v27  ;;  %v258_v28 = vld [vmem:[#allocation2 + $0x758] sm:$0xff] }
 0x1a4   :  { %1195 = vxpose.xlu0.b32.cont [5/16] %v223_v30, 128  ;;  %v1083_v33 = vpop.trf.xlu0  ;;  %v259_v30 = vld [vmem:[#allocation2 + $0x760] sm:$0xff]  ;;  %v1051_v31 = vpop.trf.xlu1 }
 0x1a5   :  { %2512 = vst [vmem:[#allocation5 + $0x340] sm:$0xff] %v1083_v33  ;;  %1227 = vxpose.xlu1.b32.cont [5/16] (narrow) %v224_v32, 64  ;;  %2911 = vst [vmem:[#allocation5 + $0xfb8] sm:$0xff] %v1051_v31  ;;  %v260_v32 = vld [vmem:[#allocation2 + $0x768] sm:$0xff] }
 0x1a8   :  { %1196 = vxpose.xlu0.b32.cont [6/16] %v225_v34, 128  ;;  %v1084_v37 = vpop.trf.xlu0  ;;  %v261_v34 = vld [vmem:[#allocation2 + $0x770] sm:$0xff]  ;;  %v1052_v35 = vpop.trf.xlu1 }
 0x1a9   :  { %2537 = vst [vmem:[#allocation5 + $0x408] sm:$0xff] %v1084_v37  ;;  %1228 = vxpose.xlu1.b32.cont [6/16] (narrow) %v226_v36, 64  ;;  %2936 = vst [vmem:[#allocation5 + $0x1080] sm:$0xff] %v1052_v35  ;;  %v262_v36 = vld [vmem:[#allocation2 + $0x778] sm:$0xff] }
 0x1aa   :  { %v298_v35 = vld [vmem:[#allocation2 + $0x898] sm:$0xff] }
 0x1ac   :  { %1197 = vxpose.xlu0.b32.cont [7/16] %v227_v38, 128  ;;  %v1085_v41 = vpop.trf.xlu0  ;;  %v263_v38 = vld [vmem:[#allocation2 + $0x780] sm:$0xff]  ;;  %v1053_v39 = vpop.trf.xlu1 }
 0x1ad   :  { %2562 = vst [vmem:[#allocation5 + $0x4d0] sm:$0xff] %v1085_v41  ;;  %1229 = vxpose.xlu1.b32.cont [7/16] (narrow) %v228_v40, 64  ;;  %2961 = vst [vmem:[#allocation5 + $0x1148] sm:$0xff] %v1053_v39  ;;  %v264_v40 = vld [vmem:[#allocation2 + $0x788] sm:$0xff] }
 0x1b0   :  { %1198 = vxpose.xlu0.b32.cont [8/16] %v229_v42, 128  ;;  %v1086_v45 = vpop.trf.xlu0  ;;  %v265_v42 = vld [vmem:[#allocation2 + $0x790] sm:$0xff] }
 0x1b1   :  { %2587 = vst [vmem:[#allocation5 + $0x598] sm:$0xff] %v1086_v45  ;;  %1230 = vxpose.xlu1.b32.cont [8/16] (narrow) %v230_v44, 64  ;;  %v267_v45 = vld [vmem:[#allocation2 + $0x7a0] sm:$0xff] }
 0x1b4   :  { %1199 = vxpose.xlu0.b32.cont [9/16] %v231_v46, 128  ;;  %v1087_v49 = vpop.trf.xlu0  ;;  %v268_v46 = vld [vmem:[#allocation2 + $0x7a8] sm:$0xff] }
 0x1b5   :  { %2612 = vst [vmem:[#allocation5 + $0x660] sm:$0xff] %v1087_v49  ;;  %1231 = vxpose.xlu1.b32.cont [9/16] (narrow) %v232_v48, 64  ;;  %v269_v48 = vld [vmem:[#allocation2 + $0x7b0] sm:$0xff]  ;;  %v270_v49 = vld [vmem:[#allocation2 + $0x7b8] sm:$0xff] }
 0x1b8   :  { %1200 = vxpose.xlu0.b32.cont [10/16] %v233_v50, 128  ;;  %v1088_v52 = vpop.trf.xlu0 }
 0x1b9   :  { %2637 = vst [vmem:[#allocation5 + $0x728] sm:$0xff] %v1088_v52  ;;  %1232 = vxpose.xlu1.b32.cont [10/16] (narrow) %v234_v51, 64  ;;  %v271_v51 = vld [vmem:[#allocation2 + $0x7c0] sm:$0xff]  ;;  %v272_v52 = vld [vmem:[#allocation2 + $0x7c8] sm:$0xff] }
 0x1bc   :  { %1201 = vxpose.xlu0.b32.cont [11/16] %v235_v53, 128  ;;  %v1089_v55 = vpop.trf.xlu0 }
 0x1bd   :  { %2662 = vst [vmem:[#allocation5 + $0x7f0] sm:$0xff] %v1089_v55  ;;  %1233 = vxpose.xlu1.b32.cont [11/16] (narrow) %v236_v54, 64  ;;  %v273_v54 = vld [vmem:[#allocation2 + $0x7d0] sm:$0xff]  ;;  %v274_v55 = vld [vmem:[#allocation2 + $0x7d8] sm:$0xff] }
 0x1c0   :  { %1202 = vxpose.xlu0.b32.cont [12/16] %v237_v56, 128  ;;  %v1090_v58 = vpop.trf.xlu0 }
 0x1c1   :  { %2687 = vst [vmem:[#allocation5 + $0x8b8] sm:$0xff] %v1090_v58  ;;  %1234 = vxpose.xlu1.b32.cont [12/16] (narrow) %v238_v57, 64  ;;  %v275_v57 = vld [vmem:[#allocation2 + $0x7e0] sm:$0xff]  ;;  %v276_v58 = vld [vmem:[#allocation2 + $0x7e8] sm:$0xff] }
 0x1c4   :  { %1203 = vxpose.xlu0.b32.cont [13/16] %v239_v59, 128  ;;  %v1091_v61 = vpop.trf.xlu0 }
 0x1c5   :  { %2712 = vst [vmem:[#allocation5 + $0x980] sm:$0xff] %v1091_v61  ;;  %1235 = vxpose.xlu1.b32.cont [13/16] (narrow) %v240_v60, 64  ;;  %v277_v60 = vld [vmem:[#allocation2 + $0x7f0] sm:$0xff]  ;;  %v278_v61 = vld [vmem:[#allocation2 + $0x7f8] sm:$0xff] }
 0x1c8   :  { %1204 = vxpose.xlu0.b32.cont [14/16] %v241_v62, 128  ;;  %v1092_v0 = vpop.trf.xlu0 }
 0x1c9   :  { %2737 = vst [vmem:[#allocation5 + $0xa48] sm:$0xff] %v1092_v0  ;;  %1236 = vxpose.xlu1.b32.cont [14/16] (narrow) %v242_v63, 64  ;;  %v279_v63 = vld [vmem:[#allocation2 + $0x800] sm:$0xff]  ;;  %v280_v0 = vld [vmem:[#allocation2 + $0x808] sm:$0xff] }
 0x1cc   :  { %1205 = vxpose.xlu0.b32.cont [15/16] %v243_v1, 128  ;;  %v1093_v3 = vpop.trf.xlu0 }
 0x1cd   :  { %2762 = vst [vmem:[#allocation5 + $0xb10] sm:$0xff] %v1093_v3  ;;  %1237 = vxpose.xlu1.b32.cont [15/16] (narrow) %v244_v2, 64  ;;  %v281_v2 = vld [vmem:[#allocation2 + $0x810] sm:$0xff]  ;;  %v1054_v3 = vpop.trf.xlu1 }
 0x1ce   :  { %2986 = vst [vmem:[#allocation5 + $0x1210] sm:$0xff] %v1054_v3 }
 0x1d0   :  { %1206 = vxpose.xlu0.b32.end [16/16] %v245_v4, 128  ;;  %v1094_v6 = vpop.trf.xlu0  ;;  %v282_v4 = vld [vmem:[#allocation2 + $0x818] sm:$0xff] }
 0x1d1   :  { %2787 = vst [vmem:[#allocation5 + $0xbd8] sm:$0xff] %v1094_v6  ;;  %1238 = vxpose.xlu1.b32.end [16/16] (narrow) %v246_v5, 64  ;;  %v283_v6 = vld [vmem:[#allocation2 + $0x820] sm:$0xff] }
 0x1d4   :  { %1255 = vxpose.xlu0.b32.start [1/16] %v247_v7, 128  ;;  %v1143_v9 = vpop.trf.xlu0  ;;  %v1111_v7 = vpop.trf.xlu1 }
 0x1d5   :  { %2412 = vst [vmem:[#allocation5 + $0x28] sm:$0xff] %v1143_v9  ;;  %1287 = vxpose.xlu1.b32.start [1/16] (narrow) %v248_v8, 64  ;;  %2812 = vst [vmem:[#allocation5 + $0xca0] sm:$0xff] %v1111_v7  ;;  %v284_v8 = vld [vmem:[#allocation2 + $0x828] sm:$0xff] }
 0x1d8   :  { %1256 = vxpose.xlu0.b32.cont [2/16] %v249_v10, 128  ;;  %v1144_v13 = vpop.trf.xlu0  ;;  %v285_v10 = vld [vmem:[#allocation2 + $0x830] sm:$0xff]  ;;  %v1112_v11 = vpop.trf.xlu1 }
 0x1d9   :  { %2438 = vst [vmem:[#allocation5 + $0xf0] sm:$0xff] %v1144_v13  ;;  %1288 = vxpose.xlu1.b32.cont [2/16] (narrow) %v250_v12, 64  ;;  %2837 = vst [vmem:[#allocation5 + $0xd68] sm:$0xff] %v1112_v11  ;;  %v286_v12 = vld [vmem:[#allocation2 + $0x838] sm:$0xff] }
 0x1dc   :  { %1257 = vxpose.xlu0.b32.cont [3/16] %v251_v14, 128  ;;  %v1145_v17 = vpop.trf.xlu0  ;;  %v287_v14 = vld [vmem:[#allocation2 + $0x840] sm:$0xff]  ;;  %v1113_v15 = vpop.trf.xlu1 }
 0x1dd   :  { %2463 = vst [vmem:[#allocation5 + $0x1b8] sm:$0xff] %v1145_v17  ;;  %1289 = vxpose.xlu1.b32.cont [3/16] (narrow) %v252_v16, 64  ;;  %2862 = vst [vmem:[#allocation5 + $0xe30] sm:$0xff] %v1113_v15  ;;  %v288_v16 = vld [vmem:[#allocation2 + $0x848] sm:$0xff] }
 0x1e0   :  { %1258 = vxpose.xlu0.b32.cont [4/16] %v253_v18, 128  ;;  %v1146_v21 = vpop.trf.xlu0  ;;  %v289_v18 = vld [vmem:[#allocation2 + $0x850] sm:$0xff]  ;;  %v1114_v19 = vpop.trf.xlu1 }
 0x1e1   :  { %2488 = vst [vmem:[#allocation5 + $0x280] sm:$0xff] %v1146_v21  ;;  %1290 = vxpose.xlu1.b32.cont [4/16] (narrow) %v254_v20, 64  ;;  %2887 = vst [vmem:[#allocation5 + $0xef8] sm:$0xff] %v1114_v19  ;;  %v290_v20 = vld [vmem:[#allocation2 + $0x858] sm:$0xff] }
 0x1e4   :  { %1259 = vxpose.xlu0.b32.cont [5/16] %v255_v22, 128  ;;  %v1147_v25 = vpop.trf.xlu0  ;;  %v291_v22 = vld [vmem:[#allocation2 + $0x860] sm:$0xff]  ;;  %v1115_v23 = vpop.trf.xlu1 }
 0x1e5   :  { %2513 = vst [vmem:[#allocation5 + $0x348] sm:$0xff] %v1147_v25  ;;  %1291 = vxpose.xlu1.b32.cont [5/16] (narrow) %v256_v24, 64  ;;  %2912 = vst [vmem:[#allocation5 + $0xfc0] sm:$0xff] %v1115_v23  ;;  %v292_v24 = vld [vmem:[#allocation2 + $0x868] sm:$0xff] }
 0x1e8   :  { %1260 = vxpose.xlu0.b32.cont [6/16] %v257_v26, 128  ;;  %v1148_v29 = vpop.trf.xlu0  ;;  %v293_v26 = vld [vmem:[#allocation2 + $0x870] sm:$0xff]  ;;  %v1116_v27 = vpop.trf.xlu1 }
 0x1e9   :  { %2538 = vst [vmem:[#allocation5 + $0x410] sm:$0xff] %v1148_v29  ;;  %1292 = vxpose.xlu1.b32.cont [6/16] (narrow) %v258_v28, 64  ;;  %2937 = vst [vmem:[#allocation5 + $0x1088] sm:$0xff] %v1116_v27  ;;  %v294_v28 = vld [vmem:[#allocation2 + $0x878] sm:$0xff] }
 0x1ea   :  { %v330_v27 = vld [vmem:[#allocation2 + $0x998] sm:$0xff] }
 0x1ec   :  { %1261 = vxpose.xlu0.b32.cont [7/16] %v259_v30, 128  ;;  %v1149_v33 = vpop.trf.xlu0  ;;  %v295_v30 = vld [vmem:[#allocation2 + $0x880] sm:$0xff]  ;;  %v1117_v31 = vpop.trf.xlu1 }
 0x1ed   :  { %2563 = vst [vmem:[#allocation5 + $0x4d8] sm:$0xff] %v1149_v33  ;;  %1293 = vxpose.xlu1.b32.cont [7/16] (narrow) %v260_v32, 64  ;;  %2962 = vst [vmem:[#allocation5 + $0x1150] sm:$0xff] %v1117_v31  ;;  %v296_v32 = vld [vmem:[#allocation2 + $0x888] sm:$0xff] }
 0x1f0   :  { %1262 = vxpose.xlu0.b32.cont [8/16] %v261_v34, 128  ;;  %v1150_v37 = vpop.trf.xlu0  ;;  %v297_v34 = vld [vmem:[#allocation2 + $0x890] sm:$0xff] }
 0x1f1   :  { %2588 = vst [vmem:[#allocation5 + $0x5a0] sm:$0xff] %v1150_v37  ;;  %1294 = vxpose.xlu1.b32.cont [8/16] (narrow) %v262_v36, 64  ;;  %v299_v37 = vld [vmem:[#allocation2 + $0x8a0] sm:$0xff] }
 0x1f4   :  { %1263 = vxpose.xlu0.b32.cont [9/16] %v263_v38, 128  ;;  %v1151_v41 = vpop.trf.xlu0  ;;  %v300_v38 = vld [vmem:[#allocation2 + $0x8a8] sm:$0xff] }
 0x1f5   :  { %2613 = vst [vmem:[#allocation5 + $0x668] sm:$0xff] %v1151_v41  ;;  %1295 = vxpose.xlu1.b32.cont [9/16] (narrow) %v264_v40, 64  ;;  %v301_v40 = vld [vmem:[#allocation2 + $0x8b0] sm:$0xff]  ;;  %v302_v41 = vld [vmem:[#allocation2 + $0x8b8] sm:$0xff] }
 0x1f8   :  { %1264 = vxpose.xlu0.b32.cont [10/16] %v265_v42, 128  ;;  %v1152_v44 = vpop.trf.xlu0 }
 0x1f9   :  { %2638 = vst [vmem:[#allocation5 + $0x730] sm:$0xff] %v1152_v44  ;;  %1296 = vxpose.xlu1.b32.cont [10/16] (narrow) %v266_v43, 64  ;;  %v303_v43 = vld [vmem:[#allocation2 + $0x8c0] sm:$0xff]  ;;  %v304_v44 = vld [vmem:[#allocation2 + $0x8c8] sm:$0xff] }
 0x1fc   :  { %1265 = vxpose.xlu0.b32.cont [11/16] %v267_v45, 128  ;;  %v1153_v47 = vpop.trf.xlu0 }
 0x1fd   :  { %2663 = vst [vmem:[#allocation5 + $0x7f8] sm:$0xff] %v1153_v47  ;;  %1297 = vxpose.xlu1.b32.cont [11/16] (narrow) %v268_v46, 64  ;;  %v305_v46 = vld [vmem:[#allocation2 + $0x8d0] sm:$0xff]  ;;  %v306_v47 = vld [vmem:[#allocation2 + $0x8d8] sm:$0xff] }
 0x200   :  { %1266 = vxpose.xlu0.b32.cont [12/16] %v269_v48, 128  ;;  %v1154_v50 = vpop.trf.xlu0 }
 0x201   :  { %2688 = vst [vmem:[#allocation5 + $0x8c0] sm:$0xff] %v1154_v50  ;;  %1298 = vxpose.xlu1.b32.cont [12/16] (narrow) %v270_v49, 64  ;;  %v307_v49 = vld [vmem:[#allocation2 + $0x8e0] sm:$0xff]  ;;  %v308_v50 = vld [vmem:[#allocation2 + $0x8e8] sm:$0xff] }
 0x204   :  { %1267 = vxpose.xlu0.b32.cont [13/16] %v271_v51, 128  ;;  %v1155_v53 = vpop.trf.xlu0 }
 0x205   :  { %2713 = vst [vmem:[#allocation5 + $0x988] sm:$0xff] %v1155_v53  ;;  %1299 = vxpose.xlu1.b32.cont [13/16] (narrow) %v272_v52, 64  ;;  %v309_v52 = vld [vmem:[#allocation2 + $0x8f0] sm:$0xff]  ;;  %v310_v53 = vld [vmem:[#allocation2 + $0x8f8] sm:$0xff] }
 0x208   :  { %1268 = vxpose.xlu0.b32.cont [14/16] %v273_v54, 128  ;;  %v1156_v56 = vpop.trf.xlu0 }
 0x209   :  { %2738 = vst [vmem:[#allocation5 + $0xa50] sm:$0xff] %v1156_v56  ;;  %1300 = vxpose.xlu1.b32.cont [14/16] (narrow) %v274_v55, 64  ;;  %v311_v55 = vld [vmem:[#allocation2 + $0x900] sm:$0xff]  ;;  %v312_v56 = vld [vmem:[#allocation2 + $0x908] sm:$0xff] }
 0x20c   :  { %1269 = vxpose.xlu0.b32.cont [15/16] %v275_v57, 128  ;;  %v1157_v59 = vpop.trf.xlu0 }
 0x20d   :  { %2763 = vst [vmem:[#allocation5 + $0xb18] sm:$0xff] %v1157_v59  ;;  %1301 = vxpose.xlu1.b32.cont [15/16] (narrow) %v276_v58, 64  ;;  %v313_v58 = vld [vmem:[#allocation2 + $0x910] sm:$0xff]  ;;  %v1118_v59 = vpop.trf.xlu1 }
 0x20e   :  { %2987 = vst [vmem:[#allocation5 + $0x1218] sm:$0xff] %v1118_v59 }
 0x210   :  { %1270 = vxpose.xlu0.b32.end [16/16] %v277_v60, 128  ;;  %v1158_v62 = vpop.trf.xlu0  ;;  %v314_v60 = vld [vmem:[#allocation2 + $0x918] sm:$0xff] }
 0x211   :  { %2788 = vst [vmem:[#allocation5 + $0xbe0] sm:$0xff] %v1158_v62  ;;  %1302 = vxpose.xlu1.b32.end [16/16] (narrow) %v278_v61, 64  ;;  %v315_v62 = vld [vmem:[#allocation2 + $0x920] sm:$0xff] }
 0x214   :  { %1319 = vxpose.xlu0.b32.start [1/16] %v279_v63, 128  ;;  %v1207_v1 = vpop.trf.xlu0  ;;  %v1175_v63 = vpop.trf.xlu1 }
 0x215   :  { %2413 = vst [vmem:[#allocation5 + $0x30] sm:$0xff] %v1207_v1  ;;  %1351 = vxpose.xlu1.b32.start [1/16] (narrow) %v280_v0, 64  ;;  %2813 = vst [vmem:[#allocation5 + $0xca8] sm:$0xff] %v1175_v63  ;;  %v316_v0 = vld [vmem:[#allocation2 + $0x928] sm:$0xff] }
 0x218   :  { %1320 = vxpose.xlu0.b32.cont [2/16] %v281_v2, 128  ;;  %v1208_v5 = vpop.trf.xlu0  ;;  %v317_v2 = vld [vmem:[#allocation2 + $0x930] sm:$0xff]  ;;  %v1176_v3 = vpop.trf.xlu1 }
 0x219   :  { %2439 = vst [vmem:[#allocation5 + $0xf8] sm:$0xff] %v1208_v5  ;;  %1352 = vxpose.xlu1.b32.cont [2/16] (narrow) %v282_v4, 64  ;;  %2838 = vst [vmem:[#allocation5 + $0xd70] sm:$0xff] %v1176_v3  ;;  %v318_v4 = vld [vmem:[#allocation2 + $0x938] sm:$0xff] }
 0x21c   :  { %1321 = vxpose.xlu0.b32.cont [3/16] %v283_v6, 128  ;;  %v1209_v9 = vpop.trf.xlu0  ;;  %v319_v6 = vld [vmem:[#allocation2 + $0x940] sm:$0xff]  ;;  %v1177_v7 = vpop.trf.xlu1 }
 0x21d   :  { %2464 = vst [vmem:[#allocation5 + $0x1c0] sm:$0xff] %v1209_v9  ;;  %1353 = vxpose.xlu1.b32.cont [3/16] (narrow) %v284_v8, 64  ;;  %2863 = vst [vmem:[#allocation5 + $0xe38] sm:$0xff] %v1177_v7  ;;  %v320_v8 = vld [vmem:[#allocation2 + $0x948] sm:$0xff] }
 0x220   :  { %1322 = vxpose.xlu0.b32.cont [4/16] %v285_v10, 128  ;;  %v1210_v13 = vpop.trf.xlu0  ;;  %v321_v10 = vld [vmem:[#allocation2 + $0x950] sm:$0xff]  ;;  %v1178_v11 = vpop.trf.xlu1 }
 0x221   :  { %2489 = vst [vmem:[#allocation5 + $0x288] sm:$0xff] %v1210_v13  ;;  %1354 = vxpose.xlu1.b32.cont [4/16] (narrow) %v286_v12, 64  ;;  %2888 = vst [vmem:[#allocation5 + $0xf00] sm:$0xff] %v1178_v11  ;;  %v322_v12 = vld [vmem:[#allocation2 + $0x958] sm:$0xff] }
 0x224   :  { %1323 = vxpose.xlu0.b32.cont [5/16] %v287_v14, 128  ;;  %v1211_v17 = vpop.trf.xlu0  ;;  %v323_v14 = vld [vmem:[#allocation2 + $0x960] sm:$0xff]  ;;  %v1179_v15 = vpop.trf.xlu1 }
 0x225   :  { %2514 = vst [vmem:[#allocation5 + $0x350] sm:$0xff] %v1211_v17  ;;  %1355 = vxpose.xlu1.b32.cont [5/16] (narrow) %v288_v16, 64  ;;  %2913 = vst [vmem:[#allocation5 + $0xfc8] sm:$0xff] %v1179_v15  ;;  %v324_v16 = vld [vmem:[#allocation2 + $0x968] sm:$0xff] }
 0x228   :  { %1324 = vxpose.xlu0.b32.cont [6/16] %v289_v18, 128  ;;  %v1212_v21 = vpop.trf.xlu0  ;;  %v325_v18 = vld [vmem:[#allocation2 + $0x970] sm:$0xff]  ;;  %v1180_v19 = vpop.trf.xlu1 }
 0x229   :  { %2539 = vst [vmem:[#allocation5 + $0x418] sm:$0xff] %v1212_v21  ;;  %1356 = vxpose.xlu1.b32.cont [6/16] (narrow) %v290_v20, 64  ;;  %2938 = vst [vmem:[#allocation5 + $0x1090] sm:$0xff] %v1180_v19  ;;  %v326_v20 = vld [vmem:[#allocation2 + $0x978] sm:$0xff] }
 0x22a   :  { %v362_v19 = vld [vmem:[#allocation2 + $0xa98] sm:$0xff] }
 0x22c   :  { %1325 = vxpose.xlu0.b32.cont [7/16] %v291_v22, 128  ;;  %v1213_v25 = vpop.trf.xlu0  ;;  %v327_v22 = vld [vmem:[#allocation2 + $0x980] sm:$0xff]  ;;  %v1181_v23 = vpop.trf.xlu1 }
 0x22d   :  { %2564 = vst [vmem:[#allocation5 + $0x4e0] sm:$0xff] %v1213_v25  ;;  %1357 = vxpose.xlu1.b32.cont [7/16] (narrow) %v292_v24, 64  ;;  %2963 = vst [vmem:[#allocation5 + $0x1158] sm:$0xff] %v1181_v23  ;;  %v328_v24 = vld [vmem:[#allocation2 + $0x988] sm:$0xff] }
 0x230   :  { %1326 = vxpose.xlu0.b32.cont [8/16] %v293_v26, 128  ;;  %v1214_v29 = vpop.trf.xlu0  ;;  %v329_v26 = vld [vmem:[#allocation2 + $0x990] sm:$0xff] }
 0x231   :  { %2589 = vst [vmem:[#allocation5 + $0x5a8] sm:$0xff] %v1214_v29  ;;  %1358 = vxpose.xlu1.b32.cont [8/16] (narrow) %v294_v28, 64  ;;  %v331_v29 = vld [vmem:[#allocation2 + $0x9a0] sm:$0xff] }
 0x234   :  { %1327 = vxpose.xlu0.b32.cont [9/16] %v295_v30, 128  ;;  %v1215_v33 = vpop.trf.xlu0  ;;  %v332_v30 = vld [vmem:[#allocation2 + $0x9a8] sm:$0xff] }
 0x235   :  { %2614 = vst [vmem:[#allocation5 + $0x670] sm:$0xff] %v1215_v33  ;;  %1359 = vxpose.xlu1.b32.cont [9/16] (narrow) %v296_v32, 64  ;;  %v333_v32 = vld [vmem:[#allocation2 + $0x9b0] sm:$0xff]  ;;  %v334_v33 = vld [vmem:[#allocation2 + $0x9b8] sm:$0xff] }
 0x238   :  { %1328 = vxpose.xlu0.b32.cont [10/16] %v297_v34, 128  ;;  %v1216_v36 = vpop.trf.xlu0 }
 0x239   :  { %2639 = vst [vmem:[#allocation5 + $0x738] sm:$0xff] %v1216_v36  ;;  %1360 = vxpose.xlu1.b32.cont [10/16] (narrow) %v298_v35, 64  ;;  %v335_v35 = vld [vmem:[#allocation2 + $0x9c0] sm:$0xff]  ;;  %v336_v36 = vld [vmem:[#allocation2 + $0x9c8] sm:$0xff] }
 0x23c   :  { %1329 = vxpose.xlu0.b32.cont [11/16] %v299_v37, 128  ;;  %v1217_v39 = vpop.trf.xlu0 }
 0x23d   :  { %2664 = vst [vmem:[#allocation5 + $0x800] sm:$0xff] %v1217_v39  ;;  %1361 = vxpose.xlu1.b32.cont [11/16] (narrow) %v300_v38, 64  ;;  %v337_v38 = vld [vmem:[#allocation2 + $0x9d0] sm:$0xff]  ;;  %v338_v39 = vld [vmem:[#allocation2 + $0x9d8] sm:$0xff] }
 0x240   :  { %1330 = vxpose.xlu0.b32.cont [12/16] %v301_v40, 128  ;;  %v1218_v42 = vpop.trf.xlu0 }
 0x241   :  { %2689 = vst [vmem:[#allocation5 + $0x8c8] sm:$0xff] %v1218_v42  ;;  %1362 = vxpose.xlu1.b32.cont [12/16] (narrow) %v302_v41, 64  ;;  %v339_v41 = vld [vmem:[#allocation2 + $0x9e0] sm:$0xff]  ;;  %v340_v42 = vld [vmem:[#allocation2 + $0x9e8] sm:$0xff] }
 0x244   :  { %1331 = vxpose.xlu0.b32.cont [13/16] %v303_v43, 128  ;;  %v1219_v45 = vpop.trf.xlu0 }
 0x245   :  { %2714 = vst [vmem:[#allocation5 + $0x990] sm:$0xff] %v1219_v45  ;;  %1363 = vxpose.xlu1.b32.cont [13/16] (narrow) %v304_v44, 64  ;;  %v341_v44 = vld [vmem:[#allocation2 + $0x9f0] sm:$0xff]  ;;  %v342_v45 = vld [vmem:[#allocation2 + $0x9f8] sm:$0xff] }
 0x248   :  { %1332 = vxpose.xlu0.b32.cont [14/16] %v305_v46, 128  ;;  %v1220_v48 = vpop.trf.xlu0 }
 0x249   :  { %2739 = vst [vmem:[#allocation5 + $0xa58] sm:$0xff] %v1220_v48  ;;  %1364 = vxpose.xlu1.b32.cont [14/16] (narrow) %v306_v47, 64  ;;  %v343_v47 = vld [vmem:[#allocation2 + $0xa00] sm:$0xff]  ;;  %v344_v48 = vld [vmem:[#allocation2 + $0xa08] sm:$0xff] }
 0x24c   :  { %1333 = vxpose.xlu0.b32.cont [15/16] %v307_v49, 128  ;;  %v1221_v51 = vpop.trf.xlu0 }
 0x24d   :  { %2764 = vst [vmem:[#allocation5 + $0xb20] sm:$0xff] %v1221_v51  ;;  %1365 = vxpose.xlu1.b32.cont [15/16] (narrow) %v308_v50, 64  ;;  %v345_v50 = vld [vmem:[#allocation2 + $0xa10] sm:$0xff]  ;;  %v1182_v51 = vpop.trf.xlu1 }
 0x24e   :  { %2988 = vst [vmem:[#allocation5 + $0x1220] sm:$0xff] %v1182_v51 }
 0x250   :  { %1334 = vxpose.xlu0.b32.end [16/16] %v309_v52, 128  ;;  %v1222_v54 = vpop.trf.xlu0  ;;  %v346_v52 = vld [vmem:[#allocation2 + $0xa18] sm:$0xff] }
 0x251   :  { %2789 = vst [vmem:[#allocation5 + $0xbe8] sm:$0xff] %v1222_v54  ;;  %1366 = vxpose.xlu1.b32.end [16/16] (narrow) %v310_v53, 64  ;;  %v347_v54 = vld [vmem:[#allocation2 + $0xa20] sm:$0xff] }
 0x254   :  { %1383 = vxpose.xlu0.b32.start [1/16] %v311_v55, 128  ;;  %v1271_v57 = vpop.trf.xlu0  ;;  %v1239_v55 = vpop.trf.xlu1 }
 0x255   :  { %2414 = vst [vmem:[#allocation5 + $0x38] sm:$0xff] %v1271_v57  ;;  %1415 = vxpose.xlu1.b32.start [1/16] (narrow) %v312_v56, 64  ;;  %2814 = vst [vmem:[#allocation5 + $0xcb0] sm:$0xff] %v1239_v55  ;;  %v348_v56 = vld [vmem:[#allocation2 + $0xa28] sm:$0xff] }
 0x258   :  { %1384 = vxpose.xlu0.b32.cont [2/16] %v313_v58, 128  ;;  %v1272_v61 = vpop.trf.xlu0  ;;  %v349_v58 = vld [vmem:[#allocation2 + $0xa30] sm:$0xff]  ;;  %v1240_v59 = vpop.trf.xlu1 }
 0x259   :  { %2440 = vst [vmem:[#allocation5 + $0x100] sm:$0xff] %v1272_v61  ;;  %1416 = vxpose.xlu1.b32.cont [2/16] (narrow) %v314_v60, 64  ;;  %2839 = vst [vmem:[#allocation5 + $0xd78] sm:$0xff] %v1240_v59  ;;  %v350_v60 = vld [vmem:[#allocation2 + $0xa38] sm:$0xff] }
 0x25c   :  { %1385 = vxpose.xlu0.b32.cont [3/16] %v315_v62, 128  ;;  %v1273_v1 = vpop.trf.xlu0  ;;  %v351_v62 = vld [vmem:[#allocation2 + $0xa40] sm:$0xff]  ;;  %v1241_v63 = vpop.trf.xlu1 }
 0x25d   :  { %2465 = vst [vmem:[#allocation5 + $0x1c8] sm:$0xff] %v1273_v1  ;;  %1417 = vxpose.xlu1.b32.cont [3/16] (narrow) %v316_v0, 64  ;;  %2864 = vst [vmem:[#allocation5 + $0xe40] sm:$0xff] %v1241_v63  ;;  %v352_v0 = vld [vmem:[#allocation2 + $0xa48] sm:$0xff] }
 0x260   :  { %1386 = vxpose.xlu0.b32.cont [4/16] %v317_v2, 128  ;;  %v1274_v5 = vpop.trf.xlu0  ;;  %v353_v2 = vld [vmem:[#allocation2 + $0xa50] sm:$0xff]  ;;  %v1242_v3 = vpop.trf.xlu1 }
 0x261   :  { %2490 = vst [vmem:[#allocation5 + $0x290] sm:$0xff] %v1274_v5  ;;  %1418 = vxpose.xlu1.b32.cont [4/16] (narrow) %v318_v4, 64  ;;  %2889 = vst [vmem:[#allocation5 + $0xf08] sm:$0xff] %v1242_v3  ;;  %v354_v4 = vld [vmem:[#allocation2 + $0xa58] sm:$0xff] }
 0x264   :  { %1387 = vxpose.xlu0.b32.cont [5/16] %v319_v6, 128  ;;  %v1275_v9 = vpop.trf.xlu0  ;;  %v355_v6 = vld [vmem:[#allocation2 + $0xa60] sm:$0xff]  ;;  %v1243_v7 = vpop.trf.xlu1 }
 0x265   :  { %2515 = vst [vmem:[#allocation5 + $0x358] sm:$0xff] %v1275_v9  ;;  %1419 = vxpose.xlu1.b32.cont [5/16] (narrow) %v320_v8, 64  ;;  %2914 = vst [vmem:[#allocation5 + $0xfd0] sm:$0xff] %v1243_v7  ;;  %v356_v8 = vld [vmem:[#allocation2 + $0xa68] sm:$0xff] }
 0x268   :  { %1388 = vxpose.xlu0.b32.cont [6/16] %v321_v10, 128  ;;  %v1276_v13 = vpop.trf.xlu0  ;;  %v357_v10 = vld [vmem:[#allocation2 + $0xa70] sm:$0xff]  ;;  %v1244_v11 = vpop.trf.xlu1 }
 0x269   :  { %2540 = vst [vmem:[#allocation5 + $0x420] sm:$0xff] %v1276_v13  ;;  %1420 = vxpose.xlu1.b32.cont [6/16] (narrow) %v322_v12, 64  ;;  %2939 = vst [vmem:[#allocation5 + $0x1098] sm:$0xff] %v1244_v11  ;;  %v358_v12 = vld [vmem:[#allocation2 + $0xa78] sm:$0xff] }
 0x26a   :  { %v394_v11 = vld [vmem:[#allocation2 + $0xb98] sm:$0xff] }
 0x26c   :  { %1389 = vxpose.xlu0.b32.cont [7/16] %v323_v14, 128  ;;  %v1277_v17 = vpop.trf.xlu0  ;;  %v359_v14 = vld [vmem:[#allocation2 + $0xa80] sm:$0xff]  ;;  %v1245_v15 = vpop.trf.xlu1 }
 0x26d   :  { %2565 = vst [vmem:[#allocation5 + $0x4e8] sm:$0xff] %v1277_v17  ;;  %1421 = vxpose.xlu1.b32.cont [7/16] (narrow) %v324_v16, 64  ;;  %2964 = vst [vmem:[#allocation5 + $0x1160] sm:$0xff] %v1245_v15  ;;  %v360_v16 = vld [vmem:[#allocation2 + $0xa88] sm:$0xff] }
 0x270   :  { %1390 = vxpose.xlu0.b32.cont [8/16] %v325_v18, 128  ;;  %v1278_v21 = vpop.trf.xlu0  ;;  %v361_v18 = vld [vmem:[#allocation2 + $0xa90] sm:$0xff] }
 0x271   :  { %2590 = vst [vmem:[#allocation5 + $0x5b0] sm:$0xff] %v1278_v21  ;;  %1422 = vxpose.xlu1.b32.cont [8/16] (narrow) %v326_v20, 64  ;;  %v363_v21 = vld [vmem:[#allocation2 + $0xaa0] sm:$0xff] }
 0x274   :  { %1391 = vxpose.xlu0.b32.cont [9/16] %v327_v22, 128  ;;  %v1279_v25 = vpop.trf.xlu0  ;;  %v364_v22 = vld [vmem:[#allocation2 + $0xaa8] sm:$0xff] }
 0x275   :  { %2615 = vst [vmem:[#allocation5 + $0x678] sm:$0xff] %v1279_v25  ;;  %1423 = vxpose.xlu1.b32.cont [9/16] (narrow) %v328_v24, 64  ;;  %v365_v24 = vld [vmem:[#allocation2 + $0xab0] sm:$0xff]  ;;  %v366_v25 = vld [vmem:[#allocation2 + $0xab8] sm:$0xff] }
 0x278   :  { %1392 = vxpose.xlu0.b32.cont [10/16] %v329_v26, 128  ;;  %v1280_v28 = vpop.trf.xlu0 }
 0x279   :  { %2640 = vst [vmem:[#allocation5 + $0x740] sm:$0xff] %v1280_v28  ;;  %1424 = vxpose.xlu1.b32.cont [10/16] (narrow) %v330_v27, 64  ;;  %v367_v27 = vld [vmem:[#allocation2 + $0xac0] sm:$0xff]  ;;  %v368_v28 = vld [vmem:[#allocation2 + $0xac8] sm:$0xff] }
 0x27c   :  { %1393 = vxpose.xlu0.b32.cont [11/16] %v331_v29, 128  ;;  %v1281_v31 = vpop.trf.xlu0 }
 0x27d   :  { %2665 = vst [vmem:[#allocation5 + $0x808] sm:$0xff] %v1281_v31  ;;  %1425 = vxpose.xlu1.b32.cont [11/16] (narrow) %v332_v30, 64  ;;  %v369_v30 = vld [vmem:[#allocation2 + $0xad0] sm:$0xff]  ;;  %v370_v31 = vld [vmem:[#allocation2 + $0xad8] sm:$0xff] }
 0x280   :  { %1394 = vxpose.xlu0.b32.cont [12/16] %v333_v32, 128  ;;  %v1282_v34 = vpop.trf.xlu0 }
 0x281   :  { %2690 = vst [vmem:[#allocation5 + $0x8d0] sm:$0xff] %v1282_v34  ;;  %1426 = vxpose.xlu1.b32.cont [12/16] (narrow) %v334_v33, 64  ;;  %v371_v33 = vld [vmem:[#allocation2 + $0xae0] sm:$0xff]  ;;  %v372_v34 = vld [vmem:[#allocation2 + $0xae8] sm:$0xff] }
 0x284   :  { %1395 = vxpose.xlu0.b32.cont [13/16] %v335_v35, 128  ;;  %v1283_v37 = vpop.trf.xlu0 }
 0x285   :  { %2715 = vst [vmem:[#allocation5 + $0x998] sm:$0xff] %v1283_v37  ;;  %1427 = vxpose.xlu1.b32.cont [13/16] (narrow) %v336_v36, 64  ;;  %v373_v36 = vld [vmem:[#allocation2 + $0xaf0] sm:$0xff]  ;;  %v374_v37 = vld [vmem:[#allocation2 + $0xaf8] sm:$0xff] }
 0x288   :  { %1396 = vxpose.xlu0.b32.cont [14/16] %v337_v38, 128  ;;  %v1284_v40 = vpop.trf.xlu0 }
 0x289   :  { %2740 = vst [vmem:[#allocation5 + $0xa60] sm:$0xff] %v1284_v40  ;;  %1428 = vxpose.xlu1.b32.cont [14/16] (narrow) %v338_v39, 64  ;;  %v375_v39 = vld [vmem:[#allocation2 + $0xb00] sm:$0xff]  ;;  %v376_v40 = vld [vmem:[#allocation2 + $0xb08] sm:$0xff] }
 0x28c   :  { %1397 = vxpose.xlu0.b32.cont [15/16] %v339_v41, 128  ;;  %v1285_v43 = vpop.trf.xlu0 }
 0x28d   :  { %2765 = vst [vmem:[#allocation5 + $0xb28] sm:$0xff] %v1285_v43  ;;  %1429 = vxpose.xlu1.b32.cont [15/16] (narrow) %v340_v42, 64  ;;  %v377_v42 = vld [vmem:[#allocation2 + $0xb10] sm:$0xff]  ;;  %v1246_v43 = vpop.trf.xlu1 }
 0x28e   :  { %2989 = vst [vmem:[#allocation5 + $0x1228] sm:$0xff] %v1246_v43 }
 0x290   :  { %1398 = vxpose.xlu0.b32.end [16/16] %v341_v44, 128  ;;  %v1286_v46 = vpop.trf.xlu0  ;;  %v378_v44 = vld [vmem:[#allocation2 + $0xb18] sm:$0xff] }
 0x291   :  { %2790 = vst [vmem:[#allocation5 + $0xbf0] sm:$0xff] %v1286_v46  ;;  %1430 = vxpose.xlu1.b32.end [16/16] (narrow) %v342_v45, 64  ;;  %v379_v46 = vld [vmem:[#allocation2 + $0xb20] sm:$0xff] }
 0x294   :  { %1447 = vxpose.xlu0.b32.start [1/16] %v343_v47, 128  ;;  %v1335_v49 = vpop.trf.xlu0  ;;  %v1303_v47 = vpop.trf.xlu1 }
 0x295   :  { %2415 = vst [vmem:[#allocation5 + $0x40] sm:$0xff] %v1335_v49  ;;  %1479 = vxpose.xlu1.b32.start [1/16] (narrow) %v344_v48, 64  ;;  %2815 = vst [vmem:[#allocation5 + $0xcb8] sm:$0xff] %v1303_v47  ;;  %v380_v48 = vld [vmem:[#allocation2 + $0xb28] sm:$0xff] }
 0x298   :  { %1448 = vxpose.xlu0.b32.cont [2/16] %v345_v50, 128  ;;  %v1336_v53 = vpop.trf.xlu0  ;;  %v381_v50 = vld [vmem:[#allocation2 + $0xb30] sm:$0xff]  ;;  %v1304_v51 = vpop.trf.xlu1 }
 0x299   :  { %2441 = vst [vmem:[#allocation5 + $0x108] sm:$0xff] %v1336_v53  ;;  %1480 = vxpose.xlu1.b32.cont [2/16] (narrow) %v346_v52, 64  ;;  %2840 = vst [vmem:[#allocation5 + $0xd80] sm:$0xff] %v1304_v51  ;;  %v382_v52 = vld [vmem:[#allocation2 + $0xb38] sm:$0xff] }
 0x29c   :  { %1449 = vxpose.xlu0.b32.cont [3/16] %v347_v54, 128  ;;  %v1337_v57 = vpop.trf.xlu0  ;;  %v383_v54 = vld [vmem:[#allocation2 + $0xb40] sm:$0xff]  ;;  %v1305_v55 = vpop.trf.xlu1 }
 0x29d   :  { %2466 = vst [vmem:[#allocation5 + $0x1d0] sm:$0xff] %v1337_v57  ;;  %1481 = vxpose.xlu1.b32.cont [3/16] (narrow) %v348_v56, 64  ;;  %2865 = vst [vmem:[#allocation5 + $0xe48] sm:$0xff] %v1305_v55  ;;  %v384_v56 = vld [vmem:[#allocation2 + $0xb48] sm:$0xff] }
 0x2a0   :  { %1450 = vxpose.xlu0.b32.cont [4/16] %v349_v58, 128  ;;  %v1338_v61 = vpop.trf.xlu0  ;;  %v385_v58 = vld [vmem:[#allocation2 + $0xb50] sm:$0xff]  ;;  %v1306_v59 = vpop.trf.xlu1 }
 0x2a1   :  { %2491 = vst [vmem:[#allocation5 + $0x298] sm:$0xff] %v1338_v61  ;;  %1482 = vxpose.xlu1.b32.cont [4/16] (narrow) %v350_v60, 64  ;;  %2890 = vst [vmem:[#allocation5 + $0xf10] sm:$0xff] %v1306_v59  ;;  %v386_v60 = vld [vmem:[#allocation2 + $0xb58] sm:$0xff] }
 0x2a4   :  { %1451 = vxpose.xlu0.b32.cont [5/16] %v351_v62, 128  ;;  %v1339_v1 = vpop.trf.xlu0  ;;  %v387_v62 = vld [vmem:[#allocation2 + $0xb60] sm:$0xff]  ;;  %v1307_v63 = vpop.trf.xlu1 }
 0x2a5   :  { %2516 = vst [vmem:[#allocation5 + $0x360] sm:$0xff] %v1339_v1  ;;  %1483 = vxpose.xlu1.b32.cont [5/16] (narrow) %v352_v0, 64  ;;  %2915 = vst [vmem:[#allocation5 + $0xfd8] sm:$0xff] %v1307_v63  ;;  %v388_v0 = vld [vmem:[#allocation2 + $0xb68] sm:$0xff] }
 0x2a8   :  { %1452 = vxpose.xlu0.b32.cont [6/16] %v353_v2, 128  ;;  %v1340_v5 = vpop.trf.xlu0  ;;  %v389_v2 = vld [vmem:[#allocation2 + $0xb70] sm:$0xff]  ;;  %v1308_v3 = vpop.trf.xlu1 }
 0x2a9   :  { %2541 = vst [vmem:[#allocation5 + $0x428] sm:$0xff] %v1340_v5  ;;  %1484 = vxpose.xlu1.b32.cont [6/16] (narrow) %v354_v4, 64  ;;  %2940 = vst [vmem:[#allocation5 + $0x10a0] sm:$0xff] %v1308_v3  ;;  %v390_v4 = vld [vmem:[#allocation2 + $0xb78] sm:$0xff] }
 0x2aa   :  { %v426_v3 = vld [vmem:[#allocation2 + $0xc98] sm:$0xff] }
 0x2ac   :  { %1453 = vxpose.xlu0.b32.cont [7/16] %v355_v6, 128  ;;  %v1341_v9 = vpop.trf.xlu0  ;;  %v391_v6 = vld [vmem:[#allocation2 + $0xb80] sm:$0xff]  ;;  %v1309_v7 = vpop.trf.xlu1 }
 0x2ad   :  { %2566 = vst [vmem:[#allocation5 + $0x4f0] sm:$0xff] %v1341_v9  ;;  %1485 = vxpose.xlu1.b32.cont [7/16] (narrow) %v356_v8, 64  ;;  %2965 = vst [vmem:[#allocation5 + $0x1168] sm:$0xff] %v1309_v7  ;;  %v392_v8 = vld [vmem:[#allocation2 + $0xb88] sm:$0xff] }
 0x2b0   :  { %1454 = vxpose.xlu0.b32.cont [8/16] %v357_v10, 128  ;;  %v1342_v13 = vpop.trf.xlu0  ;;  %v393_v10 = vld [vmem:[#allocation2 + $0xb90] sm:$0xff] }
 0x2b1   :  { %2591 = vst [vmem:[#allocation5 + $0x5b8] sm:$0xff] %v1342_v13  ;;  %1486 = vxpose.xlu1.b32.cont [8/16] (narrow) %v358_v12, 64  ;;  %v395_v13 = vld [vmem:[#allocation2 + $0xba0] sm:$0xff] }
 0x2b4   :  { %1455 = vxpose.xlu0.b32.cont [9/16] %v359_v14, 128  ;;  %v1343_v17 = vpop.trf.xlu0  ;;  %v396_v14 = vld [vmem:[#allocation2 + $0xba8] sm:$0xff] }
 0x2b5   :  { %2616 = vst [vmem:[#allocation5 + $0x680] sm:$0xff] %v1343_v17  ;;  %1487 = vxpose.xlu1.b32.cont [9/16] (narrow) %v360_v16, 64  ;;  %v397_v16 = vld [vmem:[#allocation2 + $0xbb0] sm:$0xff]  ;;  %v398_v17 = vld [vmem:[#allocation2 + $0xbb8] sm:$0xff] }
 0x2b8   :  { %1456 = vxpose.xlu0.b32.cont [10/16] %v361_v18, 128  ;;  %v1344_v20 = vpop.trf.xlu0 }
 0x2b9   :  { %2641 = vst [vmem:[#allocation5 + $0x748] sm:$0xff] %v1344_v20  ;;  %1488 = vxpose.xlu1.b32.cont [10/16] (narrow) %v362_v19, 64  ;;  %v399_v19 = vld [vmem:[#allocation2 + $0xbc0] sm:$0xff]  ;;  %v400_v20 = vld [vmem:[#allocation2 + $0xbc8] sm:$0xff] }
 0x2bc   :  { %1457 = vxpose.xlu0.b32.cont [11/16] %v363_v21, 128  ;;  %v1345_v23 = vpop.trf.xlu0 }
 0x2bd   :  { %2666 = vst [vmem:[#allocation5 + $0x810] sm:$0xff] %v1345_v23  ;;  %1489 = vxpose.xlu1.b32.cont [11/16] (narrow) %v364_v22, 64  ;;  %v401_v22 = vld [vmem:[#allocation2 + $0xbd0] sm:$0xff]  ;;  %v402_v23 = vld [vmem:[#allocation2 + $0xbd8] sm:$0xff] }
 0x2c0   :  { %1458 = vxpose.xlu0.b32.cont [12/16] %v365_v24, 128  ;;  %v1346_v26 = vpop.trf.xlu0 }
 0x2c1   :  { %2691 = vst [vmem:[#allocation5 + $0x8d8] sm:$0xff] %v1346_v26  ;;  %1490 = vxpose.xlu1.b32.cont [12/16] (narrow) %v366_v25, 64  ;;  %v403_v25 = vld [vmem:[#allocation2 + $0xbe0] sm:$0xff]  ;;  %v404_v26 = vld [vmem:[#allocation2 + $0xbe8] sm:$0xff] }
 0x2c4   :  { %1459 = vxpose.xlu0.b32.cont [13/16] %v367_v27, 128  ;;  %v1347_v29 = vpop.trf.xlu0 }
 0x2c5   :  { %2716 = vst [vmem:[#allocation5 + $0x9a0] sm:$0xff] %v1347_v29  ;;  %1491 = vxpose.xlu1.b32.cont [13/16] (narrow) %v368_v28, 64  ;;  %v405_v28 = vld [vmem:[#allocation2 + $0xbf0] sm:$0xff]  ;;  %v406_v29 = vld [vmem:[#allocation2 + $0xbf8] sm:$0xff] }
 0x2c8   :  { %1460 = vxpose.xlu0.b32.cont [14/16] %v369_v30, 128  ;;  %v1348_v32 = vpop.trf.xlu0 }
 0x2c9   :  { %2741 = vst [vmem:[#allocation5 + $0xa68] sm:$0xff] %v1348_v32  ;;  %1492 = vxpose.xlu1.b32.cont [14/16] (narrow) %v370_v31, 64  ;;  %v407_v31 = vld [vmem:[#allocation2 + $0xc00] sm:$0xff]  ;;  %v408_v32 = vld [vmem:[#allocation2 + $0xc08] sm:$0xff] }
 0x2cc   :  { %1461 = vxpose.xlu0.b32.cont [15/16] %v371_v33, 128  ;;  %v1349_v35 = vpop.trf.xlu0 }
 0x2cd   :  { %2766 = vst [vmem:[#allocation5 + $0xb30] sm:$0xff] %v1349_v35  ;;  %1493 = vxpose.xlu1.b32.cont [15/16] (narrow) %v372_v34, 64  ;;  %v409_v34 = vld [vmem:[#allocation2 + $0xc10] sm:$0xff]  ;;  %v1310_v35 = vpop.trf.xlu1 }
 0x2ce   :  { %2990 = vst [vmem:[#allocation5 + $0x1230] sm:$0xff] %v1310_v35 }
 0x2d0   :  { %1462 = vxpose.xlu0.b32.end [16/16] %v373_v36, 128  ;;  %v1350_v38 = vpop.trf.xlu0  ;;  %v410_v36 = vld [vmem:[#allocation2 + $0xc18] sm:$0xff] }
 0x2d1   :  { %2791 = vst [vmem:[#allocation5 + $0xbf8] sm:$0xff] %v1350_v38  ;;  %1494 = vxpose.xlu1.b32.end [16/16] (narrow) %v374_v37, 64  ;;  %v411_v38 = vld [vmem:[#allocation2 + $0xc20] sm:$0xff] }
 0x2d4   :  { %1511 = vxpose.xlu0.b32.start [1/16] %v375_v39, 128  ;;  %v1399_v41 = vpop.trf.xlu0  ;;  %v1367_v39 = vpop.trf.xlu1 }
 0x2d5   :  { %2416 = vst [vmem:[#allocation5 + $0x48] sm:$0xff] %v1399_v41  ;;  %1543 = vxpose.xlu1.b32.start [1/16] (narrow) %v376_v40, 64  ;;  %2816 = vst [vmem:[#allocation5 + $0xcc0] sm:$0xff] %v1367_v39  ;;  %v412_v40 = vld [vmem:[#allocation2 + $0xc28] sm:$0xff] }
 0x2d8   :  { %1512 = vxpose.xlu0.b32.cont [2/16] %v377_v42, 128  ;;  %v1400_v45 = vpop.trf.xlu0  ;;  %v413_v42 = vld [vmem:[#allocation2 + $0xc30] sm:$0xff]  ;;  %v1368_v43 = vpop.trf.xlu1 }
 0x2d9   :  { %2442 = vst [vmem:[#allocation5 + $0x110] sm:$0xff] %v1400_v45  ;;  %1544 = vxpose.xlu1.b32.cont [2/16] (narrow) %v378_v44, 64  ;;  %2841 = vst [vmem:[#allocation5 + $0xd88] sm:$0xff] %v1368_v43  ;;  %v414_v44 = vld [vmem:[#allocation2 + $0xc38] sm:$0xff] }
 0x2dc   :  { %1513 = vxpose.xlu0.b32.cont [3/16] %v379_v46, 128  ;;  %v1401_v49 = vpop.trf.xlu0  ;;  %v415_v46 = vld [vmem:[#allocation2 + $0xc40] sm:$0xff]  ;;  %v1369_v47 = vpop.trf.xlu1 }
 0x2dd   :  { %2467 = vst [vmem:[#allocation5 + $0x1d8] sm:$0xff] %v1401_v49  ;;  %1545 = vxpose.xlu1.b32.cont [3/16] (narrow) %v380_v48, 64  ;;  %2866 = vst [vmem:[#allocation5 + $0xe50] sm:$0xff] %v1369_v47  ;;  %v416_v48 = vld [vmem:[#allocation2 + $0xc48] sm:$0xff] }
 0x2e0   :  { %1514 = vxpose.xlu0.b32.cont [4/16] %v381_v50, 128  ;;  %v1402_v53 = vpop.trf.xlu0  ;;  %v417_v50 = vld [vmem:[#allocation2 + $0xc50] sm:$0xff]  ;;  %v1370_v51 = vpop.trf.xlu1 }
 0x2e1   :  { %2492 = vst [vmem:[#allocation5 + $0x2a0] sm:$0xff] %v1402_v53  ;;  %1546 = vxpose.xlu1.b32.cont [4/16] (narrow) %v382_v52, 64  ;;  %2891 = vst [vmem:[#allocation5 + $0xf18] sm:$0xff] %v1370_v51  ;;  %v418_v52 = vld [vmem:[#allocation2 + $0xc58] sm:$0xff] }
 0x2e4   :  { %1515 = vxpose.xlu0.b32.cont [5/16] %v383_v54, 128  ;;  %v1403_v57 = vpop.trf.xlu0  ;;  %v419_v54 = vld [vmem:[#allocation2 + $0xc60] sm:$0xff]  ;;  %v1371_v55 = vpop.trf.xlu1 }
 0x2e5   :  { %2517 = vst [vmem:[#allocation5 + $0x368] sm:$0xff] %v1403_v57  ;;  %1547 = vxpose.xlu1.b32.cont [5/16] (narrow) %v384_v56, 64  ;;  %2916 = vst [vmem:[#allocation5 + $0xfe0] sm:$0xff] %v1371_v55  ;;  %v420_v56 = vld [vmem:[#allocation2 + $0xc68] sm:$0xff] }
 0x2e8   :  { %1516 = vxpose.xlu0.b32.cont [6/16] %v385_v58, 128  ;;  %v1404_v61 = vpop.trf.xlu0  ;;  %v421_v58 = vld [vmem:[#allocation2 + $0xc70] sm:$0xff]  ;;  %v1372_v59 = vpop.trf.xlu1 }
 0x2e9   :  { %2542 = vst [vmem:[#allocation5 + $0x430] sm:$0xff] %v1404_v61  ;;  %1548 = vxpose.xlu1.b32.cont [6/16] (narrow) %v386_v60, 64  ;;  %2941 = vst [vmem:[#allocation5 + $0x10a8] sm:$0xff] %v1372_v59  ;;  %v422_v60 = vld [vmem:[#allocation2 + $0xc78] sm:$0xff] }
 0x2ea   :  { %v458_v59 = vld [vmem:[#allocation2 + $0xd98] sm:$0xff] }
 0x2ec   :  { %1517 = vxpose.xlu0.b32.cont [7/16] %v387_v62, 128  ;;  %v1405_v1 = vpop.trf.xlu0  ;;  %v423_v62 = vld [vmem:[#allocation2 + $0xc80] sm:$0xff]  ;;  %v1373_v63 = vpop.trf.xlu1 }
 0x2ed   :  { %2567 = vst [vmem:[#allocation5 + $0x4f8] sm:$0xff] %v1405_v1  ;;  %1549 = vxpose.xlu1.b32.cont [7/16] (narrow) %v388_v0, 64  ;;  %2966 = vst [vmem:[#allocation5 + $0x1170] sm:$0xff] %v1373_v63  ;;  %v424_v0 = vld [vmem:[#allocation2 + $0xc88] sm:$0xff] }
 0x2f0   :  { %1518 = vxpose.xlu0.b32.cont [8/16] %v389_v2, 128  ;;  %v1406_v5 = vpop.trf.xlu0  ;;  %v425_v2 = vld [vmem:[#allocation2 + $0xc90] sm:$0xff] }
 0x2f1   :  { %2592 = vst [vmem:[#allocation5 + $0x5c0] sm:$0xff] %v1406_v5  ;;  %1550 = vxpose.xlu1.b32.cont [8/16] (narrow) %v390_v4, 64  ;;  %v427_v5 = vld [vmem:[#allocation2 + $0xca0] sm:$0xff] }
 0x2f4   :  { %1519 = vxpose.xlu0.b32.cont [9/16] %v391_v6, 128  ;;  %v1407_v9 = vpop.trf.xlu0  ;;  %v428_v6 = vld [vmem:[#allocation2 + $0xca8] sm:$0xff] }
 0x2f5   :  { %2617 = vst [vmem:[#allocation5 + $0x688] sm:$0xff] %v1407_v9  ;;  %1551 = vxpose.xlu1.b32.cont [9/16] (narrow) %v392_v8, 64  ;;  %v429_v8 = vld [vmem:[#allocation2 + $0xcb0] sm:$0xff]  ;;  %v430_v9 = vld [vmem:[#allocation2 + $0xcb8] sm:$0xff] }
 0x2f8   :  { %1520 = vxpose.xlu0.b32.cont [10/16] %v393_v10, 128  ;;  %v1408_v12 = vpop.trf.xlu0 }
 0x2f9   :  { %2642 = vst [vmem:[#allocation5 + $0x750] sm:$0xff] %v1408_v12  ;;  %1552 = vxpose.xlu1.b32.cont [10/16] (narrow) %v394_v11, 64  ;;  %v431_v11 = vld [vmem:[#allocation2 + $0xcc0] sm:$0xff]  ;;  %v432_v12 = vld [vmem:[#allocation2 + $0xcc8] sm:$0xff] }
 0x2fc   :  { %1521 = vxpose.xlu0.b32.cont [11/16] %v395_v13, 128  ;;  %v1409_v15 = vpop.trf.xlu0 }
 0x2fd   :  { %2667 = vst [vmem:[#allocation5 + $0x818] sm:$0xff] %v1409_v15  ;;  %1553 = vxpose.xlu1.b32.cont [11/16] (narrow) %v396_v14, 64  ;;  %v433_v14 = vld [vmem:[#allocation2 + $0xcd0] sm:$0xff]  ;;  %v434_v15 = vld [vmem:[#allocation2 + $0xcd8] sm:$0xff] }
 0x300   :  { %1522 = vxpose.xlu0.b32.cont [12/16] %v397_v16, 128  ;;  %v1410_v18 = vpop.trf.xlu0 }
 0x301   :  { %2692 = vst [vmem:[#allocation5 + $0x8e0] sm:$0xff] %v1410_v18  ;;  %1554 = vxpose.xlu1.b32.cont [12/16] (narrow) %v398_v17, 64  ;;  %v435_v17 = vld [vmem:[#allocation2 + $0xce0] sm:$0xff]  ;;  %v436_v18 = vld [vmem:[#allocation2 + $0xce8] sm:$0xff] }
 0x304   :  { %1523 = vxpose.xlu0.b32.cont [13/16] %v399_v19, 128  ;;  %v1411_v21 = vpop.trf.xlu0 }
 0x305   :  { %2717 = vst [vmem:[#allocation5 + $0x9a8] sm:$0xff] %v1411_v21  ;;  %1555 = vxpose.xlu1.b32.cont [13/16] (narrow) %v400_v20, 64  ;;  %v437_v20 = vld [vmem:[#allocation2 + $0xcf0] sm:$0xff]  ;;  %v438_v21 = vld [vmem:[#allocation2 + $0xcf8] sm:$0xff] }
 0x308   :  { %1524 = vxpose.xlu0.b32.cont [14/16] %v401_v22, 128  ;;  %v1412_v24 = vpop.trf.xlu0 }
 0x309   :  { %2742 = vst [vmem:[#allocation5 + $0xa70] sm:$0xff] %v1412_v24  ;;  %1556 = vxpose.xlu1.b32.cont [14/16] (narrow) %v402_v23, 64  ;;  %v439_v23 = vld [vmem:[#allocation2 + $0xd00] sm:$0xff]  ;;  %v440_v24 = vld [vmem:[#allocation2 + $0xd08] sm:$0xff] }
 0x30c   :  { %1525 = vxpose.xlu0.b32.cont [15/16] %v403_v25, 128  ;;  %v1413_v27 = vpop.trf.xlu0 }
 0x30d   :  { %2767 = vst [vmem:[#allocation5 + $0xb38] sm:$0xff] %v1413_v27  ;;  %1557 = vxpose.xlu1.b32.cont [15/16] (narrow) %v404_v26, 64  ;;  %v441_v26 = vld [vmem:[#allocation2 + $0xd10] sm:$0xff]  ;;  %v1374_v27 = vpop.trf.xlu1 }
 0x30e   :  { %2991 = vst [vmem:[#allocation5 + $0x1238] sm:$0xff] %v1374_v27 }
 0x310   :  { %1526 = vxpose.xlu0.b32.end [16/16] %v405_v28, 128  ;;  %v1414_v30 = vpop.trf.xlu0  ;;  %v442_v28 = vld [vmem:[#allocation2 + $0xd18] sm:$0xff] }
 0x311   :  { %2792 = vst [vmem:[#allocation5 + $0xc00] sm:$0xff] %v1414_v30  ;;  %1558 = vxpose.xlu1.b32.end [16/16] (narrow) %v406_v29, 64  ;;  %v443_v30 = vld [vmem:[#allocation2 + $0xd20] sm:$0xff] }
 0x314   :  { %1575 = vxpose.xlu0.b32.start [1/16] %v407_v31, 128  ;;  %v1463_v33 = vpop.trf.xlu0  ;;  %v1431_v31 = vpop.trf.xlu1 }
 0x315   :  { %2417 = vst [vmem:[#allocation5 + $0x50] sm:$0xff] %v1463_v33  ;;  %1607 = vxpose.xlu1.b32.start [1/16] (narrow) %v408_v32, 64  ;;  %2817 = vst [vmem:[#allocation5 + $0xcc8] sm:$0xff] %v1431_v31  ;;  %v444_v32 = vld [vmem:[#allocation2 + $0xd28] sm:$0xff] }
 0x318   :  { %1576 = vxpose.xlu0.b32.cont [2/16] %v409_v34, 128  ;;  %v1464_v37 = vpop.trf.xlu0  ;;  %v445_v34 = vld [vmem:[#allocation2 + $0xd30] sm:$0xff]  ;;  %v1432_v35 = vpop.trf.xlu1 }
 0x319   :  { %2443 = vst [vmem:[#allocation5 + $0x118] sm:$0xff] %v1464_v37  ;;  %1608 = vxpose.xlu1.b32.cont [2/16] (narrow) %v410_v36, 64  ;;  %2842 = vst [vmem:[#allocation5 + $0xd90] sm:$0xff] %v1432_v35  ;;  %v446_v36 = vld [vmem:[#allocation2 + $0xd38] sm:$0xff] }
 0x31c   :  { %1577 = vxpose.xlu0.b32.cont [3/16] %v411_v38, 128  ;;  %v1465_v41 = vpop.trf.xlu0  ;;  %v447_v38 = vld [vmem:[#allocation2 + $0xd40] sm:$0xff]  ;;  %v1433_v39 = vpop.trf.xlu1 }
 0x31d   :  { %2468 = vst [vmem:[#allocation5 + $0x1e0] sm:$0xff] %v1465_v41  ;;  %1609 = vxpose.xlu1.b32.cont [3/16] (narrow) %v412_v40, 64  ;;  %2867 = vst [vmem:[#allocation5 + $0xe58] sm:$0xff] %v1433_v39  ;;  %v448_v40 = vld [vmem:[#allocation2 + $0xd48] sm:$0xff] }
 0x320   :  { %1578 = vxpose.xlu0.b32.cont [4/16] %v413_v42, 128  ;;  %v1466_v45 = vpop.trf.xlu0  ;;  %v449_v42 = vld [vmem:[#allocation2 + $0xd50] sm:$0xff]  ;;  %v1434_v43 = vpop.trf.xlu1 }
 0x321   :  { %2493 = vst [vmem:[#allocation5 + $0x2a8] sm:$0xff] %v1466_v45  ;;  %1610 = vxpose.xlu1.b32.cont [4/16] (narrow) %v414_v44, 64  ;;  %2892 = vst [vmem:[#allocation5 + $0xf20] sm:$0xff] %v1434_v43  ;;  %v450_v44 = vld [vmem:[#allocation2 + $0xd58] sm:$0xff] }
 0x324   :  { %1579 = vxpose.xlu0.b32.cont [5/16] %v415_v46, 128  ;;  %v1467_v49 = vpop.trf.xlu0  ;;  %v451_v46 = vld [vmem:[#allocation2 + $0xd60] sm:$0xff]  ;;  %v1435_v47 = vpop.trf.xlu1 }
 0x325   :  { %2518 = vst [vmem:[#allocation5 + $0x370] sm:$0xff] %v1467_v49  ;;  %1611 = vxpose.xlu1.b32.cont [5/16] (narrow) %v416_v48, 64  ;;  %2917 = vst [vmem:[#allocation5 + $0xfe8] sm:$0xff] %v1435_v47  ;;  %v452_v48 = vld [vmem:[#allocation2 + $0xd68] sm:$0xff] }
 0x328   :  { %1580 = vxpose.xlu0.b32.cont [6/16] %v417_v50, 128  ;;  %v1468_v53 = vpop.trf.xlu0  ;;  %v453_v50 = vld [vmem:[#allocation2 + $0xd70] sm:$0xff]  ;;  %v1436_v51 = vpop.trf.xlu1 }
 0x329   :  { %2543 = vst [vmem:[#allocation5 + $0x438] sm:$0xff] %v1468_v53  ;;  %1612 = vxpose.xlu1.b32.cont [6/16] (narrow) %v418_v52, 64  ;;  %2942 = vst [vmem:[#allocation5 + $0x10b0] sm:$0xff] %v1436_v51  ;;  %v454_v52 = vld [vmem:[#allocation2 + $0xd78] sm:$0xff] }
 0x32a   :  { %v490_v51 = vld [vmem:[#allocation2 + $0xe98] sm:$0xff] }
 0x32c   :  { %1581 = vxpose.xlu0.b32.cont [7/16] %v419_v54, 128  ;;  %v1469_v57 = vpop.trf.xlu0  ;;  %v455_v54 = vld [vmem:[#allocation2 + $0xd80] sm:$0xff]  ;;  %v1437_v55 = vpop.trf.xlu1 }
 0x32d   :  { %2568 = vst [vmem:[#allocation5 + $0x500] sm:$0xff] %v1469_v57  ;;  %1613 = vxpose.xlu1.b32.cont [7/16] (narrow) %v420_v56, 64  ;;  %2967 = vst [vmem:[#allocation5 + $0x1178] sm:$0xff] %v1437_v55  ;;  %v456_v56 = vld [vmem:[#allocation2 + $0xd88] sm:$0xff] }
 0x330   :  { %1582 = vxpose.xlu0.b32.cont [8/16] %v421_v58, 128  ;;  %v1470_v61 = vpop.trf.xlu0  ;;  %v457_v58 = vld [vmem:[#allocation2 + $0xd90] sm:$0xff] }
 0x331   :  { %2593 = vst [vmem:[#allocation5 + $0x5c8] sm:$0xff] %v1470_v61  ;;  %1614 = vxpose.xlu1.b32.cont [8/16] (narrow) %v422_v60, 64  ;;  %v459_v61 = vld [vmem:[#allocation2 + $0xda0] sm:$0xff] }
 0x334   :  { %1583 = vxpose.xlu0.b32.cont [9/16] %v423_v62, 128  ;;  %v1471_v1 = vpop.trf.xlu0  ;;  %v460_v62 = vld [vmem:[#allocation2 + $0xda8] sm:$0xff] }
 0x335   :  { %2618 = vst [vmem:[#allocation5 + $0x690] sm:$0xff] %v1471_v1  ;;  %1615 = vxpose.xlu1.b32.cont [9/16] (narrow) %v424_v0, 64  ;;  %v461_v0 = vld [vmem:[#allocation2 + $0xdb0] sm:$0xff]  ;;  %v462_v1 = vld [vmem:[#allocation2 + $0xdb8] sm:$0xff] }
 0x338   :  { %1584 = vxpose.xlu0.b32.cont [10/16] %v425_v2, 128  ;;  %v1472_v4 = vpop.trf.xlu0 }
 0x339   :  { %2643 = vst [vmem:[#allocation5 + $0x758] sm:$0xff] %v1472_v4  ;;  %1616 = vxpose.xlu1.b32.cont [10/16] (narrow) %v426_v3, 64  ;;  %v463_v3 = vld [vmem:[#allocation2 + $0xdc0] sm:$0xff]  ;;  %v464_v4 = vld [vmem:[#allocation2 + $0xdc8] sm:$0xff] }
 0x33c   :  { %1585 = vxpose.xlu0.b32.cont [11/16] %v427_v5, 128  ;;  %v1473_v7 = vpop.trf.xlu0 }
 0x33d   :  { %2668 = vst [vmem:[#allocation5 + $0x820] sm:$0xff] %v1473_v7  ;;  %1617 = vxpose.xlu1.b32.cont [11/16] (narrow) %v428_v6, 64  ;;  %v465_v6 = vld [vmem:[#allocation2 + $0xdd0] sm:$0xff]  ;;  %v466_v7 = vld [vmem:[#allocation2 + $0xdd8] sm:$0xff] }
 0x340   :  { %1586 = vxpose.xlu0.b32.cont [12/16] %v429_v8, 128  ;;  %v1474_v10 = vpop.trf.xlu0 }
 0x341   :  { %2693 = vst [vmem:[#allocation5 + $0x8e8] sm:$0xff] %v1474_v10  ;;  %1618 = vxpose.xlu1.b32.cont [12/16] (narrow) %v430_v9, 64  ;;  %v467_v9 = vld [vmem:[#allocation2 + $0xde0] sm:$0xff]  ;;  %v468_v10 = vld [vmem:[#allocation2 + $0xde8] sm:$0xff] }
 0x344   :  { %1587 = vxpose.xlu0.b32.cont [13/16] %v431_v11, 128  ;;  %v1475_v13 = vpop.trf.xlu0 }
 0x345   :  { %2718 = vst [vmem:[#allocation5 + $0x9b0] sm:$0xff] %v1475_v13  ;;  %1619 = vxpose.xlu1.b32.cont [13/16] (narrow) %v432_v12, 64  ;;  %v469_v12 = vld [vmem:[#allocation2 + $0xdf0] sm:$0xff]  ;;  %v470_v13 = vld [vmem:[#allocation2 + $0xdf8] sm:$0xff] }
 0x348   :  { %1588 = vxpose.xlu0.b32.cont [14/16] %v433_v14, 128  ;;  %v1476_v16 = vpop.trf.xlu0 }
 0x349   :  { %2743 = vst [vmem:[#allocation5 + $0xa78] sm:$0xff] %v1476_v16  ;;  %1620 = vxpose.xlu1.b32.cont [14/16] (narrow) %v434_v15, 64  ;;  %v471_v15 = vld [vmem:[#allocation2 + $0xe00] sm:$0xff]  ;;  %v472_v16 = vld [vmem:[#allocation2 + $0xe08] sm:$0xff] }
 0x34c   :  { %1589 = vxpose.xlu0.b32.cont [15/16] %v435_v17, 128  ;;  %v1477_v19 = vpop.trf.xlu0 }
 0x34d   :  { %2768 = vst [vmem:[#allocation5 + $0xb40] sm:$0xff] %v1477_v19  ;;  %1621 = vxpose.xlu1.b32.cont [15/16] (narrow) %v436_v18, 64  ;;  %v473_v18 = vld [vmem:[#allocation2 + $0xe10] sm:$0xff]  ;;  %v1438_v19 = vpop.trf.xlu1 }
 0x34e   :  { %2992 = vst [vmem:[#allocation5 + $0x1240] sm:$0xff] %v1438_v19 }
 0x350   :  { %1590 = vxpose.xlu0.b32.end [16/16] %v437_v20, 128  ;;  %v1478_v22 = vpop.trf.xlu0  ;;  %v474_v20 = vld [vmem:[#allocation2 + $0xe18] sm:$0xff] }
 0x351   :  { %2793 = vst [vmem:[#allocation5 + $0xc08] sm:$0xff] %v1478_v22  ;;  %1622 = vxpose.xlu1.b32.end [16/16] (narrow) %v438_v21, 64  ;;  %v475_v22 = vld [vmem:[#allocation2 + $0xe20] sm:$0xff] }
 0x354   :  { %1639 = vxpose.xlu0.b32.start [1/16] %v439_v23, 128  ;;  %v1527_v25 = vpop.trf.xlu0  ;;  %v1495_v23 = vpop.trf.xlu1 }
 0x355   :  { %2418 = vst [vmem:[#allocation5 + $0x58] sm:$0xff] %v1527_v25  ;;  %1671 = vxpose.xlu1.b32.start [1/16] (narrow) %v440_v24, 64  ;;  %2818 = vst [vmem:[#allocation5 + $0xcd0] sm:$0xff] %v1495_v23  ;;  %v476_v24 = vld [vmem:[#allocation2 + $0xe28] sm:$0xff] }
 0x358   :  { %1640 = vxpose.xlu0.b32.cont [2/16] %v441_v26, 128  ;;  %v1528_v29 = vpop.trf.xlu0  ;;  %v477_v26 = vld [vmem:[#allocation2 + $0xe30] sm:$0xff]  ;;  %v1496_v27 = vpop.trf.xlu1 }
 0x359   :  { %2444 = vst [vmem:[#allocation5 + $0x120] sm:$0xff] %v1528_v29  ;;  %1672 = vxpose.xlu1.b32.cont [2/16] (narrow) %v442_v28, 64  ;;  %2843 = vst [vmem:[#allocation5 + $0xd98] sm:$0xff] %v1496_v27  ;;  %v478_v28 = vld [vmem:[#allocation2 + $0xe38] sm:$0xff] }
 0x35c   :  { %1641 = vxpose.xlu0.b32.cont [3/16] %v443_v30, 128  ;;  %v1529_v33 = vpop.trf.xlu0  ;;  %v479_v30 = vld [vmem:[#allocation2 + $0xe40] sm:$0xff]  ;;  %v1497_v31 = vpop.trf.xlu1 }
 0x35d   :  { %2469 = vst [vmem:[#allocation5 + $0x1e8] sm:$0xff] %v1529_v33  ;;  %1673 = vxpose.xlu1.b32.cont [3/16] (narrow) %v444_v32, 64  ;;  %2868 = vst [vmem:[#allocation5 + $0xe60] sm:$0xff] %v1497_v31  ;;  %v480_v32 = vld [vmem:[#allocation2 + $0xe48] sm:$0xff] }
 0x360   :  { %1642 = vxpose.xlu0.b32.cont [4/16] %v445_v34, 128  ;;  %v1530_v37 = vpop.trf.xlu0  ;;  %v481_v34 = vld [vmem:[#allocation2 + $0xe50] sm:$0xff]  ;;  %v1498_v35 = vpop.trf.xlu1 }
 0x361   :  { %2494 = vst [vmem:[#allocation5 + $0x2b0] sm:$0xff] %v1530_v37  ;;  %1674 = vxpose.xlu1.b32.cont [4/16] (narrow) %v446_v36, 64  ;;  %2893 = vst [vmem:[#allocation5 + $0xf28] sm:$0xff] %v1498_v35  ;;  %v482_v36 = vld [vmem:[#allocation2 + $0xe58] sm:$0xff] }
 0x364   :  { %1643 = vxpose.xlu0.b32.cont [5/16] %v447_v38, 128  ;;  %v1531_v41 = vpop.trf.xlu0  ;;  %v483_v38 = vld [vmem:[#allocation2 + $0xe60] sm:$0xff]  ;;  %v1499_v39 = vpop.trf.xlu1 }
 0x365   :  { %2519 = vst [vmem:[#allocation5 + $0x378] sm:$0xff] %v1531_v41  ;;  %1675 = vxpose.xlu1.b32.cont [5/16] (narrow) %v448_v40, 64  ;;  %2918 = vst [vmem:[#allocation5 + $0xff0] sm:$0xff] %v1499_v39  ;;  %v484_v40 = vld [vmem:[#allocation2 + $0xe68] sm:$0xff] }
 0x368   :  { %1644 = vxpose.xlu0.b32.cont [6/16] %v449_v42, 128  ;;  %v1532_v45 = vpop.trf.xlu0  ;;  %v485_v42 = vld [vmem:[#allocation2 + $0xe70] sm:$0xff]  ;;  %v1500_v43 = vpop.trf.xlu1 }
 0x369   :  { %2544 = vst [vmem:[#allocation5 + $0x440] sm:$0xff] %v1532_v45  ;;  %1676 = vxpose.xlu1.b32.cont [6/16] (narrow) %v450_v44, 64  ;;  %2943 = vst [vmem:[#allocation5 + $0x10b8] sm:$0xff] %v1500_v43  ;;  %v486_v44 = vld [vmem:[#allocation2 + $0xe78] sm:$0xff] }
 0x36a   :  { %v522_v43 = vld [vmem:[#allocation2 + $0xf98] sm:$0xff] }
 0x36c   :  { %1645 = vxpose.xlu0.b32.cont [7/16] %v451_v46, 128  ;;  %v1533_v49 = vpop.trf.xlu0  ;;  %v487_v46 = vld [vmem:[#allocation2 + $0xe80] sm:$0xff]  ;;  %v1501_v47 = vpop.trf.xlu1 }
 0x36d   :  { %2569 = vst [vmem:[#allocation5 + $0x508] sm:$0xff] %v1533_v49  ;;  %1677 = vxpose.xlu1.b32.cont [7/16] (narrow) %v452_v48, 64  ;;  %2968 = vst [vmem:[#allocation5 + $0x1180] sm:$0xff] %v1501_v47  ;;  %v488_v48 = vld [vmem:[#allocation2 + $0xe88] sm:$0xff] }
 0x370   :  { %1646 = vxpose.xlu0.b32.cont [8/16] %v453_v50, 128  ;;  %v1534_v53 = vpop.trf.xlu0  ;;  %v489_v50 = vld [vmem:[#allocation2 + $0xe90] sm:$0xff] }
 0x371   :  { %2594 = vst [vmem:[#allocation5 + $0x5d0] sm:$0xff] %v1534_v53  ;;  %1678 = vxpose.xlu1.b32.cont [8/16] (narrow) %v454_v52, 64  ;;  %v491_v53 = vld [vmem:[#allocation2 + $0xea0] sm:$0xff] }
 0x374   :  { %1647 = vxpose.xlu0.b32.cont [9/16] %v455_v54, 128  ;;  %v1535_v57 = vpop.trf.xlu0  ;;  %v492_v54 = vld [vmem:[#allocation2 + $0xea8] sm:$0xff] }
 0x375   :  { %2619 = vst [vmem:[#allocation5 + $0x698] sm:$0xff] %v1535_v57  ;;  %1679 = vxpose.xlu1.b32.cont [9/16] (narrow) %v456_v56, 64  ;;  %v493_v56 = vld [vmem:[#allocation2 + $0xeb0] sm:$0xff]  ;;  %v494_v57 = vld [vmem:[#allocation2 + $0xeb8] sm:$0xff] }
 0x378   :  { %1648 = vxpose.xlu0.b32.cont [10/16] %v457_v58, 128  ;;  %v1536_v60 = vpop.trf.xlu0 }
 0x379   :  { %2644 = vst [vmem:[#allocation5 + $0x760] sm:$0xff] %v1536_v60  ;;  %1680 = vxpose.xlu1.b32.cont [10/16] (narrow) %v458_v59, 64  ;;  %v495_v59 = vld [vmem:[#allocation2 + $0xec0] sm:$0xff]  ;;  %v496_v60 = vld [vmem:[#allocation2 + $0xec8] sm:$0xff] }
 0x37c   :  { %1649 = vxpose.xlu0.b32.cont [11/16] %v459_v61, 128  ;;  %v1537_v63 = vpop.trf.xlu0 }
 0x37d   :  { %2669 = vst [vmem:[#allocation5 + $0x828] sm:$0xff] %v1537_v63  ;;  %1681 = vxpose.xlu1.b32.cont [11/16] (narrow) %v460_v62, 64  ;;  %v497_v62 = vld [vmem:[#allocation2 + $0xed0] sm:$0xff]  ;;  %v498_v63 = vld [vmem:[#allocation2 + $0xed8] sm:$0xff] }
 0x380   :  { %1650 = vxpose.xlu0.b32.cont [12/16] %v461_v0, 128  ;;  %v1538_v2 = vpop.trf.xlu0 }
 0x381   :  { %2694 = vst [vmem:[#allocation5 + $0x8f0] sm:$0xff] %v1538_v2  ;;  %1682 = vxpose.xlu1.b32.cont [12/16] (narrow) %v462_v1, 64  ;;  %v499_v1 = vld [vmem:[#allocation2 + $0xee0] sm:$0xff]  ;;  %v500_v2 = vld [vmem:[#allocation2 + $0xee8] sm:$0xff] }
 0x384   :  { %1651 = vxpose.xlu0.b32.cont [13/16] %v463_v3, 128  ;;  %v1539_v5 = vpop.trf.xlu0 }
 0x385   :  { %2719 = vst [vmem:[#allocation5 + $0x9b8] sm:$0xff] %v1539_v5  ;;  %1683 = vxpose.xlu1.b32.cont [13/16] (narrow) %v464_v4, 64  ;;  %v501_v4 = vld [vmem:[#allocation2 + $0xef0] sm:$0xff]  ;;  %v502_v5 = vld [vmem:[#allocation2 + $0xef8] sm:$0xff] }
 0x388   :  { %1652 = vxpose.xlu0.b32.cont [14/16] %v465_v6, 128  ;;  %v1540_v8 = vpop.trf.xlu0 }
 0x389   :  { %2744 = vst [vmem:[#allocation5 + $0xa80] sm:$0xff] %v1540_v8  ;;  %1684 = vxpose.xlu1.b32.cont [14/16] (narrow) %v466_v7, 64  ;;  %v503_v7 = vld [vmem:[#allocation2 + $0xf00] sm:$0xff]  ;;  %v504_v8 = vld [vmem:[#allocation2 + $0xf08] sm:$0xff] }
 0x38c   :  { %1653 = vxpose.xlu0.b32.cont [15/16] %v467_v9, 128  ;;  %v1541_v11 = vpop.trf.xlu0 }
 0x38d   :  { %2769 = vst [vmem:[#allocation5 + $0xb48] sm:$0xff] %v1541_v11  ;;  %1685 = vxpose.xlu1.b32.cont [15/16] (narrow) %v468_v10, 64  ;;  %v505_v10 = vld [vmem:[#allocation2 + $0xf10] sm:$0xff]  ;;  %v1502_v11 = vpop.trf.xlu1 }
 0x38e   :  { %2993 = vst [vmem:[#allocation5 + $0x1248] sm:$0xff] %v1502_v11 }
 0x390   :  { %1654 = vxpose.xlu0.b32.end [16/16] %v469_v12, 128  ;;  %v1542_v14 = vpop.trf.xlu0  ;;  %v506_v12 = vld [vmem:[#allocation2 + $0xf18] sm:$0xff] }
 0x391   :  { %2794 = vst [vmem:[#allocation5 + $0xc10] sm:$0xff] %v1542_v14  ;;  %1686 = vxpose.xlu1.b32.end [16/16] (narrow) %v470_v13, 64  ;;  %v507_v14 = vld [vmem:[#allocation2 + $0xf20] sm:$0xff] }
 0x394   :  { %1703 = vxpose.xlu0.b32.start [1/16] %v471_v15, 128  ;;  %v1591_v17 = vpop.trf.xlu0  ;;  %v1559_v15 = vpop.trf.xlu1 }
 0x395   :  { %2419 = vst [vmem:[#allocation5 + $0x60] sm:$0xff] %v1591_v17  ;;  %1735 = vxpose.xlu1.b32.start [1/16] (narrow) %v472_v16, 64  ;;  %2819 = vst [vmem:[#allocation5 + $0xcd8] sm:$0xff] %v1559_v15  ;;  %v508_v16 = vld [vmem:[#allocation2 + $0xf28] sm:$0xff] }
 0x398   :  { %1704 = vxpose.xlu0.b32.cont [2/16] %v473_v18, 128  ;;  %v1592_v21 = vpop.trf.xlu0  ;;  %v509_v18 = vld [vmem:[#allocation2 + $0xf30] sm:$0xff]  ;;  %v1560_v19 = vpop.trf.xlu1 }
 0x399   :  { %2445 = vst [vmem:[#allocation5 + $0x128] sm:$0xff] %v1592_v21  ;;  %1736 = vxpose.xlu1.b32.cont [2/16] (narrow) %v474_v20, 64  ;;  %2844 = vst [vmem:[#allocation5 + $0xda0] sm:$0xff] %v1560_v19  ;;  %v510_v20 = vld [vmem:[#allocation2 + $0xf38] sm:$0xff] }
 0x39c   :  { %1705 = vxpose.xlu0.b32.cont [3/16] %v475_v22, 128  ;;  %v1593_v25 = vpop.trf.xlu0  ;;  %v511_v22 = vld [vmem:[#allocation2 + $0xf40] sm:$0xff]  ;;  %v1561_v23 = vpop.trf.xlu1 }
 0x39d   :  { %2470 = vst [vmem:[#allocation5 + $0x1f0] sm:$0xff] %v1593_v25  ;;  %1737 = vxpose.xlu1.b32.cont [3/16] (narrow) %v476_v24, 64  ;;  %2869 = vst [vmem:[#allocation5 + $0xe68] sm:$0xff] %v1561_v23  ;;  %v512_v24 = vld [vmem:[#allocation2 + $0xf48] sm:$0xff] }
 0x3a0   :  { %1706 = vxpose.xlu0.b32.cont [4/16] %v477_v26, 128  ;;  %v1594_v29 = vpop.trf.xlu0  ;;  %v513_v26 = vld [vmem:[#allocation2 + $0xf50] sm:$0xff]  ;;  %v1562_v27 = vpop.trf.xlu1 }
 0x3a1   :  { %2495 = vst [vmem:[#allocation5 + $0x2b8] sm:$0xff] %v1594_v29  ;;  %1738 = vxpose.xlu1.b32.cont [4/16] (narrow) %v478_v28, 64  ;;  %2894 = vst [vmem:[#allocation5 + $0xf30] sm:$0xff] %v1562_v27  ;;  %v514_v28 = vld [vmem:[#allocation2 + $0xf58] sm:$0xff] }
 0x3a4   :  { %1707 = vxpose.xlu0.b32.cont [5/16] %v479_v30, 128  ;;  %v1595_v33 = vpop.trf.xlu0  ;;  %v515_v30 = vld [vmem:[#allocation2 + $0xf60] sm:$0xff]  ;;  %v1563_v31 = vpop.trf.xlu1 }
 0x3a5   :  { %2520 = vst [vmem:[#allocation5 + $0x380] sm:$0xff] %v1595_v33  ;;  %1739 = vxpose.xlu1.b32.cont [5/16] (narrow) %v480_v32, 64  ;;  %2919 = vst [vmem:[#allocation5 + $0xff8] sm:$0xff] %v1563_v31  ;;  %v516_v32 = vld [vmem:[#allocation2 + $0xf68] sm:$0xff] }
 0x3a8   :  { %1708 = vxpose.xlu0.b32.cont [6/16] %v481_v34, 128  ;;  %v1596_v37 = vpop.trf.xlu0  ;;  %v517_v34 = vld [vmem:[#allocation2 + $0xf70] sm:$0xff]  ;;  %v1564_v35 = vpop.trf.xlu1 }
 0x3a9   :  { %2545 = vst [vmem:[#allocation5 + $0x448] sm:$0xff] %v1596_v37  ;;  %1740 = vxpose.xlu1.b32.cont [6/16] (narrow) %v482_v36, 64  ;;  %2944 = vst [vmem:[#allocation5 + $0x10c0] sm:$0xff] %v1564_v35  ;;  %v518_v36 = vld [vmem:[#allocation2 + $0xf78] sm:$0xff] }
 0x3aa   :  { %v554_v35 = vld [vmem:[#allocation2 + $0x1098] sm:$0xff] }
 0x3ac   :  { %1709 = vxpose.xlu0.b32.cont [7/16] %v483_v38, 128  ;;  %v1597_v41 = vpop.trf.xlu0  ;;  %v519_v38 = vld [vmem:[#allocation2 + $0xf80] sm:$0xff]  ;;  %v1565_v39 = vpop.trf.xlu1 }
 0x3ad   :  { %2570 = vst [vmem:[#allocation5 + $0x510] sm:$0xff] %v1597_v41  ;;  %1741 = vxpose.xlu1.b32.cont [7/16] (narrow) %v484_v40, 64  ;;  %2969 = vst [vmem:[#allocation5 + $0x1188] sm:$0xff] %v1565_v39  ;;  %v520_v40 = vld [vmem:[#allocation2 + $0xf88] sm:$0xff] }
 0x3b0   :  { %1710 = vxpose.xlu0.b32.cont [8/16] %v485_v42, 128  ;;  %v1598_v45 = vpop.trf.xlu0  ;;  %v521_v42 = vld [vmem:[#allocation2 + $0xf90] sm:$0xff] }
 0x3b1   :  { %2595 = vst [vmem:[#allocation5 + $0x5d8] sm:$0xff] %v1598_v45  ;;  %1742 = vxpose.xlu1.b32.cont [8/16] (narrow) %v486_v44, 64  ;;  %v523_v45 = vld [vmem:[#allocation2 + $0xfa0] sm:$0xff] }
 0x3b4   :  { %1711 = vxpose.xlu0.b32.cont [9/16] %v487_v46, 128  ;;  %v1599_v49 = vpop.trf.xlu0  ;;  %v524_v46 = vld [vmem:[#allocation2 + $0xfa8] sm:$0xff] }
 0x3b5   :  { %2620 = vst [vmem:[#allocation5 + $0x6a0] sm:$0xff] %v1599_v49  ;;  %1743 = vxpose.xlu1.b32.cont [9/16] (narrow) %v488_v48, 64  ;;  %v525_v48 = vld [vmem:[#allocation2 + $0xfb0] sm:$0xff]  ;;  %v526_v49 = vld [vmem:[#allocation2 + $0xfb8] sm:$0xff] }
 0x3b8   :  { %1712 = vxpose.xlu0.b32.cont [10/16] %v489_v50, 128  ;;  %v1600_v52 = vpop.trf.xlu0 }
 0x3b9   :  { %2645 = vst [vmem:[#allocation5 + $0x768] sm:$0xff] %v1600_v52  ;;  %1744 = vxpose.xlu1.b32.cont [10/16] (narrow) %v490_v51, 64  ;;  %v527_v51 = vld [vmem:[#allocation2 + $0xfc0] sm:$0xff]  ;;  %v528_v52 = vld [vmem:[#allocation2 + $0xfc8] sm:$0xff] }
 0x3bc   :  { %1713 = vxpose.xlu0.b32.cont [11/16] %v491_v53, 128  ;;  %v1601_v55 = vpop.trf.xlu0 }
 0x3bd   :  { %2670 = vst [vmem:[#allocation5 + $0x830] sm:$0xff] %v1601_v55  ;;  %1745 = vxpose.xlu1.b32.cont [11/16] (narrow) %v492_v54, 64  ;;  %v529_v54 = vld [vmem:[#allocation2 + $0xfd0] sm:$0xff]  ;;  %v530_v55 = vld [vmem:[#allocation2 + $0xfd8] sm:$0xff] }
 0x3c0   :  { %1714 = vxpose.xlu0.b32.cont [12/16] %v493_v56, 128  ;;  %v1602_v58 = vpop.trf.xlu0 }
 0x3c1   :  { %2695 = vst [vmem:[#allocation5 + $0x8f8] sm:$0xff] %v1602_v58  ;;  %1746 = vxpose.xlu1.b32.cont [12/16] (narrow) %v494_v57, 64  ;;  %v531_v57 = vld [vmem:[#allocation2 + $0xfe0] sm:$0xff]  ;;  %v532_v58 = vld [vmem:[#allocation2 + $0xfe8] sm:$0xff] }
 0x3c4   :  { %1715 = vxpose.xlu0.b32.cont [13/16] %v495_v59, 128  ;;  %v1603_v61 = vpop.trf.xlu0 }
 0x3c5   :  { %2720 = vst [vmem:[#allocation5 + $0x9c0] sm:$0xff] %v1603_v61  ;;  %1747 = vxpose.xlu1.b32.cont [13/16] (narrow) %v496_v60, 64  ;;  %v533_v60 = vld [vmem:[#allocation2 + $0xff0] sm:$0xff]  ;;  %v534_v61 = vld [vmem:[#allocation2 + $0xff8] sm:$0xff] }
 0x3c8   :  { %1716 = vxpose.xlu0.b32.cont [14/16] %v497_v62, 128  ;;  %v1604_v0 = vpop.trf.xlu0 }
 0x3c9   :  { %2745 = vst [vmem:[#allocation5 + $0xa88] sm:$0xff] %v1604_v0  ;;  %1748 = vxpose.xlu1.b32.cont [14/16] (narrow) %v498_v63, 64  ;;  %v535_v63 = vld [vmem:[#allocation2 + $0x1000] sm:$0xff]  ;;  %v536_v0 = vld [vmem:[#allocation2 + $0x1008] sm:$0xff] }
 0x3cc   :  { %1717 = vxpose.xlu0.b32.cont [15/16] %v499_v1, 128  ;;  %v1605_v3 = vpop.trf.xlu0 }
 0x3cd   :  { %2770 = vst [vmem:[#allocation5 + $0xb50] sm:$0xff] %v1605_v3  ;;  %1749 = vxpose.xlu1.b32.cont [15/16] (narrow) %v500_v2, 64  ;;  %v537_v2 = vld [vmem:[#allocation2 + $0x1010] sm:$0xff]  ;;  %v1566_v3 = vpop.trf.xlu1 }
 0x3ce   :  { %2994 = vst [vmem:[#allocation5 + $0x1250] sm:$0xff] %v1566_v3 }
 0x3d0   :  { %1718 = vxpose.xlu0.b32.end [16/16] %v501_v4, 128  ;;  %v1606_v6 = vpop.trf.xlu0  ;;  %v538_v4 = vld [vmem:[#allocation2 + $0x1018] sm:$0xff] }
 0x3d1   :  { %2795 = vst [vmem:[#allocation5 + $0xc18] sm:$0xff] %v1606_v6  ;;  %1750 = vxpose.xlu1.b32.end [16/16] (narrow) %v502_v5, 64  ;;  %v539_v6 = vld [vmem:[#allocation2 + $0x1020] sm:$0xff] }
 0x3d4   :  { %1767 = vxpose.xlu0.b32.start [1/16] %v503_v7, 128  ;;  %v1655_v9 = vpop.trf.xlu0  ;;  %v1623_v7 = vpop.trf.xlu1 }
 0x3d5   :  { %2420 = vst [vmem:[#allocation5 + $0x68] sm:$0xff] %v1655_v9  ;;  %1799 = vxpose.xlu1.b32.start [1/16] (narrow) %v504_v8, 64  ;;  %2820 = vst [vmem:[#allocation5 + $0xce0] sm:$0xff] %v1623_v7  ;;  %v540_v8 = vld [vmem:[#allocation2 + $0x1028] sm:$0xff] }
 0x3d8   :  { %1768 = vxpose.xlu0.b32.cont [2/16] %v505_v10, 128  ;;  %v1656_v13 = vpop.trf.xlu0  ;;  %v541_v10 = vld [vmem:[#allocation2 + $0x1030] sm:$0xff]  ;;  %v1624_v11 = vpop.trf.xlu1 }
 0x3d9   :  { %2446 = vst [vmem:[#allocation5 + $0x130] sm:$0xff] %v1656_v13  ;;  %1800 = vxpose.xlu1.b32.cont [2/16] (narrow) %v506_v12, 64  ;;  %2845 = vst [vmem:[#allocation5 + $0xda8] sm:$0xff] %v1624_v11  ;;  %v542_v12 = vld [vmem:[#allocation2 + $0x1038] sm:$0xff] }
 0x3dc   :  { %1769 = vxpose.xlu0.b32.cont [3/16] %v507_v14, 128  ;;  %v1657_v17 = vpop.trf.xlu0  ;;  %v543_v14 = vld [vmem:[#allocation2 + $0x1040] sm:$0xff]  ;;  %v1625_v15 = vpop.trf.xlu1 }
 0x3dd   :  { %2471 = vst [vmem:[#allocation5 + $0x1f8] sm:$0xff] %v1657_v17  ;;  %1801 = vxpose.xlu1.b32.cont [3/16] (narrow) %v508_v16, 64  ;;  %2870 = vst [vmem:[#allocation5 + $0xe70] sm:$0xff] %v1625_v15  ;;  %v544_v16 = vld [vmem:[#allocation2 + $0x1048] sm:$0xff] }
 0x3e0   :  { %1770 = vxpose.xlu0.b32.cont [4/16] %v509_v18, 128  ;;  %v1658_v21 = vpop.trf.xlu0  ;;  %v545_v18 = vld [vmem:[#allocation2 + $0x1050] sm:$0xff]  ;;  %v1626_v19 = vpop.trf.xlu1 }
 0x3e1   :  { %2496 = vst [vmem:[#allocation5 + $0x2c0] sm:$0xff] %v1658_v21  ;;  %1802 = vxpose.xlu1.b32.cont [4/16] (narrow) %v510_v20, 64  ;;  %2895 = vst [vmem:[#allocation5 + $0xf38] sm:$0xff] %v1626_v19  ;;  %v546_v20 = vld [vmem:[#allocation2 + $0x1058] sm:$0xff] }
 0x3e4   :  { %1771 = vxpose.xlu0.b32.cont [5/16] %v511_v22, 128  ;;  %v1659_v25 = vpop.trf.xlu0  ;;  %v547_v22 = vld [vmem:[#allocation2 + $0x1060] sm:$0xff]  ;;  %v1627_v23 = vpop.trf.xlu1 }
 0x3e5   :  { %2521 = vst [vmem:[#allocation5 + $0x388] sm:$0xff] %v1659_v25  ;;  %1803 = vxpose.xlu1.b32.cont [5/16] (narrow) %v512_v24, 64  ;;  %2920 = vst [vmem:[#allocation5 + $0x1000] sm:$0xff] %v1627_v23  ;;  %v548_v24 = vld [vmem:[#allocation2 + $0x1068] sm:$0xff] }
 0x3e8   :  { %1772 = vxpose.xlu0.b32.cont [6/16] %v513_v26, 128  ;;  %v1660_v29 = vpop.trf.xlu0  ;;  %v549_v26 = vld [vmem:[#allocation2 + $0x1070] sm:$0xff]  ;;  %v1628_v27 = vpop.trf.xlu1 }
 0x3e9   :  { %2546 = vst [vmem:[#allocation5 + $0x450] sm:$0xff] %v1660_v29  ;;  %1804 = vxpose.xlu1.b32.cont [6/16] (narrow) %v514_v28, 64  ;;  %2945 = vst [vmem:[#allocation5 + $0x10c8] sm:$0xff] %v1628_v27  ;;  %v550_v28 = vld [vmem:[#allocation2 + $0x1078] sm:$0xff] }
 0x3ea   :  { %v586_v27 = vld [vmem:[#allocation2 + $0x1198] sm:$0xff] }
 0x3ec   :  { %1773 = vxpose.xlu0.b32.cont [7/16] %v515_v30, 128  ;;  %v1661_v33 = vpop.trf.xlu0  ;;  %v551_v30 = vld [vmem:[#allocation2 + $0x1080] sm:$0xff]  ;;  %v1629_v31 = vpop.trf.xlu1 }
 0x3ed   :  { %2571 = vst [vmem:[#allocation5 + $0x518] sm:$0xff] %v1661_v33  ;;  %1805 = vxpose.xlu1.b32.cont [7/16] (narrow) %v516_v32, 64  ;;  %2970 = vst [vmem:[#allocation5 + $0x1190] sm:$0xff] %v1629_v31  ;;  %v552_v32 = vld [vmem:[#allocation2 + $0x1088] sm:$0xff] }
 0x3f0   :  { %1774 = vxpose.xlu0.b32.cont [8/16] %v517_v34, 128  ;;  %v1662_v37 = vpop.trf.xlu0  ;;  %v553_v34 = vld [vmem:[#allocation2 + $0x1090] sm:$0xff] }
 0x3f1   :  { %2596 = vst [vmem:[#allocation5 + $0x5e0] sm:$0xff] %v1662_v37  ;;  %1806 = vxpose.xlu1.b32.cont [8/16] (narrow) %v518_v36, 64  ;;  %v555_v37 = vld [vmem:[#allocation2 + $0x10a0] sm:$0xff] }
 0x3f4   :  { %1775 = vxpose.xlu0.b32.cont [9/16] %v519_v38, 128  ;;  %v1663_v41 = vpop.trf.xlu0  ;;  %v556_v38 = vld [vmem:[#allocation2 + $0x10a8] sm:$0xff] }
 0x3f5   :  { %2621 = vst [vmem:[#allocation5 + $0x6a8] sm:$0xff] %v1663_v41  ;;  %1807 = vxpose.xlu1.b32.cont [9/16] (narrow) %v520_v40, 64  ;;  %v557_v40 = vld [vmem:[#allocation2 + $0x10b0] sm:$0xff]  ;;  %v558_v41 = vld [vmem:[#allocation2 + $0x10b8] sm:$0xff] }
 0x3f8   :  { %1776 = vxpose.xlu0.b32.cont [10/16] %v521_v42, 128  ;;  %v1664_v44 = vpop.trf.xlu0 }
 0x3f9   :  { %2646 = vst [vmem:[#allocation5 + $0x770] sm:$0xff] %v1664_v44  ;;  %1808 = vxpose.xlu1.b32.cont [10/16] (narrow) %v522_v43, 64  ;;  %v559_v43 = vld [vmem:[#allocation2 + $0x10c0] sm:$0xff]  ;;  %v560_v44 = vld [vmem:[#allocation2 + $0x10c8] sm:$0xff] }
 0x3fc   :  { %1777 = vxpose.xlu0.b32.cont [11/16] %v523_v45, 128  ;;  %v1665_v47 = vpop.trf.xlu0 }
 0x3fd   :  { %2671 = vst [vmem:[#allocation5 + $0x838] sm:$0xff] %v1665_v47  ;;  %1809 = vxpose.xlu1.b32.cont [11/16] (narrow) %v524_v46, 64  ;;  %v561_v46 = vld [vmem:[#allocation2 + $0x10d0] sm:$0xff]  ;;  %v562_v47 = vld [vmem:[#allocation2 + $0x10d8] sm:$0xff] }
 0x400   :  { %1778 = vxpose.xlu0.b32.cont [12/16] %v525_v48, 128  ;;  %v1666_v50 = vpop.trf.xlu0 }
 0x401   :  { %2696 = vst [vmem:[#allocation5 + $0x900] sm:$0xff] %v1666_v50  ;;  %1810 = vxpose.xlu1.b32.cont [12/16] (narrow) %v526_v49, 64  ;;  %v563_v49 = vld [vmem:[#allocation2 + $0x10e0] sm:$0xff]  ;;  %v564_v50 = vld [vmem:[#allocation2 + $0x10e8] sm:$0xff] }
 0x404   :  { %1779 = vxpose.xlu0.b32.cont [13/16] %v527_v51, 128  ;;  %v1667_v53 = vpop.trf.xlu0 }
 0x405   :  { %2721 = vst [vmem:[#allocation5 + $0x9c8] sm:$0xff] %v1667_v53  ;;  %1811 = vxpose.xlu1.b32.cont [13/16] (narrow) %v528_v52, 64  ;;  %v565_v52 = vld [vmem:[#allocation2 + $0x10f0] sm:$0xff]  ;;  %v566_v53 = vld [vmem:[#allocation2 + $0x10f8] sm:$0xff] }
 0x408   :  { %1780 = vxpose.xlu0.b32.cont [14/16] %v529_v54, 128  ;;  %v1668_v56 = vpop.trf.xlu0 }
 0x409   :  { %2746 = vst [vmem:[#allocation5 + $0xa90] sm:$0xff] %v1668_v56  ;;  %1812 = vxpose.xlu1.b32.cont [14/16] (narrow) %v530_v55, 64  ;;  %v567_v55 = vld [vmem:[#allocation2 + $0x1100] sm:$0xff]  ;;  %v568_v56 = vld [vmem:[#allocation2 + $0x1108] sm:$0xff] }
 0x40c   :  { %1781 = vxpose.xlu0.b32.cont [15/16] %v531_v57, 128  ;;  %v1669_v59 = vpop.trf.xlu0 }
 0x40d   :  { %2771 = vst [vmem:[#allocation5 + $0xb58] sm:$0xff] %v1669_v59  ;;  %1813 = vxpose.xlu1.b32.cont [15/16] (narrow) %v532_v58, 64  ;;  %v569_v58 = vld [vmem:[#allocation2 + $0x1110] sm:$0xff]  ;;  %v1630_v59 = vpop.trf.xlu1 }
 0x40e   :  { %2995 = vst [vmem:[#allocation5 + $0x1258] sm:$0xff] %v1630_v59 }
 0x410   :  { %1782 = vxpose.xlu0.b32.end [16/16] %v533_v60, 128  ;;  %v1670_v62 = vpop.trf.xlu0  ;;  %v570_v60 = vld [vmem:[#allocation2 + $0x1118] sm:$0xff] }
 0x411   :  { %2796 = vst [vmem:[#allocation5 + $0xc20] sm:$0xff] %v1670_v62  ;;  %1814 = vxpose.xlu1.b32.end [16/16] (narrow) %v534_v61, 64  ;;  %v571_v62 = vld [vmem:[#allocation2 + $0x1120] sm:$0xff] }
 0x414   :  { %1831 = vxpose.xlu0.b32.start [1/16] %v535_v63, 128  ;;  %v1719_v1 = vpop.trf.xlu0  ;;  %v1687_v63 = vpop.trf.xlu1 }
 0x415   :  { %2421 = vst [vmem:[#allocation5 + $0x70] sm:$0xff] %v1719_v1  ;;  %1863 = vxpose.xlu1.b32.start [1/16] (narrow) %v536_v0, 64  ;;  %2821 = vst [vmem:[#allocation5 + $0xce8] sm:$0xff] %v1687_v63  ;;  %v572_v0 = vld [vmem:[#allocation2 + $0x1128] sm:$0xff] }
 0x418   :  { %1832 = vxpose.xlu0.b32.cont [2/16] %v537_v2, 128  ;;  %v1720_v5 = vpop.trf.xlu0  ;;  %v573_v2 = vld [vmem:[#allocation2 + $0x1130] sm:$0xff]  ;;  %v1688_v3 = vpop.trf.xlu1 }
 0x419   :  { %2447 = vst [vmem:[#allocation5 + $0x138] sm:$0xff] %v1720_v5  ;;  %1864 = vxpose.xlu1.b32.cont [2/16] (narrow) %v538_v4, 64  ;;  %2846 = vst [vmem:[#allocation5 + $0xdb0] sm:$0xff] %v1688_v3  ;;  %v574_v4 = vld [vmem:[#allocation2 + $0x1138] sm:$0xff] }
 0x41c   :  { %1833 = vxpose.xlu0.b32.cont [3/16] %v539_v6, 128  ;;  %v1721_v9 = vpop.trf.xlu0  ;;  %v575_v6 = vld [vmem:[#allocation2 + $0x1140] sm:$0xff]  ;;  %v1689_v7 = vpop.trf.xlu1 }
 0x41d   :  { %2472 = vst [vmem:[#allocation5 + $0x200] sm:$0xff] %v1721_v9  ;;  %1865 = vxpose.xlu1.b32.cont [3/16] (narrow) %v540_v8, 64  ;;  %2871 = vst [vmem:[#allocation5 + $0xe78] sm:$0xff] %v1689_v7  ;;  %v576_v8 = vld [vmem:[#allocation2 + $0x1148] sm:$0xff] }
 0x420   :  { %1834 = vxpose.xlu0.b32.cont [4/16] %v541_v10, 128  ;;  %v1722_v13 = vpop.trf.xlu0  ;;  %v577_v10 = vld [vmem:[#allocation2 + $0x1150] sm:$0xff]  ;;  %v1690_v11 = vpop.trf.xlu1 }
 0x421   :  { %2497 = vst [vmem:[#allocation5 + $0x2c8] sm:$0xff] %v1722_v13  ;;  %1866 = vxpose.xlu1.b32.cont [4/16] (narrow) %v542_v12, 64  ;;  %2896 = vst [vmem:[#allocation5 + $0xf40] sm:$0xff] %v1690_v11  ;;  %v578_v12 = vld [vmem:[#allocation2 + $0x1158] sm:$0xff] }
 0x424   :  { %1835 = vxpose.xlu0.b32.cont [5/16] %v543_v14, 128  ;;  %v1723_v17 = vpop.trf.xlu0  ;;  %v579_v14 = vld [vmem:[#allocation2 + $0x1160] sm:$0xff]  ;;  %v1691_v15 = vpop.trf.xlu1 }
 0x425   :  { %2522 = vst [vmem:[#allocation5 + $0x390] sm:$0xff] %v1723_v17  ;;  %1867 = vxpose.xlu1.b32.cont [5/16] (narrow) %v544_v16, 64  ;;  %2921 = vst [vmem:[#allocation5 + $0x1008] sm:$0xff] %v1691_v15  ;;  %v580_v16 = vld [vmem:[#allocation2 + $0x1168] sm:$0xff] }
 0x428   :  { %1836 = vxpose.xlu0.b32.cont [6/16] %v545_v18, 128  ;;  %v1724_v21 = vpop.trf.xlu0  ;;  %v581_v18 = vld [vmem:[#allocation2 + $0x1170] sm:$0xff]  ;;  %v1692_v19 = vpop.trf.xlu1 }
 0x429   :  { %2547 = vst [vmem:[#allocation5 + $0x458] sm:$0xff] %v1724_v21  ;;  %1868 = vxpose.xlu1.b32.cont [6/16] (narrow) %v546_v20, 64  ;;  %2946 = vst [vmem:[#allocation5 + $0x10d0] sm:$0xff] %v1692_v19  ;;  %v582_v20 = vld [vmem:[#allocation2 + $0x1178] sm:$0xff] }
 0x42a   :  { %v618_v19 = vld [vmem:[#allocation2 + $0x1298] sm:$0xff] }
 0x42c   :  { %1837 = vxpose.xlu0.b32.cont [7/16] %v547_v22, 128  ;;  %v1725_v25 = vpop.trf.xlu0  ;;  %v583_v22 = vld [vmem:[#allocation2 + $0x1180] sm:$0xff]  ;;  %v1693_v23 = vpop.trf.xlu1 }
 0x42d   :  { %2572 = vst [vmem:[#allocation5 + $0x520] sm:$0xff] %v1725_v25  ;;  %1869 = vxpose.xlu1.b32.cont [7/16] (narrow) %v548_v24, 64  ;;  %2971 = vst [vmem:[#allocation5 + $0x1198] sm:$0xff] %v1693_v23  ;;  %v584_v24 = vld [vmem:[#allocation2 + $0x1188] sm:$0xff] }
 0x430   :  { %1838 = vxpose.xlu0.b32.cont [8/16] %v549_v26, 128  ;;  %v1726_v29 = vpop.trf.xlu0  ;;  %v585_v26 = vld [vmem:[#allocation2 + $0x1190] sm:$0xff] }
 0x431   :  { %2597 = vst [vmem:[#allocation5 + $0x5e8] sm:$0xff] %v1726_v29  ;;  %1870 = vxpose.xlu1.b32.cont [8/16] (narrow) %v550_v28, 64  ;;  %v587_v29 = vld [vmem:[#allocation2 + $0x11a0] sm:$0xff] }
 0x434   :  { %1839 = vxpose.xlu0.b32.cont [9/16] %v551_v30, 128  ;;  %v1727_v33 = vpop.trf.xlu0  ;;  %v588_v30 = vld [vmem:[#allocation2 + $0x11a8] sm:$0xff] }
 0x435   :  { %2622 = vst [vmem:[#allocation5 + $0x6b0] sm:$0xff] %v1727_v33  ;;  %1871 = vxpose.xlu1.b32.cont [9/16] (narrow) %v552_v32, 64  ;;  %v589_v32 = vld [vmem:[#allocation2 + $0x11b0] sm:$0xff]  ;;  %v590_v33 = vld [vmem:[#allocation2 + $0x11b8] sm:$0xff] }
 0x438   :  { %1840 = vxpose.xlu0.b32.cont [10/16] %v553_v34, 128  ;;  %v1728_v36 = vpop.trf.xlu0 }
 0x439   :  { %2647 = vst [vmem:[#allocation5 + $0x778] sm:$0xff] %v1728_v36  ;;  %1872 = vxpose.xlu1.b32.cont [10/16] (narrow) %v554_v35, 64  ;;  %v591_v35 = vld [vmem:[#allocation2 + $0x11c0] sm:$0xff]  ;;  %v592_v36 = vld [vmem:[#allocation2 + $0x11c8] sm:$0xff] }
 0x43c   :  { %1841 = vxpose.xlu0.b32.cont [11/16] %v555_v37, 128  ;;  %v1729_v39 = vpop.trf.xlu0 }
 0x43d   :  { %2672 = vst [vmem:[#allocation5 + $0x840] sm:$0xff] %v1729_v39  ;;  %1873 = vxpose.xlu1.b32.cont [11/16] (narrow) %v556_v38, 64  ;;  %v593_v38 = vld [vmem:[#allocation2 + $0x11d0] sm:$0xff]  ;;  %v594_v39 = vld [vmem:[#allocation2 + $0x11d8] sm:$0xff] }
 0x440   :  { %1842 = vxpose.xlu0.b32.cont [12/16] %v557_v40, 128  ;;  %v1730_v42 = vpop.trf.xlu0 }
 0x441   :  { %2697 = vst [vmem:[#allocation5 + $0x908] sm:$0xff] %v1730_v42  ;;  %1874 = vxpose.xlu1.b32.cont [12/16] (narrow) %v558_v41, 64  ;;  %v595_v41 = vld [vmem:[#allocation2 + $0x11e0] sm:$0xff]  ;;  %v596_v42 = vld [vmem:[#allocation2 + $0x11e8] sm:$0xff] }
 0x444   :  { %1843 = vxpose.xlu0.b32.cont [13/16] %v559_v43, 128  ;;  %v1731_v45 = vpop.trf.xlu0 }
 0x445   :  { %2722 = vst [vmem:[#allocation5 + $0x9d0] sm:$0xff] %v1731_v45  ;;  %1875 = vxpose.xlu1.b32.cont [13/16] (narrow) %v560_v44, 64  ;;  %v597_v44 = vld [vmem:[#allocation2 + $0x11f0] sm:$0xff]  ;;  %v598_v45 = vld [vmem:[#allocation2 + $0x11f8] sm:$0xff] }
 0x448   :  { %1844 = vxpose.xlu0.b32.cont [14/16] %v561_v46, 128  ;;  %v1732_v48 = vpop.trf.xlu0 }
 0x449   :  { %2747 = vst [vmem:[#allocation5 + $0xa98] sm:$0xff] %v1732_v48  ;;  %1876 = vxpose.xlu1.b32.cont [14/16] (narrow) %v562_v47, 64  ;;  %v599_v47 = vld [vmem:[#allocation2 + $0x1200] sm:$0xff]  ;;  %v600_v48 = vld [vmem:[#allocation2 + $0x1208] sm:$0xff] }
 0x44c   :  { %1845 = vxpose.xlu0.b32.cont [15/16] %v563_v49, 128  ;;  %v1733_v51 = vpop.trf.xlu0 }
 0x44d   :  { %2772 = vst [vmem:[#allocation5 + $0xb60] sm:$0xff] %v1733_v51  ;;  %1877 = vxpose.xlu1.b32.cont [15/16] (narrow) %v564_v50, 64  ;;  %v601_v50 = vld [vmem:[#allocation2 + $0x1210] sm:$0xff]  ;;  %v1694_v51 = vpop.trf.xlu1 }
 0x44e   :  { %2996 = vst [vmem:[#allocation5 + $0x1260] sm:$0xff] %v1694_v51 }
 0x450   :  { %1846 = vxpose.xlu0.b32.end [16/16] %v565_v52, 128  ;;  %v1734_v54 = vpop.trf.xlu0  ;;  %v602_v52 = vld [vmem:[#allocation2 + $0x1218] sm:$0xff] }
 0x451   :  { %2797 = vst [vmem:[#allocation5 + $0xc28] sm:$0xff] %v1734_v54  ;;  %1878 = vxpose.xlu1.b32.end [16/16] (narrow) %v566_v53, 64  ;;  %v603_v54 = vld [vmem:[#allocation2 + $0x1220] sm:$0xff] }
 0x454   :  { %1895 = vxpose.xlu0.b32.start [1/16] %v567_v55, 128  ;;  %v1783_v57 = vpop.trf.xlu0  ;;  %v1751_v55 = vpop.trf.xlu1 }
 0x455   :  { %2422 = vst [vmem:[#allocation5 + $0x78] sm:$0xff] %v1783_v57  ;;  %1927 = vxpose.xlu1.b32.start [1/16] (narrow) %v568_v56, 64  ;;  %2822 = vst [vmem:[#allocation5 + $0xcf0] sm:$0xff] %v1751_v55  ;;  %v604_v56 = vld [vmem:[#allocation2 + $0x1228] sm:$0xff] }
 0x458   :  { %1896 = vxpose.xlu0.b32.cont [2/16] %v569_v58, 128  ;;  %v1784_v61 = vpop.trf.xlu0  ;;  %v605_v58 = vld [vmem:[#allocation2 + $0x1230] sm:$0xff]  ;;  %v1752_v59 = vpop.trf.xlu1 }
 0x459   :  { %2448 = vst [vmem:[#allocation5 + $0x140] sm:$0xff] %v1784_v61  ;;  %1928 = vxpose.xlu1.b32.cont [2/16] (narrow) %v570_v60, 64  ;;  %2847 = vst [vmem:[#allocation5 + $0xdb8] sm:$0xff] %v1752_v59  ;;  %v606_v60 = vld [vmem:[#allocation2 + $0x1238] sm:$0xff] }
 0x45c   :  { %1897 = vxpose.xlu0.b32.cont [3/16] %v571_v62, 128  ;;  %v1785_v1 = vpop.trf.xlu0  ;;  %v607_v62 = vld [vmem:[#allocation2 + $0x1240] sm:$0xff]  ;;  %v1753_v63 = vpop.trf.xlu1 }
 0x45d   :  { %2473 = vst [vmem:[#allocation5 + $0x208] sm:$0xff] %v1785_v1  ;;  %1929 = vxpose.xlu1.b32.cont [3/16] (narrow) %v572_v0, 64  ;;  %2872 = vst [vmem:[#allocation5 + $0xe80] sm:$0xff] %v1753_v63  ;;  %v608_v0 = vld [vmem:[#allocation2 + $0x1248] sm:$0xff] }
 0x460   :  { %1898 = vxpose.xlu0.b32.cont [4/16] %v573_v2, 128  ;;  %v1786_v5 = vpop.trf.xlu0  ;;  %v609_v2 = vld [vmem:[#allocation2 + $0x1250] sm:$0xff]  ;;  %v1754_v3 = vpop.trf.xlu1 }
 0x461   :  { %2498 = vst [vmem:[#allocation5 + $0x2d0] sm:$0xff] %v1786_v5  ;;  %1930 = vxpose.xlu1.b32.cont [4/16] (narrow) %v574_v4, 64  ;;  %2897 = vst [vmem:[#allocation5 + $0xf48] sm:$0xff] %v1754_v3  ;;  %v610_v4 = vld [vmem:[#allocation2 + $0x1258] sm:$0xff] }
 0x464   :  { %1899 = vxpose.xlu0.b32.cont [5/16] %v575_v6, 128  ;;  %v1787_v9 = vpop.trf.xlu0  ;;  %v611_v6 = vld [vmem:[#allocation2 + $0x1260] sm:$0xff]  ;;  %v1755_v7 = vpop.trf.xlu1 }
 0x465   :  { %2523 = vst [vmem:[#allocation5 + $0x398] sm:$0xff] %v1787_v9  ;;  %1931 = vxpose.xlu1.b32.cont [5/16] (narrow) %v576_v8, 64  ;;  %2922 = vst [vmem:[#allocation5 + $0x1010] sm:$0xff] %v1755_v7  ;;  %v612_v8 = vld [vmem:[#allocation2 + $0x1268] sm:$0xff] }
 0x468   :  { %1900 = vxpose.xlu0.b32.cont [6/16] %v577_v10, 128  ;;  %v1788_v13 = vpop.trf.xlu0  ;;  %v613_v10 = vld [vmem:[#allocation2 + $0x1270] sm:$0xff]  ;;  %v1756_v11 = vpop.trf.xlu1 }
 0x469   :  { %2548 = vst [vmem:[#allocation5 + $0x460] sm:$0xff] %v1788_v13  ;;  %1932 = vxpose.xlu1.b32.cont [6/16] (narrow) %v578_v12, 64  ;;  %2947 = vst [vmem:[#allocation5 + $0x10d8] sm:$0xff] %v1756_v11  ;;  %v614_v12 = vld [vmem:[#allocation2 + $0x1278] sm:$0xff] }
 0x46a   :  { %v650_v11 = vld [vmem:[#allocation2 + $0x1398] sm:$0xff] }
 0x46c   :  { %1901 = vxpose.xlu0.b32.cont [7/16] %v579_v14, 128  ;;  %v1789_v17 = vpop.trf.xlu0  ;;  %v615_v14 = vld [vmem:[#allocation2 + $0x1280] sm:$0xff]  ;;  %v1757_v15 = vpop.trf.xlu1 }
 0x46d   :  { %2573 = vst [vmem:[#allocation5 + $0x528] sm:$0xff] %v1789_v17  ;;  %1933 = vxpose.xlu1.b32.cont [7/16] (narrow) %v580_v16, 64  ;;  %2972 = vst [vmem:[#allocation5 + $0x11a0] sm:$0xff] %v1757_v15  ;;  %v616_v16 = vld [vmem:[#allocation2 + $0x1288] sm:$0xff] }
 0x470   :  { %1902 = vxpose.xlu0.b32.cont [8/16] %v581_v18, 128  ;;  %v1790_v21 = vpop.trf.xlu0  ;;  %v617_v18 = vld [vmem:[#allocation2 + $0x1290] sm:$0xff] }
 0x471   :  { %2598 = vst [vmem:[#allocation5 + $0x5f0] sm:$0xff] %v1790_v21  ;;  %1934 = vxpose.xlu1.b32.cont [8/16] (narrow) %v582_v20, 64  ;;  %v619_v21 = vld [vmem:[#allocation2 + $0x12a0] sm:$0xff] }
 0x474   :  { %1903 = vxpose.xlu0.b32.cont [9/16] %v583_v22, 128  ;;  %v1791_v25 = vpop.trf.xlu0  ;;  %v620_v22 = vld [vmem:[#allocation2 + $0x12a8] sm:$0xff] }
 0x475   :  { %2623 = vst [vmem:[#allocation5 + $0x6b8] sm:$0xff] %v1791_v25  ;;  %1935 = vxpose.xlu1.b32.cont [9/16] (narrow) %v584_v24, 64  ;;  %v621_v24 = vld [vmem:[#allocation2 + $0x12b0] sm:$0xff]  ;;  %v622_v25 = vld [vmem:[#allocation2 + $0x12b8] sm:$0xff] }
 0x478   :  { %1904 = vxpose.xlu0.b32.cont [10/16] %v585_v26, 128  ;;  %v1792_v28 = vpop.trf.xlu0 }
 0x479   :  { %2648 = vst [vmem:[#allocation5 + $0x780] sm:$0xff] %v1792_v28  ;;  %1936 = vxpose.xlu1.b32.cont [10/16] (narrow) %v586_v27, 64  ;;  %v623_v27 = vld [vmem:[#allocation2 + $0x12c0] sm:$0xff]  ;;  %v624_v28 = vld [vmem:[#allocation2 + $0x12c8] sm:$0xff] }
 0x47c   :  { %1905 = vxpose.xlu0.b32.cont [11/16] %v587_v29, 128  ;;  %v1793_v31 = vpop.trf.xlu0 }
 0x47d   :  { %2673 = vst [vmem:[#allocation5 + $0x848] sm:$0xff] %v1793_v31  ;;  %1937 = vxpose.xlu1.b32.cont [11/16] (narrow) %v588_v30, 64  ;;  %v625_v30 = vld [vmem:[#allocation2 + $0x12d0] sm:$0xff]  ;;  %v626_v31 = vld [vmem:[#allocation2 + $0x12d8] sm:$0xff] }
 0x480   :  { %1906 = vxpose.xlu0.b32.cont [12/16] %v589_v32, 128  ;;  %v1794_v34 = vpop.trf.xlu0 }
 0x481   :  { %2698 = vst [vmem:[#allocation5 + $0x910] sm:$0xff] %v1794_v34  ;;  %1938 = vxpose.xlu1.b32.cont [12/16] (narrow) %v590_v33, 64  ;;  %v627_v33 = vld [vmem:[#allocation2 + $0x12e0] sm:$0xff]  ;;  %v628_v34 = vld [vmem:[#allocation2 + $0x12e8] sm:$0xff] }
 0x484   :  { %1907 = vxpose.xlu0.b32.cont [13/16] %v591_v35, 128  ;;  %v1795_v37 = vpop.trf.xlu0 }
 0x485   :  { %2723 = vst [vmem:[#allocation5 + $0x9d8] sm:$0xff] %v1795_v37  ;;  %1939 = vxpose.xlu1.b32.cont [13/16] (narrow) %v592_v36, 64  ;;  %v629_v36 = vld [vmem:[#allocation2 + $0x12f0] sm:$0xff]  ;;  %v630_v37 = vld [vmem:[#allocation2 + $0x12f8] sm:$0xff] }
 0x488   :  { %1908 = vxpose.xlu0.b32.cont [14/16] %v593_v38, 128  ;;  %v1796_v40 = vpop.trf.xlu0 }
 0x489   :  { %2748 = vst [vmem:[#allocation5 + $0xaa0] sm:$0xff] %v1796_v40  ;;  %1940 = vxpose.xlu1.b32.cont [14/16] (narrow) %v594_v39, 64  ;;  %v631_v39 = vld [vmem:[#allocation2 + $0x1300] sm:$0xff]  ;;  %v632_v40 = vld [vmem:[#allocation2 + $0x1308] sm:$0xff] }
 0x48c   :  { %1909 = vxpose.xlu0.b32.cont [15/16] %v595_v41, 128  ;;  %v1797_v43 = vpop.trf.xlu0 }
 0x48d   :  { %2773 = vst [vmem:[#allocation5 + $0xb68] sm:$0xff] %v1797_v43  ;;  %1941 = vxpose.xlu1.b32.cont [15/16] (narrow) %v596_v42, 64  ;;  %v633_v42 = vld [vmem:[#allocation2 + $0x1310] sm:$0xff]  ;;  %v1758_v43 = vpop.trf.xlu1 }
 0x48e   :  { %2997 = vst [vmem:[#allocation5 + $0x1268] sm:$0xff] %v1758_v43 }
 0x490   :  { %1910 = vxpose.xlu0.b32.end [16/16] %v597_v44, 128  ;;  %v1798_v46 = vpop.trf.xlu0  ;;  %v634_v44 = vld [vmem:[#allocation2 + $0x1318] sm:$0xff] }
 0x491   :  { %2798 = vst [vmem:[#allocation5 + $0xc30] sm:$0xff] %v1798_v46  ;;  %1942 = vxpose.xlu1.b32.end [16/16] (narrow) %v598_v45, 64  ;;  %v635_v46 = vld [vmem:[#allocation2 + $0x1320] sm:$0xff] }
 0x494   :  { %1959 = vxpose.xlu0.b32.start [1/16] %v599_v47, 128  ;;  %v1847_v49 = vpop.trf.xlu0  ;;  %v1815_v47 = vpop.trf.xlu1 }
 0x495   :  { %2423 = vst [vmem:[#allocation5 + $0x80] sm:$0xff] %v1847_v49  ;;  %1991 = vxpose.xlu1.b32.start [1/16] (narrow) %v600_v48, 64  ;;  %2823 = vst [vmem:[#allocation5 + $0xcf8] sm:$0xff] %v1815_v47  ;;  %v636_v48 = vld [vmem:[#allocation2 + $0x1328] sm:$0xff] }
 0x498   :  { %1960 = vxpose.xlu0.b32.cont [2/16] %v601_v50, 128  ;;  %v1848_v53 = vpop.trf.xlu0  ;;  %v637_v50 = vld [vmem:[#allocation2 + $0x1330] sm:$0xff]  ;;  %v1816_v51 = vpop.trf.xlu1 }
 0x499   :  { %2449 = vst [vmem:[#allocation5 + $0x148] sm:$0xff] %v1848_v53  ;;  %1992 = vxpose.xlu1.b32.cont [2/16] (narrow) %v602_v52, 64  ;;  %2848 = vst [vmem:[#allocation5 + $0xdc0] sm:$0xff] %v1816_v51  ;;  %v638_v52 = vld [vmem:[#allocation2 + $0x1338] sm:$0xff] }
 0x49c   :  { %1961 = vxpose.xlu0.b32.cont [3/16] %v603_v54, 128  ;;  %v1849_v57 = vpop.trf.xlu0  ;;  %v639_v54 = vld [vmem:[#allocation2 + $0x1340] sm:$0xff]  ;;  %v1817_v55 = vpop.trf.xlu1 }
 0x49d   :  { %2474 = vst [vmem:[#allocation5 + $0x210] sm:$0xff] %v1849_v57  ;;  %1993 = vxpose.xlu1.b32.cont [3/16] (narrow) %v604_v56, 64  ;;  %2873 = vst [vmem:[#allocation5 + $0xe88] sm:$0xff] %v1817_v55  ;;  %v640_v56 = vld [vmem:[#allocation2 + $0x1348] sm:$0xff] }
 0x4a0   :  { %1962 = vxpose.xlu0.b32.cont [4/16] %v605_v58, 128  ;;  %v1850_v61 = vpop.trf.xlu0  ;;  %v641_v58 = vld [vmem:[#allocation2 + $0x1350] sm:$0xff]  ;;  %v1818_v59 = vpop.trf.xlu1 }
 0x4a1   :  { %2499 = vst [vmem:[#allocation5 + $0x2d8] sm:$0xff] %v1850_v61  ;;  %1994 = vxpose.xlu1.b32.cont [4/16] (narrow) %v606_v60, 64  ;;  %2898 = vst [vmem:[#allocation5 + $0xf50] sm:$0xff] %v1818_v59  ;;  %v642_v60 = vld [vmem:[#allocation2 + $0x1358] sm:$0xff] }
 0x4a4   :  { %1963 = vxpose.xlu0.b32.cont [5/16] %v607_v62, 128  ;;  %v1851_v1 = vpop.trf.xlu0  ;;  %v643_v62 = vld [vmem:[#allocation2 + $0x1360] sm:$0xff]  ;;  %v1819_v63 = vpop.trf.xlu1 }
 0x4a5   :  { %2524 = vst [vmem:[#allocation5 + $0x3a0] sm:$0xff] %v1851_v1  ;;  %1995 = vxpose.xlu1.b32.cont [5/16] (narrow) %v608_v0, 64  ;;  %2923 = vst [vmem:[#allocation5 + $0x1018] sm:$0xff] %v1819_v63  ;;  %v644_v0 = vld [vmem:[#allocation2 + $0x1368] sm:$0xff] }
 0x4a8   :  { %1964 = vxpose.xlu0.b32.cont [6/16] %v609_v2, 128  ;;  %v1852_v5 = vpop.trf.xlu0  ;;  %v645_v2 = vld [vmem:[#allocation2 + $0x1370] sm:$0xff]  ;;  %v1820_v3 = vpop.trf.xlu1 }
 0x4a9   :  { %2549 = vst [vmem:[#allocation5 + $0x468] sm:$0xff] %v1852_v5  ;;  %1996 = vxpose.xlu1.b32.cont [6/16] (narrow) %v610_v4, 64  ;;  %2948 = vst [vmem:[#allocation5 + $0x10e0] sm:$0xff] %v1820_v3  ;;  %v646_v4 = vld [vmem:[#allocation2 + $0x1378] sm:$0xff] }
 0x4aa   :  { %v682_v3 = vld [vmem:[#allocation2 + $0x1498] sm:$0xff] }
 0x4ac   :  { %1965 = vxpose.xlu0.b32.cont [7/16] %v611_v6, 128  ;;  %v1853_v9 = vpop.trf.xlu0  ;;  %v647_v6 = vld [vmem:[#allocation2 + $0x1380] sm:$0xff]  ;;  %v1821_v7 = vpop.trf.xlu1 }
 0x4ad   :  { %2574 = vst [vmem:[#allocation5 + $0x530] sm:$0xff] %v1853_v9  ;;  %1997 = vxpose.xlu1.b32.cont [7/16] (narrow) %v612_v8, 64  ;;  %2973 = vst [vmem:[#allocation5 + $0x11a8] sm:$0xff] %v1821_v7  ;;  %v648_v8 = vld [vmem:[#allocation2 + $0x1388] sm:$0xff] }
 0x4b0   :  { %1966 = vxpose.xlu0.b32.cont [8/16] %v613_v10, 128  ;;  %v1854_v13 = vpop.trf.xlu0  ;;  %v649_v10 = vld [vmem:[#allocation2 + $0x1390] sm:$0xff] }
 0x4b1   :  { %2599 = vst [vmem:[#allocation5 + $0x5f8] sm:$0xff] %v1854_v13  ;;  %1998 = vxpose.xlu1.b32.cont [8/16] (narrow) %v614_v12, 64  ;;  %v651_v13 = vld [vmem:[#allocation2 + $0x13a0] sm:$0xff] }
 0x4b4   :  { %1967 = vxpose.xlu0.b32.cont [9/16] %v615_v14, 128  ;;  %v1855_v17 = vpop.trf.xlu0  ;;  %v652_v14 = vld [vmem:[#allocation2 + $0x13a8] sm:$0xff] }
 0x4b5   :  { %2624 = vst [vmem:[#allocation5 + $0x6c0] sm:$0xff] %v1855_v17  ;;  %1999 = vxpose.xlu1.b32.cont [9/16] (narrow) %v616_v16, 64  ;;  %v653_v16 = vld [vmem:[#allocation2 + $0x13b0] sm:$0xff]  ;;  %v654_v17 = vld [vmem:[#allocation2 + $0x13b8] sm:$0xff] }
 0x4b8   :  { %1968 = vxpose.xlu0.b32.cont [10/16] %v617_v18, 128  ;;  %v1856_v20 = vpop.trf.xlu0 }
 0x4b9   :  { %2649 = vst [vmem:[#allocation5 + $0x788] sm:$0xff] %v1856_v20  ;;  %2000 = vxpose.xlu1.b32.cont [10/16] (narrow) %v618_v19, 64  ;;  %v655_v19 = vld [vmem:[#allocation2 + $0x13c0] sm:$0xff]  ;;  %v656_v20 = vld [vmem:[#allocation2 + $0x13c8] sm:$0xff] }
 0x4bc   :  { %1969 = vxpose.xlu0.b32.cont [11/16] %v619_v21, 128  ;;  %v1857_v23 = vpop.trf.xlu0 }
 0x4bd   :  { %2674 = vst [vmem:[#allocation5 + $0x850] sm:$0xff] %v1857_v23  ;;  %2001 = vxpose.xlu1.b32.cont [11/16] (narrow) %v620_v22, 64  ;;  %v657_v22 = vld [vmem:[#allocation2 + $0x13d0] sm:$0xff]  ;;  %v658_v23 = vld [vmem:[#allocation2 + $0x13d8] sm:$0xff] }
 0x4c0   :  { %1970 = vxpose.xlu0.b32.cont [12/16] %v621_v24, 128  ;;  %v1858_v26 = vpop.trf.xlu0 }
 0x4c1   :  { %2699 = vst [vmem:[#allocation5 + $0x918] sm:$0xff] %v1858_v26  ;;  %2002 = vxpose.xlu1.b32.cont [12/16] (narrow) %v622_v25, 64  ;;  %v659_v25 = vld [vmem:[#allocation2 + $0x13e0] sm:$0xff]  ;;  %v660_v26 = vld [vmem:[#allocation2 + $0x13e8] sm:$0xff] }
 0x4c4   :  { %1971 = vxpose.xlu0.b32.cont [13/16] %v623_v27, 128  ;;  %v1859_v29 = vpop.trf.xlu0 }
 0x4c5   :  { %2724 = vst [vmem:[#allocation5 + $0x9e0] sm:$0xff] %v1859_v29  ;;  %2003 = vxpose.xlu1.b32.cont [13/16] (narrow) %v624_v28, 64  ;;  %v661_v28 = vld [vmem:[#allocation2 + $0x13f0] sm:$0xff]  ;;  %v662_v29 = vld [vmem:[#allocation2 + $0x13f8] sm:$0xff] }
 0x4c8   :  { %1972 = vxpose.xlu0.b32.cont [14/16] %v625_v30, 128  ;;  %v1860_v32 = vpop.trf.xlu0 }
 0x4c9   :  { %2749 = vst [vmem:[#allocation5 + $0xaa8] sm:$0xff] %v1860_v32  ;;  %2004 = vxpose.xlu1.b32.cont [14/16] (narrow) %v626_v31, 64  ;;  %v663_v31 = vld [vmem:[#allocation2 + $0x1400] sm:$0xff]  ;;  %v664_v32 = vld [vmem:[#allocation2 + $0x1408] sm:$0xff] }
 0x4cc   :  { %1973 = vxpose.xlu0.b32.cont [15/16] %v627_v33, 128  ;;  %v1861_v35 = vpop.trf.xlu0 }
 0x4cd   :  { %2774 = vst [vmem:[#allocation5 + $0xb70] sm:$0xff] %v1861_v35  ;;  %2005 = vxpose.xlu1.b32.cont [15/16] (narrow) %v628_v34, 64  ;;  %v665_v34 = vld [vmem:[#allocation2 + $0x1410] sm:$0xff]  ;;  %v1822_v35 = vpop.trf.xlu1 }
 0x4ce   :  { %2998 = vst [vmem:[#allocation5 + $0x1270] sm:$0xff] %v1822_v35 }
 0x4d0   :  { %1974 = vxpose.xlu0.b32.end [16/16] %v629_v36, 128  ;;  %v1862_v38 = vpop.trf.xlu0  ;;  %v666_v36 = vld [vmem:[#allocation2 + $0x1418] sm:$0xff] }
 0x4d1   :  { %2799 = vst [vmem:[#allocation5 + $0xc38] sm:$0xff] %v1862_v38  ;;  %2006 = vxpose.xlu1.b32.end [16/16] (narrow) %v630_v37, 64  ;;  %v667_v38 = vld [vmem:[#allocation2 + $0x1420] sm:$0xff] }
 0x4d4   :  { %2023 = vxpose.xlu0.b32.start [1/16] %v631_v39, 128  ;;  %v1911_v41 = vpop.trf.xlu0  ;;  %v1879_v39 = vpop.trf.xlu1 }
 0x4d5   :  { %2424 = vst [vmem:[#allocation5 + $0x88] sm:$0xff] %v1911_v41  ;;  %2055 = vxpose.xlu1.b32.start [1/16] (narrow) %v632_v40, 64  ;;  %2824 = vst [vmem:[#allocation5 + $0xd00] sm:$0xff] %v1879_v39  ;;  %v668_v40 = vld [vmem:[#allocation2 + $0x1428] sm:$0xff] }
 0x4d8   :  { %2024 = vxpose.xlu0.b32.cont [2/16] %v633_v42, 128  ;;  %v1912_v45 = vpop.trf.xlu0  ;;  %v669_v42 = vld [vmem:[#allocation2 + $0x1430] sm:$0xff]  ;;  %v1880_v43 = vpop.trf.xlu1 }
 0x4d9   :  { %2450 = vst [vmem:[#allocation5 + $0x150] sm:$0xff] %v1912_v45  ;;  %2056 = vxpose.xlu1.b32.cont [2/16] (narrow) %v634_v44, 64  ;;  %2849 = vst [vmem:[#allocation5 + $0xdc8] sm:$0xff] %v1880_v43  ;;  %v670_v44 = vld [vmem:[#allocation2 + $0x1438] sm:$0xff] }
 0x4dc   :  { %2025 = vxpose.xlu0.b32.cont [3/16] %v635_v46, 128  ;;  %v1913_v49 = vpop.trf.xlu0  ;;  %v671_v46 = vld [vmem:[#allocation2 + $0x1440] sm:$0xff]  ;;  %v1881_v47 = vpop.trf.xlu1 }
 0x4dd   :  { %2475 = vst [vmem:[#allocation5 + $0x218] sm:$0xff] %v1913_v49  ;;  %2057 = vxpose.xlu1.b32.cont [3/16] (narrow) %v636_v48, 64  ;;  %2874 = vst [vmem:[#allocation5 + $0xe90] sm:$0xff] %v1881_v47  ;;  %v672_v48 = vld [vmem:[#allocation2 + $0x1448] sm:$0xff] }
 0x4e0   :  { %2026 = vxpose.xlu0.b32.cont [4/16] %v637_v50, 128  ;;  %v1914_v53 = vpop.trf.xlu0  ;;  %v673_v50 = vld [vmem:[#allocation2 + $0x1450] sm:$0xff]  ;;  %v1882_v51 = vpop.trf.xlu1 }
 0x4e1   :  { %2500 = vst [vmem:[#allocation5 + $0x2e0] sm:$0xff] %v1914_v53  ;;  %2058 = vxpose.xlu1.b32.cont [4/16] (narrow) %v638_v52, 64  ;;  %2899 = vst [vmem:[#allocation5 + $0xf58] sm:$0xff] %v1882_v51  ;;  %v674_v52 = vld [vmem:[#allocation2 + $0x1458] sm:$0xff] }
 0x4e4   :  { %2027 = vxpose.xlu0.b32.cont [5/16] %v639_v54, 128  ;;  %v1915_v57 = vpop.trf.xlu0  ;;  %v675_v54 = vld [vmem:[#allocation2 + $0x1460] sm:$0xff]  ;;  %v1883_v55 = vpop.trf.xlu1 }
 0x4e5   :  { %2525 = vst [vmem:[#allocation5 + $0x3a8] sm:$0xff] %v1915_v57  ;;  %2059 = vxpose.xlu1.b32.cont [5/16] (narrow) %v640_v56, 64  ;;  %2924 = vst [vmem:[#allocation5 + $0x1020] sm:$0xff] %v1883_v55  ;;  %v676_v56 = vld [vmem:[#allocation2 + $0x1468] sm:$0xff] }
 0x4e8   :  { %2028 = vxpose.xlu0.b32.cont [6/16] %v641_v58, 128  ;;  %v1916_v61 = vpop.trf.xlu0  ;;  %v677_v58 = vld [vmem:[#allocation2 + $0x1470] sm:$0xff]  ;;  %v1884_v59 = vpop.trf.xlu1 }
 0x4e9   :  { %2550 = vst [vmem:[#allocation5 + $0x470] sm:$0xff] %v1916_v61  ;;  %2060 = vxpose.xlu1.b32.cont [6/16] (narrow) %v642_v60, 64  ;;  %2949 = vst [vmem:[#allocation5 + $0x10e8] sm:$0xff] %v1884_v59  ;;  %v678_v60 = vld [vmem:[#allocation2 + $0x1478] sm:$0xff] }
 0x4ec   :  { %2029 = vxpose.xlu0.b32.cont [7/16] %v643_v62, 128  ;;  %v1917_v1 = vpop.trf.xlu0  ;;  %v679_v62 = vld [vmem:[#allocation2 + $0x1480] sm:$0xff]  ;;  %v1885_v63 = vpop.trf.xlu1 }
 0x4ed   :  { %2575 = vst [vmem:[#allocation5 + $0x538] sm:$0xff] %v1917_v1  ;;  %2061 = vxpose.xlu1.b32.cont [7/16] (narrow) %v644_v0, 64  ;;  %2974 = vst [vmem:[#allocation5 + $0x11b0] sm:$0xff] %v1885_v63  ;;  %v680_v0 = vld [vmem:[#allocation2 + $0x1488] sm:$0xff] }
 0x4f0   :  { %2030 = vxpose.xlu0.b32.cont [8/16] %v645_v2, 128  ;;  %v1918_v5 = vpop.trf.xlu0  ;;  %v681_v2 = vld [vmem:[#allocation2 + $0x1490] sm:$0xff] }
 0x4f1   :  { %2600 = vst [vmem:[#allocation5 + $0x600] sm:$0xff] %v1918_v5  ;;  %2062 = vxpose.xlu1.b32.cont [8/16] (narrow) %v646_v4, 64  ;;  %v683_v5 = vld [vmem:[#allocation2 + $0x14a0] sm:$0xff] }
 0x4f4   :  { %2031 = vxpose.xlu0.b32.cont [9/16] %v647_v6, 128  ;;  %v1919_v9 = vpop.trf.xlu0  ;;  %v684_v6 = vld [vmem:[#allocation2 + $0x14a8] sm:$0xff] }
 0x4f5   :  { %2625 = vst [vmem:[#allocation5 + $0x6c8] sm:$0xff] %v1919_v9  ;;  %2063 = vxpose.xlu1.b32.cont [9/16] (narrow) %v648_v8, 64  ;;  %v685_v8 = vld [vmem:[#allocation2 + $0x14b0] sm:$0xff]  ;;  %v686_v9 = vld [vmem:[#allocation2 + $0x14b8] sm:$0xff] }
 0x4f8   :  { %2032 = vxpose.xlu0.b32.cont [10/16] %v649_v10, 128  ;;  %v1920_v12 = vpop.trf.xlu0 }
 0x4f9   :  { %2650 = vst [vmem:[#allocation5 + $0x790] sm:$0xff] %v1920_v12  ;;  %2064 = vxpose.xlu1.b32.cont [10/16] (narrow) %v650_v11, 64  ;;  %v687_v11 = vld [vmem:[#allocation2 + $0x14c0] sm:$0xff]  ;;  %v688_v12 = vld [vmem:[#allocation2 + $0x14c8] sm:$0xff] }
 0x4fc   :  { %2033 = vxpose.xlu0.b32.cont [11/16] %v651_v13, 128  ;;  %v1921_v15 = vpop.trf.xlu0 }
 0x4fd   :  { %2675 = vst [vmem:[#allocation5 + $0x858] sm:$0xff] %v1921_v15  ;;  %2065 = vxpose.xlu1.b32.cont [11/16] (narrow) %v652_v14, 64  ;;  %v689_v14 = vld [vmem:[#allocation2 + $0x14d0] sm:$0xff]  ;;  %v690_v15 = vld [vmem:[#allocation2 + $0x14d8] sm:$0xff] }
 0x500   :  { %2034 = vxpose.xlu0.b32.cont [12/16] %v653_v16, 128  ;;  %v1922_v18 = vpop.trf.xlu0 }
 0x501   :  { %2700 = vst [vmem:[#allocation5 + $0x920] sm:$0xff] %v1922_v18  ;;  %2066 = vxpose.xlu1.b32.cont [12/16] (narrow) %v654_v17, 64  ;;  %v691_v17 = vld [vmem:[#allocation2 + $0x14e0] sm:$0xff]  ;;  %v692_v18 = vld [vmem:[#allocation2 + $0x14e8] sm:$0xff] }
 0x504   :  { %2035 = vxpose.xlu0.b32.cont [13/16] %v655_v19, 128  ;;  %v1923_v21 = vpop.trf.xlu0 }
 0x505   :  { %2725 = vst [vmem:[#allocation5 + $0x9e8] sm:$0xff] %v1923_v21  ;;  %2067 = vxpose.xlu1.b32.cont [13/16] (narrow) %v656_v20, 64  ;;  %v693_v20 = vld [vmem:[#allocation2 + $0x14f0] sm:$0xff]  ;;  %v1886_v21 = vpop.trf.xlu1 }
 0x506   :  { %2999 = vst [vmem:[#allocation5 + $0x1278] sm:$0xff] %v1886_v21 }
 0x508   :  { %2036 = vxpose.xlu0.b32.cont [14/16] %v657_v22, 128  ;;  %v1924_v24 = vpop.trf.xlu0  ;;  %v694_v22 = vld [vmem:[#allocation2 + $0x14f8] sm:$0xff] }
 0x509   :  { %2750 = vst [vmem:[#allocation5 + $0xab0] sm:$0xff] %v1924_v24  ;;  %2068 = vxpose.xlu1.b32.cont [14/16] (narrow) %v658_v23, 64  ;;  %v695_v24 = vld [vmem:[#allocation2 + $0x1500] sm:$0xff] }
 0x50c   :  { %2037 = vxpose.xlu0.b32.cont [15/16] %v659_v25, 128  ;;  %v1925_v27 = vpop.trf.xlu0  ;;  %v1943_v25 = vpop.trf.xlu1 }
 0x50d   :  { %2775 = vst [vmem:[#allocation5 + $0xb78] sm:$0xff] %v1925_v27  ;;  %2069 = vxpose.xlu1.b32.cont [15/16] (narrow) %v660_v26, 64  ;;  %2825 = vst [vmem:[#allocation5 + $0xd08] sm:$0xff] %v1943_v25  ;;  %v696_v26 = vld [vmem:[#allocation2 + $0x1508] sm:$0xff] }
 0x510   :  { %2038 = vxpose.xlu0.b32.end [16/16] %v661_v28, 128  ;;  %v1926_v30 = vpop.trf.xlu0  ;;  %v697_v28 = vld [vmem:[#allocation2 + $0x1510] sm:$0xff] }
 0x511   :  { %2800 = vst [vmem:[#allocation5 + $0xc40] sm:$0xff] %v1926_v30  ;;  %2070 = vxpose.xlu1.b32.end [16/16] (narrow) %v662_v29, 64  ;;  %v1944_v29 = vpop.trf.xlu1  ;;  %v698_v30 = vld [vmem:[#allocation2 + $0x1518] sm:$0xff] }
 0x512   :  { %2850 = vst [vmem:[#allocation5 + $0xdd0] sm:$0xff] %v1944_v29 }
 0x514   :  { %2087 = vxpose.xlu0.b32.start [1/16] %v663_v31, 128  ;;  %v1975_v33 = vpop.trf.xlu0 }
 0x515   :  { %2425 = vst [vmem:[#allocation5 + $0x90] sm:$0xff] %v1975_v33  ;;  %2119 = vxpose.xlu1.b32.start [1/16] (narrow) %v664_v32, 64  ;;  %v699_v32 = vld [vmem:[#allocation2 + $0x1520] sm:$0xff]  ;;  %v1945_v33 = vpop.trf.xlu1 }
 0x516   :  { %2875 = vst [vmem:[#allocation5 + $0xe98] sm:$0xff] %v1945_v33 }
 0x518   :  { %2088 = vxpose.xlu0.b32.cont [2/16] %v665_v34, 128  ;;  %v1976_v37 = vpop.trf.xlu0  ;;  %v700_v34 = vld [vmem:[#allocation2 + $0x1528] sm:$0xff] }
 0x519   :  { %2451 = vst [vmem:[#allocation5 + $0x158] sm:$0xff] %v1976_v37  ;;  %2120 = vxpose.xlu1.b32.cont [2/16] (narrow) %v666_v36, 64  ;;  %v701_v36 = vld [vmem:[#allocation2 + $0x1530] sm:$0xff]  ;;  %v1946_v37 = vpop.trf.xlu1 }
 0x51a   :  { %2900 = vst [vmem:[#allocation5 + $0xf60] sm:$0xff] %v1946_v37 }
 0x51c   :  { %2089 = vxpose.xlu0.b32.cont [3/16] %v667_v38, 128  ;;  %v1977_v41 = vpop.trf.xlu0  ;;  %v702_v38 = vld [vmem:[#allocation2 + $0x1538] sm:$0xff] }
 0x51d   :  { %2476 = vst [vmem:[#allocation5 + $0x220] sm:$0xff] %v1977_v41  ;;  %2121 = vxpose.xlu1.b32.cont [3/16] (narrow) %v668_v40, 64  ;;  %v703_v40 = vld [vmem:[#allocation2 + $0x1540] sm:$0xff]  ;;  %v1947_v41 = vpop.trf.xlu1 }
 0x51e   :  { %2925 = vst [vmem:[#allocation5 + $0x1028] sm:$0xff] %v1947_v41 }
 0x520   :  { %2090 = vxpose.xlu0.b32.cont [4/16] %v669_v42, 128  ;;  %v1978_v45 = vpop.trf.xlu0  ;;  %v704_v42 = vld [vmem:[#allocation2 + $0x1548] sm:$0xff] }
 0x521   :  { %2501 = vst [vmem:[#allocation5 + $0x2e8] sm:$0xff] %v1978_v45  ;;  %2122 = vxpose.xlu1.b32.cont [4/16] (narrow) %v670_v44, 64  ;;  %v705_v44 = vld [vmem:[#allocation2 + $0x1550] sm:$0xff]  ;;  %v1948_v45 = vpop.trf.xlu1 }
 0x522   :  { %2950 = vst [vmem:[#allocation5 + $0x10f0] sm:$0xff] %v1948_v45 }
 0x524   :  { %2091 = vxpose.xlu0.b32.cont [5/16] %v671_v46, 128  ;;  %v1979_v49 = vpop.trf.xlu0  ;;  %v706_v46 = vld [vmem:[#allocation2 + $0x1558] sm:$0xff] }
 0x525   :  { %2526 = vst [vmem:[#allocation5 + $0x3b0] sm:$0xff] %v1979_v49  ;;  %2123 = vxpose.xlu1.b32.cont [5/16] (narrow) %v672_v48, 64  ;;  %v707_v48 = vld [vmem:[#allocation2 + $0x1560] sm:$0xff]  ;;  %v1949_v49 = vpop.trf.xlu1 }
 0x526   :  { %2975 = vst [vmem:[#allocation5 + $0x11b8] sm:$0xff] %v1949_v49 }
 0x528   :  { %2092 = vxpose.xlu0.b32.cont [6/16] %v673_v50, 128  ;;  %v1980_v53 = vpop.trf.xlu0  ;;  %v708_v50 = vld [vmem:[#allocation2 + $0x1568] sm:$0xff] }
 0x529   :  { %2551 = vst [vmem:[#allocation5 + $0x478] sm:$0xff] %v1980_v53  ;;  %2124 = vxpose.xlu1.b32.cont [6/16] (narrow) %v674_v52, 64  ;;  %v709_v52 = vld [vmem:[#allocation2 + $0x1570] sm:$0xff]  ;;  %v1950_v53 = vpop.trf.xlu1 }
 0x52a   :  { %3000 = vst [vmem:[#allocation5 + $0x1280] sm:$0xff] %v1950_v53 }
 0x52c   :  { %2093 = vxpose.xlu0.b32.cont [7/16] %v675_v54, 128  ;;  %v1981_v57 = vpop.trf.xlu0  ;;  %v710_v54 = vld [vmem:[#allocation2 + $0x1578] sm:$0xff] }
 0x52d   :  { %2576 = vst [vmem:[#allocation5 + $0x540] sm:$0xff] %v1981_v57  ;;  %2125 = vxpose.xlu1.b32.cont [7/16] (narrow) %v676_v56, 64  ;;  %v711_v56 = vld [vmem:[#allocation2 + $0x1580] sm:$0xff]  ;;  %v2007_v57 = vpop.trf.xlu1 }
 0x52e   :  { %2826 = vst [vmem:[#allocation5 + $0xd10] sm:$0xff] %v2007_v57 }
 0x530   :  { %2094 = vxpose.xlu0.b32.cont [8/16] %v677_v58, 128  ;;  %v1982_v61 = vpop.trf.xlu0  ;;  %v712_v58 = vld [vmem:[#allocation2 + $0x1588] sm:$0xff] }
 0x531   :  { %2601 = vst [vmem:[#allocation5 + $0x608] sm:$0xff] %v1982_v61  ;;  %2126 = vxpose.xlu1.b32.cont [8/16] (narrow) %v678_v60, 64  ;;  %v713_v60 = vld [vmem:[#allocation2 + $0x1590] sm:$0xff]  ;;  %v2008_v61 = vpop.trf.xlu1 }
 0x532   :  { %2851 = vst [vmem:[#allocation5 + $0xdd8] sm:$0xff] %v2008_v61 }
 0x534   :  { %2095 = vxpose.xlu0.b32.cont [9/16] %v679_v62, 128  ;;  %v1983_v1 = vpop.trf.xlu0  ;;  %v714_v62 = vld [vmem:[#allocation2 + $0x1598] sm:$0xff] }
 0x535   :  { %2626 = vst [vmem:[#allocation5 + $0x6d0] sm:$0xff] %v1983_v1  ;;  %2127 = vxpose.xlu1.b32.cont [9/16] (narrow) %v680_v0, 64  ;;  %v715_v0 = vld [vmem:[#allocation2 + $0x15a0] sm:$0xff]  ;;  %v2009_v1 = vpop.trf.xlu1 }
 0x536   :  { %2876 = vst [vmem:[#allocation5 + $0xea0] sm:$0xff] %v2009_v1 }
 0x538   :  { %2096 = vxpose.xlu0.b32.cont [10/16] %v681_v2, 128  ;;  %v1984_v4 = vpop.trf.xlu0  ;;  %v716_v2 = vld [vmem:[#allocation2 + $0x15a8] sm:$0xff] }
 0x539   :  { %2651 = vst [vmem:[#allocation5 + $0x798] sm:$0xff] %v1984_v4  ;;  %2128 = vxpose.xlu1.b32.cont [10/16] (narrow) %v682_v3, 64  ;;  %v717_v4 = vld [vmem:[#allocation2 + $0x15b0] sm:$0xff] }
 0x53c   :  { %2097 = vxpose.xlu0.b32.cont [11/16] %v683_v5, 128  ;;  %v1985_v7 = vpop.trf.xlu0  ;;  %v2010_v5 = vpop.trf.xlu1 }
 0x53d   :  { %2676 = vst [vmem:[#allocation5 + $0x860] sm:$0xff] %v1985_v7  ;;  %2129 = vxpose.xlu1.b32.cont [11/16] (narrow) %v684_v6, 64  ;;  %2901 = vst [vmem:[#allocation5 + $0xf68] sm:$0xff] %v2010_v5  ;;  %v718_v6 = vld [vmem:[#allocation2 + $0x15b8] sm:$0xff] }
 0x540   :  { %2098 = vxpose.xlu0.b32.cont [12/16] %v685_v8, 128  ;;  %v1986_v10 = vpop.trf.xlu0  ;;  %v719_v8 = vld [vmem:[#allocation2 + $0x15c0] sm:$0xff] }
 0x541   :  { %2701 = vst [vmem:[#allocation5 + $0x928] sm:$0xff] %v1986_v10  ;;  %2130 = vxpose.xlu1.b32.cont [12/16] (narrow) %v686_v9, 64  ;;  %v2011_v9 = vpop.trf.xlu1  ;;  %v720_v10 = vld [vmem:[#allocation2 + $0x15c8] sm:$0xff] }
 0x542   :  { %2926 = vst [vmem:[#allocation5 + $0x1030] sm:$0xff] %v2011_v9 }
 0x544   :  { %2099 = vxpose.xlu0.b32.cont [13/16] %v687_v11, 128  ;;  %v1987_v13 = vpop.trf.xlu0 }
 0x545   :  { %2726 = vst [vmem:[#allocation5 + $0x9f0] sm:$0xff] %v1987_v13  ;;  %2131 = vxpose.xlu1.b32.cont [13/16] (narrow) %v688_v12, 64  ;;  %v721_v12 = vld [vmem:[#allocation2 + $0x15d0] sm:$0xff]  ;;  %v2012_v13 = vpop.trf.xlu1 }
 0x546   :  { %2951 = vst [vmem:[#allocation5 + $0x10f8] sm:$0xff] %v2012_v13 }
 0x548   :  { %2100 = vxpose.xlu0.b32.cont [14/16] %v689_v14, 128  ;;  %v1988_v16 = vpop.trf.xlu0  ;;  %v722_v14 = vld [vmem:[#allocation2 + $0x15d8] sm:$0xff] }
 0x549   :  { %2751 = vst [vmem:[#allocation5 + $0xab8] sm:$0xff] %v1988_v16  ;;  %2132 = vxpose.xlu1.b32.cont [14/16] (narrow) %v690_v15, 64  ;;  %v723_v16 = vld [vmem:[#allocation2 + $0x15e0] sm:$0xff] }
 0x54c   :  { %2101 = vxpose.xlu0.b32.cont [15/16] %v691_v17, 128  ;;  %v1989_v19 = vpop.trf.xlu0  ;;  %v2013_v17 = vpop.trf.xlu1 }
 0x54d   :  { %2776 = vst [vmem:[#allocation5 + $0xb80] sm:$0xff] %v1989_v19  ;;  %2133 = vxpose.xlu1.b32.cont [15/16] (narrow) %v692_v18, 64  ;;  %2976 = vst [vmem:[#allocation5 + $0x11c0] sm:$0xff] %v2013_v17  ;;  %v724_v18 = vld [vmem:[#allocation2 + $0x15e8] sm:$0xff] }
 0x550   :  { %2102 = vxpose.xlu0.b32.end [16/16] %v693_v20, 128  ;;  %v1990_v23 = vpop.trf.xlu0  ;;  %v725_v20 = vld [vmem:[#allocation2 + $0x15f0] sm:$0xff]  ;;  %v2014_v21 = vpop.trf.xlu1 }
 0x551   :  { %2801 = vst [vmem:[#allocation5 + $0xc48] sm:$0xff] %v1990_v23  ;;  %2134 = vxpose.xlu1.b32.end [16/16] (narrow) %v694_v22, 64  ;;  %3001 = vst [vmem:[#allocation5 + $0x1288] sm:$0xff] %v2014_v21  ;;  %v726_v22 = vld [vmem:[#allocation2 + $0x15f8] sm:$0xff] }
 0x554   :  { %2151 = vxpose.xlu0.b32.start [1/16] %v695_v24, 128  ;;  %v2039_v27 = vpop.trf.xlu0  ;;  %v727_v24 = vld [vmem:[#allocation2 + $0x1600] sm:$0xff] }
 0x555   :  { %2426 = vst [vmem:[#allocation5 + $0x98] sm:$0xff] %v2039_v27  ;;  %2183 = vxpose.xlu1.b32.start [1/16] (narrow) %v696_v26, 64  ;;  %v2071_v25 = vpop.trf.xlu1  ;;  %v728_v26 = vld [vmem:[#allocation2 + $0x1608] sm:$0xff] }
 0x556   :  { %2827 = vst [vmem:[#allocation5 + $0xd18] sm:$0xff] %v2071_v25  ;;  %v760_v25 = vld [vmem:[#allocation2 + $0x1708] sm:$0xff] }
 0x558   :  { %2152 = vxpose.xlu0.b32.cont [2/16] %v697_v28, 128  ;;  %v2040_v31 = vpop.trf.xlu0  ;;  %v729_v28 = vld [vmem:[#allocation2 + $0x1610] sm:$0xff] }
 0x559   :  { %2452 = vst [vmem:[#allocation5 + $0x160] sm:$0xff] %v2040_v31  ;;  %2184 = vxpose.xlu1.b32.cont [2/16] (narrow) %v698_v30, 64  ;;  %v2072_v29 = vpop.trf.xlu1  ;;  %v730_v30 = vld [vmem:[#allocation2 + $0x1618] sm:$0xff] }
 0x55a   :  { %2852 = vst [vmem:[#allocation5 + $0xde0] sm:$0xff] %v2072_v29  ;;  %v762_v29 = vld [vmem:[#allocation2 + $0x1718] sm:$0xff] }
 0x55c   :  { %2153 = vxpose.xlu0.b32.cont [3/16] %v699_v32, 128  ;;  %v2041_v35 = vpop.trf.xlu0  ;;  %v731_v32 = vld [vmem:[#allocation2 + $0x1620] sm:$0xff] }
 0x55d   :  { %2477 = vst [vmem:[#allocation5 + $0x228] sm:$0xff] %v2041_v35  ;;  %2185 = vxpose.xlu1.b32.cont [3/16] (narrow) %v700_v34, 64  ;;  %v2073_v33 = vpop.trf.xlu1  ;;  %v732_v34 = vld [vmem:[#allocation2 + $0x1628] sm:$0xff] }
 0x55e   :  { %2877 = vst [vmem:[#allocation5 + $0xea8] sm:$0xff] %v2073_v33  ;;  %v764_v33 = vld [vmem:[#allocation2 + $0x1728] sm:$0xff] }
 0x560   :  { %2154 = vxpose.xlu0.b32.cont [4/16] %v701_v36, 128  ;;  %v2042_v39 = vpop.trf.xlu0  ;;  %v733_v36 = vld [vmem:[#allocation2 + $0x1630] sm:$0xff] }
 0x561   :  { %2502 = vst [vmem:[#allocation5 + $0x2f0] sm:$0xff] %v2042_v39  ;;  %2186 = vxpose.xlu1.b32.cont [4/16] (narrow) %v702_v38, 64  ;;  %v2074_v37 = vpop.trf.xlu1  ;;  %v734_v38 = vld [vmem:[#allocation2 + $0x1638] sm:$0xff] }
 0x562   :  { %2902 = vst [vmem:[#allocation5 + $0xf70] sm:$0xff] %v2074_v37  ;;  %v766_v37 = vld [vmem:[#allocation2 + $0x1738] sm:$0xff] }
 0x564   :  { %2155 = vxpose.xlu0.b32.cont [5/16] %v703_v40, 128  ;;  %v2043_v43 = vpop.trf.xlu0  ;;  %v735_v40 = vld [vmem:[#allocation2 + $0x1640] sm:$0xff] }
 0x565   :  { %2527 = vst [vmem:[#allocation5 + $0x3b8] sm:$0xff] %v2043_v43  ;;  %2187 = vxpose.xlu1.b32.cont [5/16] (narrow) %v704_v42, 64  ;;  %v2075_v41 = vpop.trf.xlu1  ;;  %v736_v42 = vld [vmem:[#allocation2 + $0x1648] sm:$0xff] }
 0x566   :  { %2927 = vst [vmem:[#allocation5 + $0x1038] sm:$0xff] %v2075_v41  ;;  %v768_v41 = vld [vmem:[#allocation2 + $0x1748] sm:$0xff] }
 0x568   :  { %2156 = vxpose.xlu0.b32.cont [6/16] %v705_v44, 128  ;;  %v2044_v47 = vpop.trf.xlu0  ;;  %v737_v44 = vld [vmem:[#allocation2 + $0x1650] sm:$0xff] }
 0x569   :  { %2552 = vst [vmem:[#allocation5 + $0x480] sm:$0xff] %v2044_v47  ;;  %2188 = vxpose.xlu1.b32.cont [6/16] (narrow) %v706_v46, 64  ;;  %v2076_v45 = vpop.trf.xlu1  ;;  %v738_v46 = vld [vmem:[#allocation2 + $0x1658] sm:$0xff] }
 0x56a   :  { %2952 = vst [vmem:[#allocation5 + $0x1100] sm:$0xff] %v2076_v45  ;;  %v770_v45 = vld [vmem:[#allocation2 + $0x1758] sm:$0xff] }
 0x56c   :  { %2157 = vxpose.xlu0.b32.cont [7/16] %v707_v48, 128  ;;  %v2045_v51 = vpop.trf.xlu0  ;;  %v739_v48 = vld [vmem:[#allocation2 + $0x1660] sm:$0xff] }
 0x56d   :  { %2577 = vst [vmem:[#allocation5 + $0x548] sm:$0xff] %v2045_v51  ;;  %2189 = vxpose.xlu1.b32.cont [7/16] (narrow) %v708_v50, 64  ;;  %v2077_v49 = vpop.trf.xlu1  ;;  %v740_v50 = vld [vmem:[#allocation2 + $0x1668] sm:$0xff] }
 0x56e   :  { %2977 = vst [vmem:[#allocation5 + $0x11c8] sm:$0xff] %v2077_v49  ;;  %v772_v49 = vld [vmem:[#allocation2 + $0x1768] sm:$0xff] }
 0x570   :  { %2158 = vxpose.xlu0.b32.cont [8/16] %v709_v52, 128  ;;  %v2046_v55 = vpop.trf.xlu0  ;;  %v741_v52 = vld [vmem:[#allocation2 + $0x1670] sm:$0xff] }
 0x571   :  { %2602 = vst [vmem:[#allocation5 + $0x610] sm:$0xff] %v2046_v55  ;;  %2190 = vxpose.xlu1.b32.cont [8/16] (narrow) %v710_v54, 64  ;;  %v2078_v53 = vpop.trf.xlu1  ;;  %v742_v54 = vld [vmem:[#allocation2 + $0x1678] sm:$0xff] }
 0x572   :  { %3002 = vst [vmem:[#allocation5 + $0x1290] sm:$0xff] %v2078_v53  ;;  %v774_v53 = vld [vmem:[#allocation2 + $0x1778] sm:$0xff] }
 0x574   :  { %2159 = vxpose.xlu0.b32.cont [9/16] %v711_v56, 128  ;;  %v2047_v59 = vpop.trf.xlu0  ;;  %v743_v56 = vld [vmem:[#allocation2 + $0x1680] sm:$0xff] }
 0x575   :  { %2627 = vst [vmem:[#allocation5 + $0x6d8] sm:$0xff] %v2047_v59  ;;  %2191 = vxpose.xlu1.b32.cont [9/16] (narrow) %v712_v58, 64  ;;  %v744_v58 = vld [vmem:[#allocation2 + $0x1688] sm:$0xff] }
 0x578   :  { %2160 = vxpose.xlu0.b32.cont [10/16] %v713_v60, 128  ;;  %v2048_v63 = vpop.trf.xlu0  ;;  %v745_v60 = vld [vmem:[#allocation2 + $0x1690] sm:$0xff] }
 0x579   :  { %2652 = vst [vmem:[#allocation5 + $0x7a0] sm:$0xff] %v2048_v63  ;;  %2192 = vxpose.xlu1.b32.cont [10/16] (narrow) %v714_v62, 64  ;;  %v746_v62 = vld [vmem:[#allocation2 + $0x1698] sm:$0xff] }
 0x57c   :  { %2161 = vxpose.xlu0.b32.cont [11/16] %v715_v0, 128  ;;  %v2049_v3 = vpop.trf.xlu0  ;;  %v747_v0 = vld [vmem:[#allocation2 + $0x16a0] sm:$0xff] }
 0x57d   :  { %2677 = vst [vmem:[#allocation5 + $0x868] sm:$0xff] %v2049_v3  ;;  %2193 = vxpose.xlu1.b32.cont [11/16] (narrow) %v716_v2, 64  ;;  %v748_v2 = vld [vmem:[#allocation2 + $0x16a8] sm:$0xff] }
 0x580   :  { %2162 = vxpose.xlu0.b32.cont [12/16] %v717_v4, 128  ;;  %v2050_v7 = vpop.trf.xlu0  ;;  %v749_v4 = vld [vmem:[#allocation2 + $0x16b0] sm:$0xff] }
 0x581   :  { %2702 = vst [vmem:[#allocation5 + $0x930] sm:$0xff] %v2050_v7  ;;  %2194 = vxpose.xlu1.b32.cont [12/16] (narrow) %v718_v6, 64  ;;  %v750_v6 = vld [vmem:[#allocation2 + $0x16b8] sm:$0xff] }
 0x584   :  { %2163 = vxpose.xlu0.b32.cont [13/16] %v719_v8, 128  ;;  %v2051_v11 = vpop.trf.xlu0  ;;  %v751_v8 = vld [vmem:[#allocation2 + $0x16c0] sm:$0xff] }
 0x585   :  { %2727 = vst [vmem:[#allocation5 + $0x9f8] sm:$0xff] %v2051_v11  ;;  %2195 = vxpose.xlu1.b32.cont [13/16] (narrow) %v720_v10, 64  ;;  %v752_v10 = vld [vmem:[#allocation2 + $0x16c8] sm:$0xff] }
 0x588   :  { %2164 = vxpose.xlu0.b32.cont [14/16] %v721_v12, 128  ;;  %v2052_v15 = vpop.trf.xlu0  ;;  %v753_v12 = vld [vmem:[#allocation2 + $0x16d0] sm:$0xff] }
 0x589   :  { %2752 = vst [vmem:[#allocation5 + $0xac0] sm:$0xff] %v2052_v15  ;;  %2196 = vxpose.xlu1.b32.cont [14/16] (narrow) %v722_v14, 64  ;;  %v754_v14 = vld [vmem:[#allocation2 + $0x16d8] sm:$0xff] }
 0x58c   :  { %2165 = vxpose.xlu0.b32.cont [15/16] %v723_v16, 128  ;;  %v2053_v19 = vpop.trf.xlu0  ;;  %v755_v16 = vld [vmem:[#allocation2 + $0x16e0] sm:$0xff] }
 0x58d   :  { %2777 = vst [vmem:[#allocation5 + $0xb88] sm:$0xff] %v2053_v19  ;;  %2197 = vxpose.xlu1.b32.cont [15/16] (narrow) %v724_v18, 64  ;;  %v756_v18 = vld [vmem:[#allocation2 + $0x16e8] sm:$0xff] }
 0x590   :  { %2166 = vxpose.xlu0.b32.end [16/16] %v725_v20, 128  ;;  %v2054_v23 = vpop.trf.xlu0  ;;  %v757_v20 = vld [vmem:[#allocation2 + $0x16f0] sm:$0xff] }
 0x591   :  { %2802 = vst [vmem:[#allocation5 + $0xc50] sm:$0xff] %v2054_v23  ;;  %2198 = vxpose.xlu1.b32.end [16/16] (narrow) %v726_v22, 64  ;;  %v758_v22 = vld [vmem:[#allocation2 + $0x16f8] sm:$0xff] }
 0x594   :  { %2215 = vxpose.xlu0.b32.start [1/16] %v727_v24, 128  ;;  %v2103_v27 = vpop.trf.xlu0  ;;  %v759_v24 = vld [vmem:[#allocation2 + $0x1700] sm:$0xff] }
 0x595   :  { %2427 = vst [vmem:[#allocation5 + $0xa0] sm:$0xff] %v2103_v27  ;;  %2247 = vxpose.xlu1.b32.start [1/16] (narrow) %v728_v26, 64  ;;  %v2135_v57 = vpop.trf.xlu1  ;;  %v761_v27 = vld [vmem:[#allocation2 + $0x1710] sm:$0xff] }
 0x596   :  { %2828 = vst [vmem:[#allocation5 + $0xd20] sm:$0xff] %v2135_v57  ;;  %v776_v57 = vld [vmem:[#allocation2 + $0x1788] sm:$0xff] }
 0x598   :  { %2216 = vxpose.xlu0.b32.cont [2/16] %v729_v28, 128  ;;  %v2104_v31 = vpop.trf.xlu0 }
 0x599   :  { %2453 = vst [vmem:[#allocation5 + $0x168] sm:$0xff] %v2104_v31  ;;  %2248 = vxpose.xlu1.b32.cont [2/16] (narrow) %v730_v30, 64  ;;  %v2136_v61 = vpop.trf.xlu1  ;;  %v763_v31 = vld [vmem:[#allocation2 + $0x1720] sm:$0xff] }
 0x59a   :  { %2853 = vst [vmem:[#allocation5 + $0xde8] sm:$0xff] %v2136_v61 }
 0x59c   :  { %2217 = vxpose.xlu0.b32.cont [3/16] %v731_v32, 128  ;;  %v2105_v35 = vpop.trf.xlu0 }
 0x59d   :  { %2478 = vst [vmem:[#allocation5 + $0x230] sm:$0xff] %v2105_v35  ;;  %2249 = vxpose.xlu1.b32.cont [3/16] (narrow) %v732_v34, 64  ;;  %v2137_v1 = vpop.trf.xlu1  ;;  %v765_v35 = vld [vmem:[#allocation2 + $0x1730] sm:$0xff] }
 0x59e   :  { %2878 = vst [vmem:[#allocation5 + $0xeb0] sm:$0xff] %v2137_v1  ;;  %v781_v1 = vld [vmem:[#allocation2 + $0x17b0] sm:$0xff] }
 0x5a0   :  { %2218 = vxpose.xlu0.b32.cont [4/16] %v733_v36, 128  ;;  %v2106_v39 = vpop.trf.xlu0 }
 0x5a1   :  { %2503 = vst [vmem:[#allocation5 + $0x2f8] sm:$0xff] %v2106_v39  ;;  %2250 = vxpose.xlu1.b32.cont [4/16] (narrow) %v734_v38, 64  ;;  %v2138_v5 = vpop.trf.xlu1  ;;  %v767_v39 = vld [vmem:[#allocation2 + $0x1740] sm:$0xff] }
 0x5a2   :  { %2903 = vst [vmem:[#allocation5 + $0xf78] sm:$0xff] %v2138_v5  ;;  %v784_v5 = vld [vmem:[#allocation2 + $0x17c8] sm:$0xff] }
 0x5a4   :  { %2219 = vxpose.xlu0.b32.cont [5/16] %v735_v40, 128  ;;  %v2107_v43 = vpop.trf.xlu0 }
 0x5a5   :  { %2528 = vst [vmem:[#allocation5 + $0x3c0] sm:$0xff] %v2107_v43  ;;  %2251 = vxpose.xlu1.b32.cont [5/16] (narrow) %v736_v42, 64  ;;  %v2139_v9 = vpop.trf.xlu1  ;;  %v769_v43 = vld [vmem:[#allocation2 + $0x1750] sm:$0xff] }
 0x5a6   :  { %2928 = vst [vmem:[#allocation5 + $0x1040] sm:$0xff] %v2139_v9 }
 0x5a8   :  { %2220 = vxpose.xlu0.b32.cont [6/16] %v737_v44, 128  ;;  %v2108_v47 = vpop.trf.xlu0 }
 0x5a9   :  { %2553 = vst [vmem:[#allocation5 + $0x488] sm:$0xff] %v2108_v47  ;;  %2252 = vxpose.xlu1.b32.cont [6/16] (narrow) %v738_v46, 64  ;;  %v2140_v13 = vpop.trf.xlu1  ;;  %v771_v47 = vld [vmem:[#allocation2 + $0x1760] sm:$0xff] }
 0x5aa   :  { %2953 = vst [vmem:[#allocation5 + $0x1108] sm:$0xff] %v2140_v13  ;;  %v789_v13 = vld [vmem:[#allocation2 + $0x17f0] sm:$0xff] }
 0x5ac   :  { %2221 = vxpose.xlu0.b32.cont [7/16] %v739_v48, 128  ;;  %v2109_v51 = vpop.trf.xlu0 }
 0x5ad   :  { %2578 = vst [vmem:[#allocation5 + $0x550] sm:$0xff] %v2109_v51  ;;  %2253 = vxpose.xlu1.b32.cont [7/16] (narrow) %v740_v50, 64  ;;  %v2141_v17 = vpop.trf.xlu1  ;;  %v773_v51 = vld [vmem:[#allocation2 + $0x1770] sm:$0xff] }
 0x5ae   :  { %2978 = vst [vmem:[#allocation5 + $0x11d0] sm:$0xff] %v2141_v17  ;;  %v792_v17 = vld [vmem:[#allocation2 + $0x1808] sm:$0xff] }
 0x5b0   :  { %2222 = vxpose.xlu0.b32.cont [8/16] %v741_v52, 128  ;;  %v2110_v55 = vpop.trf.xlu0 }
 0x5b1   :  { %2603 = vst [vmem:[#allocation5 + $0x618] sm:$0xff] %v2110_v55  ;;  %2254 = vxpose.xlu1.b32.cont [8/16] (narrow) %v742_v54, 64  ;;  %v2142_v21 = vpop.trf.xlu1  ;;  %v775_v55 = vld [vmem:[#allocation2 + $0x1780] sm:$0xff] }
 0x5b2   :  { %3003 = vst [vmem:[#allocation5 + $0x1298] sm:$0xff] %v2142_v21  ;;  %v794_v21 = vld [vmem:[#allocation2 + $0x1818] sm:$0xff] }
 0x5b4   :  { %2223 = vxpose.xlu0.b32.cont [9/16] %v743_v56, 128  ;;  %v2111_v59 = vpop.trf.xlu0 }
 0x5b5   :  { %2628 = vst [vmem:[#allocation5 + $0x6e0] sm:$0xff] %v2111_v59  ;;  %2255 = vxpose.xlu1.b32.cont [9/16] (narrow) %v744_v58, 64  ;;  %v777_v59 = vld [vmem:[#allocation2 + $0x1790] sm:$0xff] }
 0x5b8   :  { %2224 = vxpose.xlu0.b32.cont [10/16] %v745_v60, 128  ;;  %v2112_v63 = vpop.trf.xlu0  ;;  %v778_v60 = vld [vmem:[#allocation2 + $0x1798] sm:$0xff] }
 0x5b9   :  { %2653 = vst [vmem:[#allocation5 + $0x7a8] sm:$0xff] %v2112_v63  ;;  %2256 = vxpose.xlu1.b32.cont [10/16] (narrow) %v746_v62, 64  ;;  %v779_v62 = vld [vmem:[#allocation2 + $0x17a0] sm:$0xff]  ;;  %v780_v63 = vld [vmem:[#allocation2 + $0x17a8] sm:$0xff] }
 0x5bc   :  { %2225 = vxpose.xlu0.b32.cont [11/16] %v747_v0, 128  ;;  %v2113_v3 = vpop.trf.xlu0 }
 0x5bd   :  { %2678 = vst [vmem:[#allocation5 + $0x870] sm:$0xff] %v2113_v3  ;;  %2257 = vxpose.xlu1.b32.cont [11/16] (narrow) %v748_v2, 64  ;;  %v782_v2 = vld [vmem:[#allocation2 + $0x17b8] sm:$0xff] }
 0x5c0   :  { %2226 = vxpose.xlu0.b32.cont [12/16] %v749_v4, 128  ;;  %v2114_v7 = vpop.trf.xlu0  ;;  %v783_v4 = vld [vmem:[#allocation2 + $0x17c0] sm:$0xff] }
 0x5c1   :  { %2703 = vst [vmem:[#allocation5 + $0x938] sm:$0xff] %v2114_v7  ;;  %2258 = vxpose.xlu1.b32.cont [12/16] (narrow) %v750_v6, 64  ;;  %v785_v7 = vld [vmem:[#allocation2 + $0x17d0] sm:$0xff] }
 0x5c4   :  { %2227 = vxpose.xlu0.b32.cont [13/16] %v751_v8, 128  ;;  %v2115_v11 = vpop.trf.xlu0  ;;  %v786_v8 = vld [vmem:[#allocation2 + $0x17d8] sm:$0xff] }
 0x5c5   :  { %2728 = vst [vmem:[#allocation5 + $0xa00] sm:$0xff] %v2115_v11  ;;  %2259 = vxpose.xlu1.b32.cont [13/16] (narrow) %v752_v10, 64  ;;  %v787_v10 = vld [vmem:[#allocation2 + $0x17e0] sm:$0xff]  ;;  %v788_v11 = vld [vmem:[#allocation2 + $0x17e8] sm:$0xff] }
 0x5c8   :  { %2228 = vxpose.xlu0.b32.cont [14/16] %v753_v12, 128  ;;  %v2116_v15 = vpop.trf.xlu0 }
 0x5c9   :  { %2753 = vst [vmem:[#allocation5 + $0xac8] sm:$0xff] %v2116_v15  ;;  %2260 = vxpose.xlu1.b32.cont [14/16] (narrow) %v754_v14, 64  ;;  %v790_v14 = vld [vmem:[#allocation2 + $0x17f8] sm:$0xff] }
 0x5cc   :  { %2229 = vxpose.xlu0.b32.cont [15/16] %v755_v16, 128  ;;  %v2117_v19 = vpop.trf.xlu0  ;;  %v791_v16 = vld [vmem:[#allocation2 + $0x1800] sm:$0xff] }
 0x5cd   :  { %2778 = vst [vmem:[#allocation5 + $0xb90] sm:$0xff] %v2117_v19  ;;  %2261 = vxpose.xlu1.b32.cont [15/16] (narrow) %v756_v18, 64  ;;  %v793_v19 = vld [vmem:[#allocation2 + $0x1810] sm:$0xff] }
 0x5d0   :  { %2230 = vxpose.xlu0.b32.end [16/16] %v757_v20, 128  ;;  %v2118_v23 = vpop.trf.xlu0 }
 0x5d1   :  { %2803 = vst [vmem:[#allocation5 + $0xc58] sm:$0xff] %v2118_v23  ;;  %2262 = vxpose.xlu1.b32.end [16/16] (narrow) %v758_v22, 64  ;;  %v795_v23 = vld [vmem:[#allocation2 + $0x1820] sm:$0xff] }
 0x5d4   :  { %2279 = vxpose.xlu0.b32.start [1/16] %v759_v24, 128  ;;  %v2167_v26 = vpop.trf.xlu0 }
 0x5d5   :  { %2428 = vst [vmem:[#allocation5 + $0xa8] sm:$0xff] %v2167_v26  ;;  %2311 = vxpose.xlu1.b32.start [1/16] (narrow) %v760_v25, 64  ;;  %v2199_v28 = vpop.trf.xlu1  ;;  %v796_v25 = vld [vmem:[#allocation2 + $0x1828] sm:$0xff] }
 0x5d6   :  { %2829 = vst [vmem:[#allocation5 + $0xd28] sm:$0xff] %v2199_v28 }
 0x5d8   :  { %2280 = vxpose.xlu0.b32.cont [2/16] %v761_v27, 128  ;;  %v2168_v30 = vpop.trf.xlu0  ;;  %v797_v27 = vld [vmem:[#allocation2 + $0x1830] sm:$0xff] }
 0x5d9   :  { %2454 = vst [vmem:[#allocation5 + $0x170] sm:$0xff] %v2168_v30  ;;  %2312 = vxpose.xlu1.b32.cont [2/16] (narrow) %v762_v29, 64  ;;  %v2200_v32 = vpop.trf.xlu1  ;;  %v798_v29 = vld [vmem:[#allocation2 + $0x1838] sm:$0xff] }
 0x5da   :  { %2854 = vst [vmem:[#allocation5 + $0xdf0] sm:$0xff] %v2200_v32 }
 0x5dc   :  { %2281 = vxpose.xlu0.b32.cont [3/16] %v763_v31, 128  ;;  %v2169_v34 = vpop.trf.xlu0  ;;  %v799_v31 = vld [vmem:[#allocation2 + $0x1840] sm:$0xff] }
 0x5dd   :  { %2479 = vst [vmem:[#allocation5 + $0x238] sm:$0xff] %v2169_v34  ;;  %2313 = vxpose.xlu1.b32.cont [3/16] (narrow) %v764_v33, 64  ;;  %v2201_v36 = vpop.trf.xlu1  ;;  %v800_v33 = vld [vmem:[#allocation2 + $0x1848] sm:$0xff] }
 0x5de   :  { %2879 = vst [vmem:[#allocation5 + $0xeb8] sm:$0xff] %v2201_v36 }
 0x5e0   :  { %2282 = vxpose.xlu0.b32.cont [4/16] %v765_v35, 128  ;;  %v2170_v38 = vpop.trf.xlu0  ;;  %v801_v35 = vld [vmem:[#allocation2 + $0x1850] sm:$0xff] }
 0x5e1   :  { %2504 = vst [vmem:[#allocation5 + $0x300] sm:$0xff] %v2170_v38  ;;  %2314 = vxpose.xlu1.b32.cont [4/16] (narrow) %v766_v37, 64  ;;  %v2202_v40 = vpop.trf.xlu1  ;;  %v802_v37 = vld [vmem:[#allocation2 + $0x1858] sm:$0xff] }
 0x5e2   :  { %2904 = vst [vmem:[#allocation5 + $0xf80] sm:$0xff] %v2202_v40 }
 0x5e4   :  { %2283 = vxpose.xlu0.b32.cont [5/16] %v767_v39, 128  ;;  %v2171_v42 = vpop.trf.xlu0  ;;  %v803_v39 = vld [vmem:[#allocation2 + $0x1860] sm:$0xff] }
 0x5e5   :  { %2529 = vst [vmem:[#allocation5 + $0x3c8] sm:$0xff] %v2171_v42  ;;  %2315 = vxpose.xlu1.b32.cont [5/16] (narrow) %v768_v41, 64  ;;  %v2203_v44 = vpop.trf.xlu1  ;;  %v804_v41 = vld [vmem:[#allocation2 + $0x1868] sm:$0xff] }
 0x5e6   :  { %2929 = vst [vmem:[#allocation5 + $0x1048] sm:$0xff] %v2203_v44 }
 0x5e8   :  { %2284 = vxpose.xlu0.b32.cont [6/16] %v769_v43, 128  ;;  %v2172_v46 = vpop.trf.xlu0  ;;  %v805_v43 = vld [vmem:[#allocation2 + $0x1870] sm:$0xff] }
 0x5e9   :  { %2554 = vst [vmem:[#allocation5 + $0x490] sm:$0xff] %v2172_v46  ;;  %2316 = vxpose.xlu1.b32.cont [6/16] (narrow) %v770_v45, 64  ;;  %v2204_v48 = vpop.trf.xlu1  ;;  %v806_v45 = vld [vmem:[#allocation2 + $0x1878] sm:$0xff] }
 0x5ea   :  { %2954 = vst [vmem:[#allocation5 + $0x1110] sm:$0xff] %v2204_v48 }
 0x5ec   :  { %2285 = vxpose.xlu0.b32.cont [7/16] %v771_v47, 128  ;;  %v2173_v50 = vpop.trf.xlu0 }
 0x5ed   :  { %2579 = vst [vmem:[#allocation5 + $0x558] sm:$0xff] %v2173_v50  ;;  %2317 = vxpose.xlu1.b32.cont [7/16] (narrow) %v772_v49, 64  ;;  %v2205_v52 = vpop.trf.xlu1 }
 0x5ee   :  { %2979 = vst [vmem:[#allocation5 + $0x11d8] sm:$0xff] %v2205_v52 }
 0x5f0   :  { %2286 = vxpose.xlu0.b32.cont [8/16] %v773_v51, 128  ;;  %v2174_v54 = vpop.trf.xlu0 }
 0x5f1   :  { %2604 = vst [vmem:[#allocation5 + $0x620] sm:$0xff] %v2174_v54  ;;  %2318 = vxpose.xlu1.b32.cont [8/16] (narrow) %v774_v53, 64  ;;  %v2206_v56 = vpop.trf.xlu1 }
 0x5f2   :  { %3004 = vst [vmem:[#allocation5 + $0x12a0] sm:$0xff] %v2206_v56 }
 0x5f4   :  { %2287 = vxpose.xlu0.b32.cont [9/16] %v775_v55, 128  ;;  %v2175_v58 = vpop.trf.xlu0 }
 0x5f5   :  { %2629 = vst [vmem:[#allocation5 + $0x6e8] sm:$0xff] %v2175_v58  ;;  %2319 = vxpose.xlu1.b32.cont [9/16] (narrow) %v776_v57, 64 }
 0x5f8   :  { %2288 = vxpose.xlu0.b32.cont [10/16] %v777_v59, 128  ;;  %v2176_v61 = vpop.trf.xlu0 }
 0x5f9   :  { %2654 = vst [vmem:[#allocation5 + $0x7b0] sm:$0xff] %v2176_v61  ;;  %2320 = vxpose.xlu1.b32.cont [10/16] (narrow) %v778_v60, 64 }
 0x5fc   :  { %2289 = vxpose.xlu0.b32.cont [11/16] %v779_v62, 128  ;;  %v2177_v0 = vpop.trf.xlu0 }
 0x5fd   :  { %2679 = vst [vmem:[#allocation5 + $0x878] sm:$0xff] %v2177_v0  ;;  %2321 = vxpose.xlu1.b32.cont [11/16] (narrow) %v780_v63, 64 }
 0x600   :  { %2290 = vxpose.xlu0.b32.cont [12/16] %v781_v1, 128  ;;  %v2178_v3 = vpop.trf.xlu0 }
 0x601   :  { %2704 = vst [vmem:[#allocation5 + $0x940] sm:$0xff] %v2178_v3  ;;  %2322 = vxpose.xlu1.b32.cont [12/16] (narrow) %v782_v2, 64 }
 0x604   :  { %2291 = vxpose.xlu0.b32.cont [13/16] %v783_v4, 128  ;;  %v2179_v6 = vpop.trf.xlu0 }
 0x605   :  { %2729 = vst [vmem:[#allocation5 + $0xa08] sm:$0xff] %v2179_v6  ;;  %2323 = vxpose.xlu1.b32.cont [13/16] (narrow) %v784_v5, 64 }
 0x608   :  { %2292 = vxpose.xlu0.b32.cont [14/16] %v785_v7, 128  ;;  %v2180_v9 = vpop.trf.xlu0 }
 0x609   :  { %2754 = vst [vmem:[#allocation5 + $0xad0] sm:$0xff] %v2180_v9  ;;  %2324 = vxpose.xlu1.b32.cont [14/16] (narrow) %v786_v8, 64 }
 0x60c   :  { %2293 = vxpose.xlu0.b32.cont [15/16] %v787_v10, 128  ;;  %v2181_v12 = vpop.trf.xlu0 }
 0x60d   :  { %2779 = vst [vmem:[#allocation5 + $0xb98] sm:$0xff] %v2181_v12  ;;  %2325 = vxpose.xlu1.b32.cont [15/16] (narrow) %v788_v11, 64 }
 0x610   :  { %2294 = vxpose.xlu0.b32.end [16/16] %v789_v13, 128  ;;  %v2182_v15 = vpop.trf.xlu0 }
 0x611   :  { %2804 = vst [vmem:[#allocation5 + $0xc60] sm:$0xff] %v2182_v15  ;;  %2326 = vxpose.xlu1.b32.end [16/16] (narrow) %v790_v14, 64 }
 0x614   :  { %2343 = vxpose.xlu0.b32.start [1/8] (short) %v791_v16, 128  ;;  %v2231_v18 = vpop.trf.xlu0 }
 0x615   :  { %2429 = vst [vmem:[#allocation5 + $0xb0] sm:$0xff] %v2231_v18  ;;  %2375 = vxpose.xlu1.b32.start [1/8] (short) (narrow) %v792_v17, 64  ;;  %v2263_v20 = vpop.trf.xlu1 }
 0x616   :  { %2830 = vst [vmem:[#allocation5 + $0xd30] sm:$0xff] %v2263_v20 }
 0x618   :  { %2344 = vxpose.xlu0.b32.cont [2/8] (short) %v793_v19, 128  ;;  %v2232_v22 = vpop.trf.xlu0 }
 0x619   :  { %2455 = vst [vmem:[#allocation5 + $0x178] sm:$0xff] %v2232_v22  ;;  %2376 = vxpose.xlu1.b32.cont [2/8] (short) (narrow) %v794_v21, 64  ;;  %v2264_v24 = vpop.trf.xlu1 }
 0x61a   :  { %2855 = vst [vmem:[#allocation5 + $0xdf8] sm:$0xff] %v2264_v24 }
 0x61c   :  { %2345 = vxpose.xlu0.b32.cont [3/8] (short) %v795_v23, 128  ;;  %v2233_v26 = vpop.trf.xlu0 }
 0x61d   :  { %2480 = vst [vmem:[#allocation5 + $0x240] sm:$0xff] %v2233_v26  ;;  %2377 = vxpose.xlu1.b32.cont [3/8] (short) (narrow) %v796_v25, 64  ;;  %v2265_v28 = vpop.trf.xlu1 }
 0x61e   :  { %2880 = vst [vmem:[#allocation5 + $0xec0] sm:$0xff] %v2265_v28 }
 0x620   :  { %2346 = vxpose.xlu0.b32.cont [4/8] (short) %v797_v27, 128  ;;  %v2234_v30 = vpop.trf.xlu0 }
 0x621   :  { %2505 = vst [vmem:[#allocation5 + $0x308] sm:$0xff] %v2234_v30  ;;  %2378 = vxpose.xlu1.b32.cont [4/8] (short) (narrow) %v798_v29, 64  ;;  %v2266_v32 = vpop.trf.xlu1 }
 0x622   :  { %2905 = vst [vmem:[#allocation5 + $0xf88] sm:$0xff] %v2266_v32 }
 0x624   :  { %2347 = vxpose.xlu0.b32.cont [5/8] (short) %v799_v31, 128  ;;  %v2235_v34 = vpop.trf.xlu0 }
 0x625   :  { %2530 = vst [vmem:[#allocation5 + $0x3d0] sm:$0xff] %v2235_v34  ;;  %2379 = vxpose.xlu1.b32.cont [5/8] (short) (narrow) %v800_v33, 64  ;;  %v2267_v36 = vpop.trf.xlu1 }
 0x626   :  { %2930 = vst [vmem:[#allocation5 + $0x1050] sm:$0xff] %v2267_v36 }
 0x628   :  { %2348 = vxpose.xlu0.b32.cont [6/8] (short) %v801_v35, 128  ;;  %v2236_v38 = vpop.trf.xlu0 }
 0x629   :  { %2555 = vst [vmem:[#allocation5 + $0x498] sm:$0xff] %v2236_v38  ;;  %2380 = vxpose.xlu1.b32.cont [6/8] (short) (narrow) %v802_v37, 64  ;;  %v2268_v40 = vpop.trf.xlu1 }
 0x62a   :  { %2955 = vst [vmem:[#allocation5 + $0x1118] sm:$0xff] %v2268_v40 }
 0x62c   :  { %2349 = vxpose.xlu0.b32.cont [7/8] (short) %v803_v39, 128  ;;  %v2237_v42 = vpop.trf.xlu0 }
 0x62d   :  { %2580 = vst [vmem:[#allocation5 + $0x560] sm:$0xff] %v2237_v42  ;;  %2381 = vxpose.xlu1.b32.cont [7/8] (short) (narrow) %v804_v41, 64  ;;  %v2269_v44 = vpop.trf.xlu1 }
 0x62e   :  { %2980 = vst [vmem:[#allocation5 + $0x11e0] sm:$0xff] %v2269_v44 }
 0x630   :  { %2350 = vxpose.xlu0.b32.end [8/8] (short) %v805_v43, 128  ;;  %v2238_v46 = vpop.trf.xlu0 }
 0x631   :  { %2605 = vst [vmem:[#allocation5 + $0x628] sm:$0xff] %v2238_v46  ;;  %2382 = vxpose.xlu1.b32.end [8/8] (short) (narrow) %v806_v45, 64  ;;  %v2270_v47 = vpop.trf.xlu1 }
 0x632   :  { %3005 = vst [vmem:[#allocation5 + $0x12a8] sm:$0xff] %v2270_v47 }
 0x634   :  { %v2239_v48 = vpop.trf.xlu0 }
 0x635   :  { %2630 = vst [vmem:[#allocation5 + $0x6f0] sm:$0xff] %v2239_v48 }
 0x638   :  { %v2240_v49 = vpop.trf.xlu0 }
 0x639   :  { %2655 = vst [vmem:[#allocation5 + $0x7b8] sm:$0xff] %v2240_v49 }
 0x63c   :  { %v2241_v50 = vpop.trf.xlu0 }
 0x63d   :  { %2680 = vst [vmem:[#allocation5 + $0x880] sm:$0xff] %v2241_v50 }
 0x640   :  { %v2242_v51 = vpop.trf.xlu0 }
 0x641   :  { %2705 = vst [vmem:[#allocation5 + $0x948] sm:$0xff] %v2242_v51 }
 0x644   :  { %v2243_v52 = vpop.trf.xlu0 }
 0x645   :  { %2730 = vst [vmem:[#allocation5 + $0xa10] sm:$0xff] %v2243_v52 }
 0x648   :  { %v2244_v53 = vpop.trf.xlu0 }
 0x649   :  { %2755 = vst [vmem:[#allocation5 + $0xad8] sm:$0xff] %v2244_v53 }
 0x64c   :  { %v2245_v54 = vpop.trf.xlu0 }
 0x64d   :  { %2780 = vst [vmem:[#allocation5 + $0xba0] sm:$0xff] %v2245_v54 }
 0x650   :  { %v2246_v55 = vpop.trf.xlu0 }
 0x651   :  { %2805 = vst [vmem:[#allocation5 + $0xc68] sm:$0xff] %v2246_v55 }
 0x654   :  { %v2295_v56 = vpop.trf.xlu0 }
 0x655   :  { %2430 = vst [vmem:[#allocation5 + $0xb8] sm:$0xff] %v2295_v56  ;;  %v2327_v57 = vpop.trf.xlu1 }
 0x656   :  { %2831 = vst [vmem:[#allocation5 + $0xd38] sm:$0xff] %v2327_v57 }
 0x658   :  { %v2296_v58 = vpop.trf.xlu0 }
 0x659   :  { %2456 = vst [vmem:[#allocation5 + $0x180] sm:$0xff] %v2296_v58  ;;  %v2328_v59 = vpop.trf.xlu1 }
 0x65a   :  { %2856 = vst [vmem:[#allocation5 + $0xe00] sm:$0xff] %v2328_v59 }
 0x65c   :  { %v2297_v60 = vpop.trf.xlu0 }
 0x65d   :  { %2481 = vst [vmem:[#allocation5 + $0x248] sm:$0xff] %v2297_v60  ;;  %v2329_v61 = vpop.trf.xlu1 }
 0x65e   :  { %2881 = vst [vmem:[#allocation5 + $0xec8] sm:$0xff] %v2329_v61 }
 0x660   :  { %v2298_v62 = vpop.trf.xlu0 }
 0x661   :  { %2506 = vst [vmem:[#allocation5 + $0x310] sm:$0xff] %v2298_v62  ;;  %v2330_v63 = vpop.trf.xlu1 }
 0x662   :  { %2906 = vst [vmem:[#allocation5 + $0xf90] sm:$0xff] %v2330_v63 }
 0x664   :  { %v2299_v0 = vpop.trf.xlu0 }
 0x665   :  { %2531 = vst [vmem:[#allocation5 + $0x3d8] sm:$0xff] %v2299_v0  ;;  %v2331_v1 = vpop.trf.xlu1 }
 0x666   :  { %2931 = vst [vmem:[#allocation5 + $0x1058] sm:$0xff] %v2331_v1 }
 0x668   :  { %v2300_v2 = vpop.trf.xlu0 }
 0x669   :  { %2556 = vst [vmem:[#allocation5 + $0x4a0] sm:$0xff] %v2300_v2  ;;  %v2332_v3 = vpop.trf.xlu1 }
 0x66a   :  { %2956 = vst [vmem:[#allocation5 + $0x1120] sm:$0xff] %v2332_v3 }
 0x66c   :  { %v2301_v4 = vpop.trf.xlu0 }
 0x66d   :  { %2581 = vst [vmem:[#allocation5 + $0x568] sm:$0xff] %v2301_v4  ;;  %v2333_v5 = vpop.trf.xlu1 }
 0x66e   :  { %2981 = vst [vmem:[#allocation5 + $0x11e8] sm:$0xff] %v2333_v5 }
 0x670   :  { %v2302_v6 = vpop.trf.xlu0 }
 0x671   :  { %2606 = vst [vmem:[#allocation5 + $0x630] sm:$0xff] %v2302_v6  ;;  %v2334_v7 = vpop.trf.xlu1 }
 0x672   :  { %3006 = vst [vmem:[#allocation5 + $0x12b0] sm:$0xff] %v2334_v7 }
 0x674   :  { %v2303_v8 = vpop.trf.xlu0 }
 0x675   :  { %2631 = vst [vmem:[#allocation5 + $0x6f8] sm:$0xff] %v2303_v8 }
 0x678   :  { %v2304_v9 = vpop.trf.xlu0 }
 0x679   :  { %2656 = vst [vmem:[#allocation5 + $0x7c0] sm:$0xff] %v2304_v9 }
 0x67c   :  { %v2305_v10 = vpop.trf.xlu0 }
 0x67d   :  { %2681 = vst [vmem:[#allocation5 + $0x888] sm:$0xff] %v2305_v10 }
 0x680   :  { %v2306_v11 = vpop.trf.xlu0 }
 0x681   :  { %2706 = vst [vmem:[#allocation5 + $0x950] sm:$0xff] %v2306_v11 }
 0x684   :  { %v2307_v12 = vpop.trf.xlu0 }
 0x685   :  { %2731 = vst [vmem:[#allocation5 + $0xa18] sm:$0xff] %v2307_v12 }
 0x688   :  { %v2308_v13 = vpop.trf.xlu0 }
 0x689   :  { %2756 = vst [vmem:[#allocation5 + $0xae0] sm:$0xff] %v2308_v13 }
 0x68c   :  { %v2309_v14 = vpop.trf.xlu0 }
 0x68d   :  { %2781 = vst [vmem:[#allocation5 + $0xba8] sm:$0xff] %v2309_v14 }
 0x690   :  { %v2310_v15 = vpop.trf.xlu0 }
 0x691   :  { %2806 = vst [vmem:[#allocation5 + $0xc70] sm:$0xff] %v2310_v15 }
 0x694   :  { %v2359_v16 = vpop.trf.xlu0 }
 0x695   :  { %2432 = vst.msk [vmem:[#allocation5 + $0xc0] sm:$0xff] %vm2431_vm0, %v2359_v16  ;;  %v2391_v17 = vpop.trf.xlu1 }
 0x696   :  { %2832 = vst.msk [vmem:[#allocation5 + $0xd40] sm:$0xff] %vm2431_vm0, %v2391_v17 }
 0x698   :  { %v2360_v18 = vpop.trf.xlu0 }
 0x699   :  { %2457 = vst.msk [vmem:[#allocation5 + $0x188] sm:$0xff] %vm2431_vm0, %v2360_v18  ;;  %v2392_v19 = vpop.trf.xlu1 }
 0x69a   :  { %2857 = vst.msk [vmem:[#allocation5 + $0xe08] sm:$0xff] %vm2431_vm0, %v2392_v19 }
 0x69c   :  { %v2361_v20 = vpop.trf.xlu0 }
 0x69d   :  { %2482 = vst.msk [vmem:[#allocation5 + $0x250] sm:$0xff] %vm2431_vm0, %v2361_v20  ;;  %v2393_v21 = vpop.trf.xlu1 }
 0x69e   :  { %2882 = vst.msk [vmem:[#allocation5 + $0xed0] sm:$0xff] %vm2431_vm0, %v2393_v21 }
 0x6a0   :  { %v2362_v22 = vpop.trf.xlu0 }
 0x6a1   :  { %2507 = vst.msk [vmem:[#allocation5 + $0x318] sm:$0xff] %vm2431_vm0, %v2362_v22  ;;  %v2394_v23 = vpop.trf.xlu1 }
 0x6a2   :  { %2907 = vst.msk [vmem:[#allocation5 + $0xf98] sm:$0xff] %vm2431_vm0, %v2394_v23 }
 0x6a4   :  { %v2363_v24 = vpop.trf.xlu0 }
 0x6a5   :  { %2532 = vst.msk [vmem:[#allocation5 + $0x3e0] sm:$0xff] %vm2431_vm0, %v2363_v24  ;;  %v2395_v25 = vpop.trf.xlu1 }
 0x6a6   :  { %2932 = vst.msk [vmem:[#allocation5 + $0x1060] sm:$0xff] %vm2431_vm0, %v2395_v25 }
 0x6a8   :  { %v2364_v26 = vpop.trf.xlu0 }
 0x6a9   :  { %2557 = vst.msk [vmem:[#allocation5 + $0x4a8] sm:$0xff] %vm2431_vm0, %v2364_v26  ;;  %v2396_v27 = vpop.trf.xlu1 }
 0x6aa   :  { %2957 = vst.msk [vmem:[#allocation5 + $0x1128] sm:$0xff] %vm2431_vm0, %v2396_v27 }
 0x6ac   :  { %v2365_v28 = vpop.trf.xlu0 }
 0x6ad   :  { %2582 = vst.msk [vmem:[#allocation5 + $0x570] sm:$0xff] %vm2431_vm0, %v2365_v28  ;;  %v2397_v29 = vpop.trf.xlu1 }
 0x6ae   :  { %2982 = vst.msk [vmem:[#allocation5 + $0x11f0] sm:$0xff] %vm2431_vm0, %v2397_v29 }
 0x6b0   :  { %v2366_v30 = vpop.trf.xlu0 }
 0x6b1   :  { %2607 = vst.msk [vmem:[#allocation5 + $0x638] sm:$0xff] %vm2431_vm0, %v2366_v30  ;;  %v2398_v31 = vpop.trf.xlu1 }
 0x6b2   :  { %3007 = vst.msk [vmem:[#allocation5 + $0x12b8] sm:$0xff] %vm2431_vm0, %v2398_v31 }
 0x6b4   :  { %v2367_v32 = vpop.trf.xlu0 }
 0x6b5   :  { %2632 = vst.msk [vmem:[#allocation5 + $0x700] sm:$0xff] %vm2431_vm0, %v2367_v32 }
 0x6b8   :  { %v2368_v33 = vpop.trf.xlu0 }
 0x6b9   :  { %2657 = vst.msk [vmem:[#allocation5 + $0x7c8] sm:$0xff] %vm2431_vm0, %v2368_v33 }
 0x6bc   :  { %v2369_v34 = vpop.trf.xlu0 }
 0x6bd   :  { %2682 = vst.msk [vmem:[#allocation5 + $0x890] sm:$0xff] %vm2431_vm0, %v2369_v34 }
 0x6c0   :  { %v2370_v35 = vpop.trf.xlu0 }
 0x6c1   :  { %2707 = vst.msk [vmem:[#allocation5 + $0x958] sm:$0xff] %vm2431_vm0, %v2370_v35 }
 0x6c4   :  { %v2371_v36 = vpop.trf.xlu0 }
 0x6c5   :  { %2732 = vst.msk [vmem:[#allocation5 + $0xa20] sm:$0xff] %vm2431_vm0, %v2371_v36 }
 0x6c8   :  { %v2372_v37 = vpop.trf.xlu0 }
 0x6c9   :  { %2757 = vst.msk [vmem:[#allocation5 + $0xae8] sm:$0xff] %vm2431_vm0, %v2372_v37 }
 0x6cc   :  { %v2373_v38 = vpop.trf.xlu0 }
 0x6cd   :  { %2782 = vst.msk [vmem:[#allocation5 + $0xbb0] sm:$0xff] %vm2431_vm0, %v2373_v38 }
 0x6d0   :  { %v2374_v39 = vpop.trf.xlu0 }
 0x6d1   :  { %2807 = vst.msk [vmem:[#allocation5 + $0xc78] sm:$0xff] %vm2431_vm0, %v2374_v39 }
 0x6d2   :  { %3065 = shalt.err (!%p3062_p12)
}
 0x6d3   :  { %s3066_s24 = scalar_lea.hbm %s3145_s1, 76800 }
 0x6d4   :  { %p3067_p13 = scmp.ne.s32.totalorder %s3145_s1, %s3066_s24  ;;  %p3070_p0 = scmp.lt.u32.totalorder %s3066_s24, %s3145_s1 }
 0x6d6   :  { %p3072_p1 = pnand %p3070_p0, %p3067_p13 }
 0x6d8   :  { %3075 = shalt.err (!%p3072_p1)
}
 0x6d9   :  { %s3084_s29 = smov 3200   ;;  %s3085_s30 = smov 200  }
 0x6da   :  { %3019 = dma.vmem_to_hbm [thread:$0]  %s3014_s20, 76800, %s3145_s1, [#allocation4], %s3084_s29, %s3084_s29, %s3085_s30  }
 0x6db   :  { %3078 = dma.done.wait [#allocation4], 76800  }
 0x6dc   :  { %3079 = vsyncadd [#allocation4], 4294890496 }
 0x6dd   :  { %3023 = vsyncpa [#allocation3], 1 }
 0x6de   :  { %3024 = vsyncpa [#allocation4], 1 }

</bundles_post_ra>
